<compile_context>
chip_gen: v7x
topology: tpu7x:2x2x1
jax: 0.10.0
libtpu: 0.0.40
codegen_flags: <defaults>
</compile_context>

<pallas_src>
import functools

import jax
import jax.numpy as jnp
import numpy as np
from jax import lax
from jax.experimental import pallas as pl
from jax.experimental.pallas import tpu as pltpu  # noqa: F401  (not needed at this size)

# Hyper-parameters implied by the module (params_loaded substitutes).
N_HIDDENS = 32
N_LAYERS = 2          # kernel below is specialized to 2 layers (as in the module)
N_TAGS = 8
BATCH = 2
SEQ = 8
BATCH_PAD = 8         # pad batch to one full sublane tile -> all slices aligned


# ---------------------------------------------------------------------------
# Fused whole-network kernel (single invocation, everything VMEM-resident).
# ---------------------------------------------------------------------------
def _stacked_gru_kernel(
    x_ref,                                            # (S*BP, n_tags)  time-major
    wih_f0, whh_f0, bih_f0, bhh_f0,                   # layer 0 forward
    wih_b0, whh_b0, bih_b0, bhh_b0,                   # layer 0 backward
    wih_f1, whh_f1, bih_f1, bhh_f1,                   # layer 1 forward
    wih_b1, whh_b1, bih_b1, bhh_b1,                   # layer 1 backward
    wfc_ref, bfc_ref,                                 # final Linear
    out_ref,                                          # (B, n_tags)
    *, seq, batch, batch_pad, hidden,
):
    S, B, BP, H = seq, batch, batch_pad, hidden
    f32 = jnp.float32

    def cell(gi, gh, h):
        # torch.nn.GRU cell; gate order r | z | n along the fused 3H axis.
        r = jax.nn.sigmoid(gi[:, 0:H] + gh[:, 0:H])
        z = jax.nn.sigmoid(gi[:, H:2 * H] + gh[:, H:2 * H])
        n = jnp.tanh(gi[:, 2 * H:3 * H] + r * gh[:, 2 * H:3 * H])
        return (1.0 - z) * n + z * h

    def run_direction(gi_all, whh, bhh, reverse):
        # gi_all: (S*BP, 3H) precomputed input projection (+ bih).
        # Only h @ Whh stays on the serial critical path; fully unrolled (S=8),
        # so every slice offset below is static and tile-aligned (BP = 8).
        h = jnp.zeros((BP, H), f32)
        outs = [None] * S
        ts = range(S - 1, -1, -1) if reverse else range(S)
        for t in ts:
            gh = jnp.dot(h, whh, preferred_element_type=f32) + bhh
            h = cell(gi_all[t * BP:(t + 1) * BP, :], gh, h)
            outs[t] = h
        return outs                                    # list of S x (BP, H)

    x = x_ref[...]                                     # (S*BP, D)

    # ---------------- layer 0 : hoisted input projections -------------------
    gi_f0 = jnp.dot(x, wih_f0[...], preferred_element_type=f32) + bih_f0[...]
    gi_b0 = jnp.dot(x, wih_b0[...], preferred_element_type=f32) + bih_b0[...]
    f0 = run_direction(gi_f0, whh_f0[...], bhh_f0[...], reverse=False)
    b0 = run_direction(gi_b0, whh_b0[...], bhh_b0[...], reverse=True)

    # Stack per-direction outputs (aligned sublane concat: each piece is 8 rows).
    F0 = jnp.concatenate(f0, axis=0)                   # (S*BP, H)
    B0 = jnp.concatenate(b0, axis=0)                   # (S*BP, H)

    # ---------------- layer 1 forward ---------------------------------------
    # Input of layer 1 is [fwd | bwd]; apply the two row-halves of Wih
    # separately, which hoists the projection and avoids any lane-dim concat.
    w1f = wih_f1[...]                                  # (2H, 3H)
    gi_f1 = (jnp.dot(F0, w1f[0:H, :], preferred_element_type=f32)
             + jnp.dot(B0, w1f[H:2 * H, :], preferred_element_type=f32)
             + bih_f1[...])
    f1 = run_direction(gi_f1, whh_f1[...], bhh_f1[...], reverse=False)
    h_f1_last = f1[S - 1]                              # fwd output at t = S-1

    # ---------------- layer 1 backward: single needed step -------------------
    # outs[-1]'s backward half is the hidden state after the reverse direction's
    # FIRST step (input at t = S-1, h0 = 0), so only that step is computed.
    w1b = wih_b1[...]
    gi_b1_last = (jnp.dot(f0[S - 1], w1b[0:H, :], preferred_element_type=f32)
                  + jnp.dot(b0[S - 1], w1b[H:2 * H, :], preferred_element_type=f32)
                  + bih_b1[...])
    h_b1_last = cell(gi_b1_last, bhh_b1[...], jnp.zeros((BP, H), f32))

    # ---------------- fused FC + residual epilogue ---------------------------
    wfc = wfc_ref[...]                                 # (2H, n_tags)
    fc = (jnp.dot(h_f1_last, wfc[0:H, :], preferred_element_type=f32)
          + jnp.dot(h_b1_last, wfc[H:2 * H, :], preferred_element_type=f32)
          + bfc_ref[...])
    out_full = fc + x[0:BP, :]                         # residual: x[:, 0, :]
    out_ref[...] = out_full[0:B, :]                    # drop batch padding


# ---------------------------------------------------------------------------
# Wrapper: one pallas_call, no grid, every operand whole in VMEM.
# ---------------------------------------------------------------------------
@jax.jit
def stacked_gru_forward(x, params):
    """x: (B, S, n_tags) -> (B, n_tags)."""
    B, S, D = x.shape
    x_tm = jnp.transpose(x, (1, 0, 2)).astype(jnp.float32)          # (S, B, D)
    x_pad = jnp.pad(x_tm, ((0, 0), (0, BATCH_PAD - B), (0, 0)))     # (S, BP, D)
    x_flat = x_pad.reshape(S * BATCH_PAD, D)                        # (S*BP, D)

    args = [x_flat]
    for l in range(N_LAYERS):
        p = params["layers"][l]
        for d in ("f", "b"):
            args += [p[f"wih_{d}"], p[f"whh_{d}"], p[f"bih_{d}"], p[f"bhh_{d}"]]
    args += [params["w_fc"], params["b_fc"]]

    kernel = functools.partial(
        _stacked_gru_kernel,
        seq=S, batch=B, batch_pad=BATCH_PAD, hidden=N_HIDDENS)

    return pl.pallas_call(
        kernel,
        out_shape=jax.ShapeDtypeStruct((B, D), jnp.float32),
    )(*args)


# ---------------------------------------------------------------------------
# Pure-JAX reference (full computation, same fused-weight layout).
# ---------------------------------------------------------------------------
def _gru_direction_ref(x_seq, wih, whh, bih, bhh):
    B = x_seq.shape[1]
    H = whh.shape[0]

    def step(h, x_t):
        gi = x_t @ wih + bih
        gh = h @ whh + bhh
        r = jax.nn.sigmoid(gi[:, 0:H] + gh[:, 0:H])
        z = jax.nn.sigmoid(gi[:, H:2 * H] + gh[:, H:2 * H])
        n = jnp.tanh(gi[:, 2 * H:3 * H] + r * gh[:, 2 * H:3 * H])
        h_new = (1.0 - z) * n + z * h
        return h_new, h_new

    h0 = jnp.zeros((B, H), jnp.float32)
    _, outs = lax.scan(step, h0, x_seq)
    return outs


def stacked_gru_ref(x, params):
    x_tm = jnp.transpose(x, (1, 0, 2)).astype(jnp.float32)
    layer_in = x_tm
    for l in range(N_LAYERS):
        p = params["layers"][l]
        out_f = _gru_direction_ref(layer_in, p["wih_f"], p["whh_f"], p["bih_f"], p["bhh_f"])
        out_b = _gru_direction_ref(layer_in[::-1], p["wih_b"], p["whh_b"], p["bih_b"], p["bhh_b"])[::-1]
        layer_in = jnp.concatenate([out_f, out_b], axis=-1)
    last = layer_in[-1]
    return last @ params["w_fc"] + params["b_fc"] + x_tm[0]


# ---------------------------------------------------------------------------
# Deterministic parameter init (uniform in [-1/sqrt(H), 1/sqrt(H)], like torch),
# stored directly in the fused (D, 3H)/(H, 3H)/(1, 3H) layout, gate order r|z|n.
# ---------------------------------------------------------------------------
def init_params(key):
    bound = 1.0 / np.sqrt(N_HIDDENS)
    layers = []
    for l in range(N_LAYERS):
        in_dim = N_TAGS if l == 0 else 2 * N_HIDDENS
        layer = {}
        for d in ("f", "b"):
            key, k1, k2, k3, k4 = jax.random.split(key, 5)
            layer[f"wih_{d}"] = jax.random.uniform(
                k1, (in_dim, 3 * N_HIDDENS), jnp.float32, -bound, bound)
            layer[f"whh_{d}"] = jax.random.uniform(
                k2, (N_HIDDENS, 3 * N_HIDDENS), jnp.float32, -bound, bound)
            layer[f"bih_{d}"] = jax.random.uniform(
                k3, (1, 3 * N_HIDDENS), jnp.float32, -bound, bound)
            layer[f"bhh_{d}"] = jax.random.uniform(
                k4, (1, 3 * N_HIDDENS), jnp.float32, -bound, bound)
        layers.append(layer)
    key, kw, kb = jax.random.split(key, 3)
    fc_bound = 1.0 / np.sqrt(2 * N_HIDDENS)
    w_fc = jax.random.uniform(kw, (2 * N_HIDDENS, N_TAGS), jnp.float32, -fc_bound, fc_bound)
    b_fc = jax.random.uniform(kb, (1, N_TAGS), jnp.float32, -fc_bound, fc_bound)
    return {"layers": layers, "w_fc": w_fc, "b_fc": b_fc}


if __name__ == "__main__":
    key = jax.random.PRNGKey(0)
    key, kx = jax.random.split(key)
    x = jax.random.normal(kx, (BATCH, SEQ, N_TAGS), jnp.float32)  # module input (B, S, n_tags)
    params = init_params(key)

    out = jax.block_until_ready(stacked_gru_forward(x, params))
    ref = jax.block_until_ready(stacked_gru_ref(x, params))

    assert out.shape == (BATCH, N_TAGS)
    np.testing.assert_allclose(np.asarray(out), np.asarray(ref), rtol=1e-4, atol=1e-4)
    print("KERNEL_OK")
</pallas_src>

<mosaic_0001>
module attributes {stable_mosaic.version = 11 : i64} {
  func.func @_stacked_gru_kernel(%arg0: memref<64x8xf32, #tpu.memory_space<vmem>>, %arg1: memref<8x96xf32, #tpu.memory_space<vmem>>, %arg2: memref<32x96xf32, #tpu.memory_space<vmem>>, %arg3: memref<1x96xf32, #tpu.memory_space<vmem>>, %arg4: memref<1x96xf32, #tpu.memory_space<vmem>>, %arg5: memref<8x96xf32, #tpu.memory_space<vmem>>, %arg6: memref<32x96xf32, #tpu.memory_space<vmem>>, %arg7: memref<1x96xf32, #tpu.memory_space<vmem>>, %arg8: memref<1x96xf32, #tpu.memory_space<vmem>>, %arg9: memref<64x96xf32, #tpu.memory_space<vmem>>, %arg10: memref<32x96xf32, #tpu.memory_space<vmem>>, %arg11: memref<1x96xf32, #tpu.memory_space<vmem>>, %arg12: memref<1x96xf32, #tpu.memory_space<vmem>>, %arg13: memref<64x96xf32, #tpu.memory_space<vmem>>, %arg14: memref<32x96xf32, #tpu.memory_space<vmem>>, %arg15: memref<1x96xf32, #tpu.memory_space<vmem>>, %arg16: memref<1x96xf32, #tpu.memory_space<vmem>>, %arg17: memref<64x8xf32, #tpu.memory_space<vmem>>, %arg18: memref<1x8xf32, #tpu.memory_space<vmem>>, %arg19: memref<2x8xf32, #tpu.memory_space<vmem>>) attributes {dimension_semantics = [], scalar_prefetch = 0 : i64, scratch_operands = 0 : i64, tpu.core_type = #tpu.core_type<tc>} {
    %c0 = arith.constant 0 : index
    %c0_0 = arith.constant 0 : index
    %0 = vector.load %arg0[%c0, %c0_0] : memref<64x8xf32, #tpu.memory_space<vmem>>, vector<64x8xf32>
    %c0_1 = arith.constant 0 : index
    %c0_2 = arith.constant 0 : index
    %1 = vector.load %arg1[%c0_1, %c0_2] : memref<8x96xf32, #tpu.memory_space<vmem>>, vector<8x96xf32>
    %cst = arith.constant dense<0.000000e+00> : vector<64x96xf32>
    %2 = tpu.matmul %0, %1, %cst {dimension_numbers = #tpu.dot_dimension_numbers<[1], [0], [0], [1], [0, 0, 1, 1], [], []>} : vector<64x8xf32>, vector<8x96xf32>, vector<64x96xf32> -> vector<64x96xf32>
    %c0_3 = arith.constant 0 : index
    %c0_4 = arith.constant 0 : index
    %3 = vector.load %arg3[%c0_3, %c0_4] : memref<1x96xf32, #tpu.memory_space<vmem>>, vector<1x96xf32>
    %4 = vector.broadcast %3 : vector<1x96xf32> to vector<64x96xf32>
    %5 = arith.addf %2, %4 : vector<64x96xf32>
    %c0_5 = arith.constant 0 : index
    %c0_6 = arith.constant 0 : index
    %6 = vector.load %arg5[%c0_5, %c0_6] : memref<8x96xf32, #tpu.memory_space<vmem>>, vector<8x96xf32>
    %cst_7 = arith.constant dense<0.000000e+00> : vector<64x96xf32>
    %7 = tpu.matmul %0, %6, %cst_7 {dimension_numbers = #tpu.dot_dimension_numbers<[1], [0], [0], [1], [0, 0, 1, 1], [], []>} : vector<64x8xf32>, vector<8x96xf32>, vector<64x96xf32> -> vector<64x96xf32>
    %c0_8 = arith.constant 0 : index
    %c0_9 = arith.constant 0 : index
    %8 = vector.load %arg7[%c0_8, %c0_9] : memref<1x96xf32, #tpu.memory_space<vmem>>, vector<1x96xf32>
    %9 = vector.broadcast %8 : vector<1x96xf32> to vector<64x96xf32>
    %10 = arith.addf %7, %9 : vector<64x96xf32>
    %c0_10 = arith.constant 0 : index
    %c0_11 = arith.constant 0 : index
    %11 = vector.load %arg2[%c0_10, %c0_11] : memref<32x96xf32, #tpu.memory_space<vmem>>, vector<32x96xf32>
    %c0_12 = arith.constant 0 : index
    %c0_13 = arith.constant 0 : index
    %12 = vector.load %arg4[%c0_12, %c0_13] : memref<1x96xf32, #tpu.memory_space<vmem>>, vector<1x96xf32>
    %cst_14 = arith.constant 0.000000e+00 : f32
    %13 = vector.broadcast %cst_14 : f32 to vector<8x32xf32>
    %cst_15 = arith.constant dense<0.000000e+00> : vector<8x96xf32>
    %14 = tpu.matmul %13, %11, %cst_15 {dimension_numbers = #tpu.dot_dimension_numbers<[1], [0], [0], [1], [0, 0, 1, 1], [], []>} : vector<8x32xf32>, vector<32x96xf32>, vector<8x96xf32> -> vector<8x96xf32>
    %15 = vector.broadcast %12 : vector<1x96xf32> to vector<8x96xf32>
    %16 = arith.addf %14, %15 : vector<8x96xf32>
    %17 = vector.extract_strided_slice %5 {offsets = [0, 0], sizes = [8, 96], strides = [1, 1]} : vector<64x96xf32> to vector<8x96xf32>
    %18 = vector.extract_strided_slice %17 {offsets = [0, 0], sizes = [8, 32], strides = [1, 1]} : vector<8x96xf32> to vector<8x32xf32>
    %19 = vector.extract_strided_slice %16 {offsets = [0, 0], sizes = [8, 32], strides = [1, 1]} : vector<8x96xf32> to vector<8x32xf32>
    %20 = arith.addf %18, %19 : vector<8x32xf32>
    %21 = arith.negf %20 : vector<8x32xf32>
    %22 = math.exp %21 : vector<8x32xf32>
    %cst_16 = arith.constant 1.000000e+00 : f32
    %23 = vector.broadcast %cst_16 : f32 to vector<8x32xf32>
    %24 = arith.addf %23, %22 : vector<8x32xf32>
    %25 = arith.divf %23, %24 : vector<8x32xf32>
    %26 = vector.extract_strided_slice %17 {offsets = [0, 32], sizes = [8, 32], strides = [1, 1]} : vector<8x96xf32> to vector<8x32xf32>
    %27 = vector.extract_strided_slice %16 {offsets = [0, 32], sizes = [8, 32], strides = [1, 1]} : vector<8x96xf32> to vector<8x32xf32>
    %28 = arith.addf %26, %27 : vector<8x32xf32>
    %29 = arith.negf %28 : vector<8x32xf32>
    %30 = math.exp %29 : vector<8x32xf32>
    %cst_17 = arith.constant 1.000000e+00 : f32
    %31 = vector.broadcast %cst_17 : f32 to vector<8x32xf32>
    %32 = arith.addf %31, %30 : vector<8x32xf32>
    %33 = arith.divf %31, %32 : vector<8x32xf32>
    %34 = vector.extract_strided_slice %17 {offsets = [0, 64], sizes = [8, 32], strides = [1, 1]} : vector<8x96xf32> to vector<8x32xf32>
    %35 = vector.extract_strided_slice %16 {offsets = [0, 64], sizes = [8, 32], strides = [1, 1]} : vector<8x96xf32> to vector<8x32xf32>
    %36 = arith.mulf %25, %35 : vector<8x32xf32>
    %37 = arith.addf %34, %36 : vector<8x32xf32>
    %38 = math.tanh %37 : vector<8x32xf32>
    %cst_18 = arith.constant 1.000000e+00 : f32
    %39 = vector.broadcast %cst_18 : f32 to vector<8x32xf32>
    %40 = arith.subf %39, %33 : vector<8x32xf32>
    %41 = arith.mulf %40, %38 : vector<8x32xf32>
    %42 = arith.mulf %33, %13 : vector<8x32xf32>
    %43 = arith.addf %41, %42 : vector<8x32xf32>
    %cst_19 = arith.constant dense<0.000000e+00> : vector<8x96xf32>
    %44 = tpu.matmul %43, %11, %cst_19 {dimension_numbers = #tpu.dot_dimension_numbers<[1], [0], [0], [1], [0, 0, 1, 1], [], []>} : vector<8x32xf32>, vector<32x96xf32>, vector<8x96xf32> -> vector<8x96xf32>
    %45 = vector.broadcast %12 : vector<1x96xf32> to vector<8x96xf32>
    %46 = arith.addf %44, %45 : vector<8x96xf32>
    %47 = vector.extract_strided_slice %5 {offsets = [8, 0], sizes = [8, 96], strides = [1, 1]} : vector<64x96xf32> to vector<8x96xf32>
    %48 = vector.extract_strided_slice %47 {offsets = [0, 0], sizes = [8, 32], strides = [1, 1]} : vector<8x96xf32> to vector<8x32xf32>
    %49 = vector.extract_strided_slice %46 {offsets = [0, 0], sizes = [8, 32], strides = [1, 1]} : vector<8x96xf32> to vector<8x32xf32>
    %50 = arith.addf %48, %49 : vector<8x32xf32>
    %51 = arith.negf %50 : vector<8x32xf32>
    %52 = math.exp %51 : vector<8x32xf32>
    %cst_20 = arith.constant 1.000000e+00 : f32
    %53 = vector.broadcast %cst_20 : f32 to vector<8x32xf32>
    %54 = arith.addf %53, %52 : vector<8x32xf32>
    %55 = arith.divf %53, %54 : vector<8x32xf32>
    %56 = vector.extract_strided_slice %47 {offsets = [0, 32], sizes = [8, 32], strides = [1, 1]} : vector<8x96xf32> to vector<8x32xf32>
    %57 = vector.extract_strided_slice %46 {offsets = [0, 32], sizes = [8, 32], strides = [1, 1]} : vector<8x96xf32> to vector<8x32xf32>
    %58 = arith.addf %56, %57 : vector<8x32xf32>
    %59 = arith.negf %58 : vector<8x32xf32>
    %60 = math.exp %59 : vector<8x32xf32>
    %cst_21 = arith.constant 1.000000e+00 : f32
    %61 = vector.broadcast %cst_21 : f32 to vector<8x32xf32>
    %62 = arith.addf %61, %60 : vector<8x32xf32>
    %63 = arith.divf %61, %62 : vector<8x32xf32>
    %64 = vector.extract_strided_slice %47 {offsets = [0, 64], sizes = [8, 32], strides = [1, 1]} : vector<8x96xf32> to vector<8x32xf32>
    %65 = vector.extract_strided_slice %46 {offsets = [0, 64], sizes = [8, 32], strides = [1, 1]} : vector<8x96xf32> to vector<8x32xf32>
    %66 = arith.mulf %55, %65 : vector<8x32xf32>
    %67 = arith.addf %64, %66 : vector<8x32xf32>
    %68 = math.tanh %67 : vector<8x32xf32>
    %cst_22 = arith.constant 1.000000e+00 : f32
    %69 = vector.broadcast %cst_22 : f32 to vector<8x32xf32>
    %70 = arith.subf %69, %63 : vector<8x32xf32>
    %71 = arith.mulf %70, %68 : vector<8x32xf32>
    %72 = arith.mulf %63, %43 : vector<8x32xf32>
    %73 = arith.addf %71, %72 : vector<8x32xf32>
    %cst_23 = arith.constant dense<0.000000e+00> : vector<8x96xf32>
    %74 = tpu.matmul %73, %11, %cst_23 {dimension_numbers = #tpu.dot_dimension_numbers<[1], [0], [0], [1], [0, 0, 1, 1], [], []>} : vector<8x32xf32>, vector<32x96xf32>, vector<8x96xf32> -> vector<8x96xf32>
    %75 = vector.broadcast %12 : vector<1x96xf32> to vector<8x96xf32>
    %76 = arith.addf %74, %75 : vector<8x96xf32>
    %77 = vector.extract_strided_slice %5 {offsets = [16, 0], sizes = [8, 96], strides = [1, 1]} : vector<64x96xf32> to vector<8x96xf32>
    %78 = vector.extract_strided_slice %77 {offsets = [0, 0], sizes = [8, 32], strides = [1, 1]} : vector<8x96xf32> to vector<8x32xf32>
    %79 = vector.extract_strided_slice %76 {offsets = [0, 0], sizes = [8, 32], strides = [1, 1]} : vector<8x96xf32> to vector<8x32xf32>
    %80 = arith.addf %78, %79 : vector<8x32xf32>
    %81 = arith.negf %80 : vector<8x32xf32>
    %82 = math.exp %81 : vector<8x32xf32>
    %cst_24 = arith.constant 1.000000e+00 : f32
    %83 = vector.broadcast %cst_24 : f32 to vector<8x32xf32>
    %84 = arith.addf %83, %82 : vector<8x32xf32>
    %85 = arith.divf %83, %84 : vector<8x32xf32>
    %86 = vector.extract_strided_slice %77 {offsets = [0, 32], sizes = [8, 32], strides = [1, 1]} : vector<8x96xf32> to vector<8x32xf32>
    %87 = vector.extract_strided_slice %76 {offsets = [0, 32], sizes = [8, 32], strides = [1, 1]} : vector<8x96xf32> to vector<8x32xf32>
    %88 = arith.addf %86, %87 : vector<8x32xf32>
    %89 = arith.negf %88 : vector<8x32xf32>
    %90 = math.exp %89 : vector<8x32xf32>
    %cst_25 = arith.constant 1.000000e+00 : f32
    %91 = vector.broadcast %cst_25 : f32 to vector<8x32xf32>
    %92 = arith.addf %91, %90 : vector<8x32xf32>
    %93 = arith.divf %91, %92 : vector<8x32xf32>
    %94 = vector.extract_strided_slice %77 {offsets = [0, 64], sizes = [8, 32], strides = [1, 1]} : vector<8x96xf32> to vector<8x32xf32>
    %95 = vector.extract_strided_slice %76 {offsets = [0, 64], sizes = [8, 32], strides = [1, 1]} : vector<8x96xf32> to vector<8x32xf32>
    %96 = arith.mulf %85, %95 : vector<8x32xf32>
    %97 = arith.addf %94, %96 : vector<8x32xf32>
    %98 = math.tanh %97 : vector<8x32xf32>
    %cst_26 = arith.constant 1.000000e+00 : f32
    %99 = vector.broadcast %cst_26 : f32 to vector<8x32xf32>
    %100 = arith.subf %99, %93 : vector<8x32xf32>
    %101 = arith.mulf %100, %98 : vector<8x32xf32>
    %102 = arith.mulf %93, %73 : vector<8x32xf32>
    %103 = arith.addf %101, %102 : vector<8x32xf32>
    %cst_27 = arith.constant dense<0.000000e+00> : vector<8x96xf32>
    %104 = tpu.matmul %103, %11, %cst_27 {dimension_numbers = #tpu.dot_dimension_numbers<[1], [0], [0], [1], [0, 0, 1, 1], [], []>} : vector<8x32xf32>, vector<32x96xf32>, vector<8x96xf32> -> vector<8x96xf32>
    %105 = vector.broadcast %12 : vector<1x96xf32> to vector<8x96xf32>
    %106 = arith.addf %104, %105 : vector<8x96xf32>
    %107 = vector.extract_strided_slice %5 {offsets = [24, 0], sizes = [8, 96], strides = [1, 1]} : vector<64x96xf32> to vector<8x96xf32>
    %108 = vector.extract_strided_slice %107 {offsets = [0, 0], sizes = [8, 32], strides = [1, 1]} : vector<8x96xf32> to vector<8x32xf32>
    %109 = vector.extract_strided_slice %106 {offsets = [0, 0], sizes = [8, 32], strides = [1, 1]} : vector<8x96xf32> to vector<8x32xf32>
    %110 = arith.addf %108, %109 : vector<8x32xf32>
    %111 = arith.negf %110 : vector<8x32xf32>
    %112 = math.exp %111 : vector<8x32xf32>
    %cst_28 = arith.constant 1.000000e+00 : f32
    %113 = vector.broadcast %cst_28 : f32 to vector<8x32xf32>
    %114 = arith.addf %113, %112 : vector<8x32xf32>
    %115 = arith.divf %113, %114 : vector<8x32xf32>
    %116 = vector.extract_strided_slice %107 {offsets = [0, 32], sizes = [8, 32], strides = [1, 1]} : vector<8x96xf32> to vector<8x32xf32>
    %117 = vector.extract_strided_slice %106 {offsets = [0, 32], sizes = [8, 32], strides = [1, 1]} : vector<8x96xf32> to vector<8x32xf32>
    %118 = arith.addf %116, %117 : vector<8x32xf32>
    %119 = arith.negf %118 : vector<8x32xf32>
    %120 = math.exp %119 : vector<8x32xf32>
    %cst_29 = arith.constant 1.000000e+00 : f32
    %121 = vector.broadcast %cst_29 : f32 to vector<8x32xf32>
    %122 = arith.addf %121, %120 : vector<8x32xf32>
    %123 = arith.divf %121, %122 : vector<8x32xf32>
    %124 = vector.extract_strided_slice %107 {offsets = [0, 64], sizes = [8, 32], strides = [1, 1]} : vector<8x96xf32> to vector<8x32xf32>
    %125 = vector.extract_strided_slice %106 {offsets = [0, 64], sizes = [8, 32], strides = [1, 1]} : vector<8x96xf32> to vector<8x32xf32>
    %126 = arith.mulf %115, %125 : vector<8x32xf32>
    %127 = arith.addf %124, %126 : vector<8x32xf32>
    %128 = math.tanh %127 : vector<8x32xf32>
    %cst_30 = arith.constant 1.000000e+00 : f32
    %129 = vector.broadcast %cst_30 : f32 to vector<8x32xf32>
    %130 = arith.subf %129, %123 : vector<8x32xf32>
    %131 = arith.mulf %130, %128 : vector<8x32xf32>
    %132 = arith.mulf %123, %103 : vector<8x32xf32>
    %133 = arith.addf %131, %132 : vector<8x32xf32>
    %cst_31 = arith.constant dense<0.000000e+00> : vector<8x96xf32>
    %134 = tpu.matmul %133, %11, %cst_31 {dimension_numbers = #tpu.dot_dimension_numbers<[1], [0], [0], [1], [0, 0, 1, 1], [], []>} : vector<8x32xf32>, vector<32x96xf32>, vector<8x96xf32> -> vector<8x96xf32>
    %135 = vector.broadcast %12 : vector<1x96xf32> to vector<8x96xf32>
    %136 = arith.addf %134, %135 : vector<8x96xf32>
    %137 = vector.extract_strided_slice %5 {offsets = [32, 0], sizes = [8, 96], strides = [1, 1]} : vector<64x96xf32> to vector<8x96xf32>
    %138 = vector.extract_strided_slice %137 {offsets = [0, 0], sizes = [8, 32], strides = [1, 1]} : vector<8x96xf32> to vector<8x32xf32>
    %139 = vector.extract_strided_slice %136 {offsets = [0, 0], sizes = [8, 32], strides = [1, 1]} : vector<8x96xf32> to vector<8x32xf32>
    %140 = arith.addf %138, %139 : vector<8x32xf32>
    %141 = arith.negf %140 : vector<8x32xf32>
    %142 = math.exp %141 : vector<8x32xf32>
    %cst_32 = arith.constant 1.000000e+00 : f32
    %143 = vector.broadcast %cst_32 : f32 to vector<8x32xf32>
    %144 = arith.addf %143, %142 : vector<8x32xf32>
    %145 = arith.divf %143, %144 : vector<8x32xf32>
    %146 = vector.extract_strided_slice %137 {offsets = [0, 32], sizes = [8, 32], strides = [1, 1]} : vector<8x96xf32> to vector<8x32xf32>
    %147 = vector.extract_strided_slice %136 {offsets = [0, 32], sizes = [8, 32], strides = [1, 1]} : vector<8x96xf32> to vector<8x32xf32>
    %148 = arith.addf %146, %147 : vector<8x32xf32>
    %149 = arith.negf %148 : vector<8x32xf32>
    %150 = math.exp %149 : vector<8x32xf32>
    %cst_33 = arith.constant 1.000000e+00 : f32
    %151 = vector.broadcast %cst_33 : f32 to vector<8x32xf32>
    %152 = arith.addf %151, %150 : vector<8x32xf32>
    %153 = arith.divf %151, %152 : vector<8x32xf32>
    %154 = vector.extract_strided_slice %137 {offsets = [0, 64], sizes = [8, 32], strides = [1, 1]} : vector<8x96xf32> to vector<8x32xf32>
    %155 = vector.extract_strided_slice %136 {offsets = [0, 64], sizes = [8, 32], strides = [1, 1]} : vector<8x96xf32> to vector<8x32xf32>
    %156 = arith.mulf %145, %155 : vector<8x32xf32>
    %157 = arith.addf %154, %156 : vector<8x32xf32>
    %158 = math.tanh %157 : vector<8x32xf32>
    %cst_34 = arith.constant 1.000000e+00 : f32
    %159 = vector.broadcast %cst_34 : f32 to vector<8x32xf32>
    %160 = arith.subf %159, %153 : vector<8x32xf32>
    %161 = arith.mulf %160, %158 : vector<8x32xf32>
    %162 = arith.mulf %153, %133 : vector<8x32xf32>
    %163 = arith.addf %161, %162 : vector<8x32xf32>
    %cst_35 = arith.constant dense<0.000000e+00> : vector<8x96xf32>
    %164 = tpu.matmul %163, %11, %cst_35 {dimension_numbers = #tpu.dot_dimension_numbers<[1], [0], [0], [1], [0, 0, 1, 1], [], []>} : vector<8x32xf32>, vector<32x96xf32>, vector<8x96xf32> -> vector<8x96xf32>
    %165 = vector.broadcast %12 : vector<1x96xf32> to vector<8x96xf32>
    %166 = arith.addf %164, %165 : vector<8x96xf32>
    %167 = vector.extract_strided_slice %5 {offsets = [40, 0], sizes = [8, 96], strides = [1, 1]} : vector<64x96xf32> to vector<8x96xf32>
    %168 = vector.extract_strided_slice %167 {offsets = [0, 0], sizes = [8, 32], strides = [1, 1]} : vector<8x96xf32> to vector<8x32xf32>
    %169 = vector.extract_strided_slice %166 {offsets = [0, 0], sizes = [8, 32], strides = [1, 1]} : vector<8x96xf32> to vector<8x32xf32>
    %170 = arith.addf %168, %169 : vector<8x32xf32>
    %171 = arith.negf %170 : vector<8x32xf32>
    %172 = math.exp %171 : vector<8x32xf32>
    %cst_36 = arith.constant 1.000000e+00 : f32
    %173 = vector.broadcast %cst_36 : f32 to vector<8x32xf32>
    %174 = arith.addf %173, %172 : vector<8x32xf32>
    %175 = arith.divf %173, %174 : vector<8x32xf32>
    %176 = vector.extract_strided_slice %167 {offsets = [0, 32], sizes = [8, 32], strides = [1, 1]} : vector<8x96xf32> to vector<8x32xf32>
    %177 = vector.extract_strided_slice %166 {offsets = [0, 32], sizes = [8, 32], strides = [1, 1]} : vector<8x96xf32> to vector<8x32xf32>
    %178 = arith.addf %176, %177 : vector<8x32xf32>
    %179 = arith.negf %178 : vector<8x32xf32>
    %180 = math.exp %179 : vector<8x32xf32>
    %cst_37 = arith.constant 1.000000e+00 : f32
    %181 = vector.broadcast %cst_37 : f32 to vector<8x32xf32>
    %182 = arith.addf %181, %180 : vector<8x32xf32>
    %183 = arith.divf %181, %182 : vector<8x32xf32>
    %184 = vector.extract_strided_slice %167 {offsets = [0, 64], sizes = [8, 32], strides = [1, 1]} : vector<8x96xf32> to vector<8x32xf32>
    %185 = vector.extract_strided_slice %166 {offsets = [0, 64], sizes = [8, 32], strides = [1, 1]} : vector<8x96xf32> to vector<8x32xf32>
    %186 = arith.mulf %175, %185 : vector<8x32xf32>
    %187 = arith.addf %184, %186 : vector<8x32xf32>
    %188 = math.tanh %187 : vector<8x32xf32>
    %cst_38 = arith.constant 1.000000e+00 : f32
    %189 = vector.broadcast %cst_38 : f32 to vector<8x32xf32>
    %190 = arith.subf %189, %183 : vector<8x32xf32>
    %191 = arith.mulf %190, %188 : vector<8x32xf32>
    %192 = arith.mulf %183, %163 : vector<8x32xf32>
    %193 = arith.addf %191, %192 : vector<8x32xf32>
    %cst_39 = arith.constant dense<0.000000e+00> : vector<8x96xf32>
    %194 = tpu.matmul %193, %11, %cst_39 {dimension_numbers = #tpu.dot_dimension_numbers<[1], [0], [0], [1], [0, 0, 1, 1], [], []>} : vector<8x32xf32>, vector<32x96xf32>, vector<8x96xf32> -> vector<8x96xf32>
    %195 = vector.broadcast %12 : vector<1x96xf32> to vector<8x96xf32>
    %196 = arith.addf %194, %195 : vector<8x96xf32>
    %197 = vector.extract_strided_slice %5 {offsets = [48, 0], sizes = [8, 96], strides = [1, 1]} : vector<64x96xf32> to vector<8x96xf32>
    %198 = vector.extract_strided_slice %197 {offsets = [0, 0], sizes = [8, 32], strides = [1, 1]} : vector<8x96xf32> to vector<8x32xf32>
    %199 = vector.extract_strided_slice %196 {offsets = [0, 0], sizes = [8, 32], strides = [1, 1]} : vector<8x96xf32> to vector<8x32xf32>
    %200 = arith.addf %198, %199 : vector<8x32xf32>
    %201 = arith.negf %200 : vector<8x32xf32>
    %202 = math.exp %201 : vector<8x32xf32>
    %cst_40 = arith.constant 1.000000e+00 : f32
    %203 = vector.broadcast %cst_40 : f32 to vector<8x32xf32>
    %204 = arith.addf %203, %202 : vector<8x32xf32>
    %205 = arith.divf %203, %204 : vector<8x32xf32>
    %206 = vector.extract_strided_slice %197 {offsets = [0, 32], sizes = [8, 32], strides = [1, 1]} : vector<8x96xf32> to vector<8x32xf32>
    %207 = vector.extract_strided_slice %196 {offsets = [0, 32], sizes = [8, 32], strides = [1, 1]} : vector<8x96xf32> to vector<8x32xf32>
    %208 = arith.addf %206, %207 : vector<8x32xf32>
    %209 = arith.negf %208 : vector<8x32xf32>
    %210 = math.exp %209 : vector<8x32xf32>
    %cst_41 = arith.constant 1.000000e+00 : f32
    %211 = vector.broadcast %cst_41 : f32 to vector<8x32xf32>
    %212 = arith.addf %211, %210 : vector<8x32xf32>
    %213 = arith.divf %211, %212 : vector<8x32xf32>
    %214 = vector.extract_strided_slice %197 {offsets = [0, 64], sizes = [8, 32], strides = [1, 1]} : vector<8x96xf32> to vector<8x32xf32>
    %215 = vector.extract_strided_slice %196 {offsets = [0, 64], sizes = [8, 32], strides = [1, 1]} : vector<8x96xf32> to vector<8x32xf32>
    %216 = arith.mulf %205, %215 : vector<8x32xf32>
    %217 = arith.addf %214, %216 : vector<8x32xf32>
    %218 = math.tanh %217 : vector<8x32xf32>
    %cst_42 = arith.constant 1.000000e+00 : f32
    %219 = vector.broadcast %cst_42 : f32 to vector<8x32xf32>
    %220 = arith.subf %219, %213 : vector<8x32xf32>
    %221 = arith.mulf %220, %218 : vector<8x32xf32>
    %222 = arith.mulf %213, %193 : vector<8x32xf32>
    %223 = arith.addf %221, %222 : vector<8x32xf32>
    %cst_43 = arith.constant dense<0.000000e+00> : vector<8x96xf32>
    %224 = tpu.matmul %223, %11, %cst_43 {dimension_numbers = #tpu.dot_dimension_numbers<[1], [0], [0], [1], [0, 0, 1, 1], [], []>} : vector<8x32xf32>, vector<32x96xf32>, vector<8x96xf32> -> vector<8x96xf32>
    %225 = vector.broadcast %12 : vector<1x96xf32> to vector<8x96xf32>
    %226 = arith.addf %224, %225 : vector<8x96xf32>
    %227 = vector.extract_strided_slice %5 {offsets = [56, 0], sizes = [8, 96], strides = [1, 1]} : vector<64x96xf32> to vector<8x96xf32>
    %228 = vector.extract_strided_slice %227 {offsets = [0, 0], sizes = [8, 32], strides = [1, 1]} : vector<8x96xf32> to vector<8x32xf32>
    %229 = vector.extract_strided_slice %226 {offsets = [0, 0], sizes = [8, 32], strides = [1, 1]} : vector<8x96xf32> to vector<8x32xf32>
    %230 = arith.addf %228, %229 : vector<8x32xf32>
    %231 = arith.negf %230 : vector<8x32xf32>
    %232 = math.exp %231 : vector<8x32xf32>
    %cst_44 = arith.constant 1.000000e+00 : f32
    %233 = vector.broadcast %cst_44 : f32 to vector<8x32xf32>
    %234 = arith.addf %233, %232 : vector<8x32xf32>
    %235 = arith.divf %233, %234 : vector<8x32xf32>
    %236 = vector.extract_strided_slice %227 {offsets = [0, 32], sizes = [8, 32], strides = [1, 1]} : vector<8x96xf32> to vector<8x32xf32>
    %237 = vector.extract_strided_slice %226 {offsets = [0, 32], sizes = [8, 32], strides = [1, 1]} : vector<8x96xf32> to vector<8x32xf32>
    %238 = arith.addf %236, %237 : vector<8x32xf32>
    %239 = arith.negf %238 : vector<8x32xf32>
    %240 = math.exp %239 : vector<8x32xf32>
    %cst_45 = arith.constant 1.000000e+00 : f32
    %241 = vector.broadcast %cst_45 : f32 to vector<8x32xf32>
    %242 = arith.addf %241, %240 : vector<8x32xf32>
    %243 = arith.divf %241, %242 : vector<8x32xf32>
    %244 = vector.extract_strided_slice %227 {offsets = [0, 64], sizes = [8, 32], strides = [1, 1]} : vector<8x96xf32> to vector<8x32xf32>
    %245 = vector.extract_strided_slice %226 {offsets = [0, 64], sizes = [8, 32], strides = [1, 1]} : vector<8x96xf32> to vector<8x32xf32>
    %246 = arith.mulf %235, %245 : vector<8x32xf32>
    %247 = arith.addf %244, %246 : vector<8x32xf32>
    %248 = math.tanh %247 : vector<8x32xf32>
    %cst_46 = arith.constant 1.000000e+00 : f32
    %249 = vector.broadcast %cst_46 : f32 to vector<8x32xf32>
    %250 = arith.subf %249, %243 : vector<8x32xf32>
    %251 = arith.mulf %250, %248 : vector<8x32xf32>
    %252 = arith.mulf %243, %223 : vector<8x32xf32>
    %253 = arith.addf %251, %252 : vector<8x32xf32>
    %c0_47 = arith.constant 0 : index
    %c0_48 = arith.constant 0 : index
    %254 = vector.load %arg6[%c0_47, %c0_48] : memref<32x96xf32, #tpu.memory_space<vmem>>, vector<32x96xf32>
    %c0_49 = arith.constant 0 : index
    %c0_50 = arith.constant 0 : index
    %255 = vector.load %arg8[%c0_49, %c0_50] : memref<1x96xf32, #tpu.memory_space<vmem>>, vector<1x96xf32>
    %cst_51 = arith.constant 0.000000e+00 : f32
    %256 = vector.broadcast %cst_51 : f32 to vector<8x32xf32>
    %cst_52 = arith.constant dense<0.000000e+00> : vector<8x96xf32>
    %257 = tpu.matmul %256, %254, %cst_52 {dimension_numbers = #tpu.dot_dimension_numbers<[1], [0], [0], [1], [0, 0, 1, 1], [], []>} : vector<8x32xf32>, vector<32x96xf32>, vector<8x96xf32> -> vector<8x96xf32>
    %258 = vector.broadcast %255 : vector<1x96xf32> to vector<8x96xf32>
    %259 = arith.addf %257, %258 : vector<8x96xf32>
    %260 = vector.extract_strided_slice %10 {offsets = [56, 0], sizes = [8, 96], strides = [1, 1]} : vector<64x96xf32> to vector<8x96xf32>
    %261 = vector.extract_strided_slice %260 {offsets = [0, 0], sizes = [8, 32], strides = [1, 1]} : vector<8x96xf32> to vector<8x32xf32>
    %262 = vector.extract_strided_slice %259 {offsets = [0, 0], sizes = [8, 32], strides = [1, 1]} : vector<8x96xf32> to vector<8x32xf32>
    %263 = arith.addf %261, %262 : vector<8x32xf32>
    %264 = arith.negf %263 : vector<8x32xf32>
    %265 = math.exp %264 : vector<8x32xf32>
    %cst_53 = arith.constant 1.000000e+00 : f32
    %266 = vector.broadcast %cst_53 : f32 to vector<8x32xf32>
    %267 = arith.addf %266, %265 : vector<8x32xf32>
    %268 = arith.divf %266, %267 : vector<8x32xf32>
    %269 = vector.extract_strided_slice %260 {offsets = [0, 32], sizes = [8, 32], strides = [1, 1]} : vector<8x96xf32> to vector<8x32xf32>
    %270 = vector.extract_strided_slice %259 {offsets = [0, 32], sizes = [8, 32], strides = [1, 1]} : vector<8x96xf32> to vector<8x32xf32>
    %271 = arith.addf %269, %270 : vector<8x32xf32>
    %272 = arith.negf %271 : vector<8x32xf32>
    %273 = math.exp %272 : vector<8x32xf32>
    %cst_54 = arith.constant 1.000000e+00 : f32
    %274 = vector.broadcast %cst_54 : f32 to vector<8x32xf32>
    %275 = arith.addf %274, %273 : vector<8x32xf32>
    %276 = arith.divf %274, %275 : vector<8x32xf32>
    %277 = vector.extract_strided_slice %260 {offsets = [0, 64], sizes = [8, 32], strides = [1, 1]} : vector<8x96xf32> to vector<8x32xf32>
    %278 = vector.extract_strided_slice %259 {offsets = [0, 64], sizes = [8, 32], strides = [1, 1]} : vector<8x96xf32> to vector<8x32xf32>
    %279 = arith.mulf %268, %278 : vector<8x32xf32>
    %280 = arith.addf %277, %279 : vector<8x32xf32>
    %281 = math.tanh %280 : vector<8x32xf32>
    %cst_55 = arith.constant 1.000000e+00 : f32
    %282 = vector.broadcast %cst_55 : f32 to vector<8x32xf32>
    %283 = arith.subf %282, %276 : vector<8x32xf32>
    %284 = arith.mulf %283, %281 : vector<8x32xf32>
    %285 = arith.mulf %276, %256 : vector<8x32xf32>
    %286 = arith.addf %284, %285 : vector<8x32xf32>
    %cst_56 = arith.constant dense<0.000000e+00> : vector<8x96xf32>
    %287 = tpu.matmul %286, %254, %cst_56 {dimension_numbers = #tpu.dot_dimension_numbers<[1], [0], [0], [1], [0, 0, 1, 1], [], []>} : vector<8x32xf32>, vector<32x96xf32>, vector<8x96xf32> -> vector<8x96xf32>
    %288 = vector.broadcast %255 : vector<1x96xf32> to vector<8x96xf32>
    %289 = arith.addf %287, %288 : vector<8x96xf32>
    %290 = vector.extract_strided_slice %10 {offsets = [48, 0], sizes = [8, 96], strides = [1, 1]} : vector<64x96xf32> to vector<8x96xf32>
    %291 = vector.extract_strided_slice %290 {offsets = [0, 0], sizes = [8, 32], strides = [1, 1]} : vector<8x96xf32> to vector<8x32xf32>
    %292 = vector.extract_strided_slice %289 {offsets = [0, 0], sizes = [8, 32], strides = [1, 1]} : vector<8x96xf32> to vector<8x32xf32>
    %293 = arith.addf %291, %292 : vector<8x32xf32>
    %294 = arith.negf %293 : vector<8x32xf32>
    %295 = math.exp %294 : vector<8x32xf32>
    %cst_57 = arith.constant 1.000000e+00 : f32
    %296 = vector.broadcast %cst_57 : f32 to vector<8x32xf32>
    %297 = arith.addf %296, %295 : vector<8x32xf32>
    %298 = arith.divf %296, %297 : vector<8x32xf32>
    %299 = vector.extract_strided_slice %290 {offsets = [0, 32], sizes = [8, 32], strides = [1, 1]} : vector<8x96xf32> to vector<8x32xf32>
    %300 = vector.extract_strided_slice %289 {offsets = [0, 32], sizes = [8, 32], strides = [1, 1]} : vector<8x96xf32> to vector<8x32xf32>
    %301 = arith.addf %299, %300 : vector<8x32xf32>
    %302 = arith.negf %301 : vector<8x32xf32>
    %303 = math.exp %302 : vector<8x32xf32>
    %cst_58 = arith.constant 1.000000e+00 : f32
    %304 = vector.broadcast %cst_58 : f32 to vector<8x32xf32>
    %305 = arith.addf %304, %303 : vector<8x32xf32>
    %306 = arith.divf %304, %305 : vector<8x32xf32>
    %307 = vector.extract_strided_slice %290 {offsets = [0, 64], sizes = [8, 32], strides = [1, 1]} : vector<8x96xf32> to vector<8x32xf32>
    %308 = vector.extract_strided_slice %289 {offsets = [0, 64], sizes = [8, 32], strides = [1, 1]} : vector<8x96xf32> to vector<8x32xf32>
    %309 = arith.mulf %298, %308 : vector<8x32xf32>
    %310 = arith.addf %307, %309 : vector<8x32xf32>
    %311 = math.tanh %310 : vector<8x32xf32>
    %cst_59 = arith.constant 1.000000e+00 : f32
    %312 = vector.broadcast %cst_59 : f32 to vector<8x32xf32>
    %313 = arith.subf %312, %306 : vector<8x32xf32>
    %314 = arith.mulf %313, %311 : vector<8x32xf32>
    %315 = arith.mulf %306, %286 : vector<8x32xf32>
    %316 = arith.addf %314, %315 : vector<8x32xf32>
    %cst_60 = arith.constant dense<0.000000e+00> : vector<8x96xf32>
    %317 = tpu.matmul %316, %254, %cst_60 {dimension_numbers = #tpu.dot_dimension_numbers<[1], [0], [0], [1], [0, 0, 1, 1], [], []>} : vector<8x32xf32>, vector<32x96xf32>, vector<8x96xf32> -> vector<8x96xf32>
    %318 = vector.broadcast %255 : vector<1x96xf32> to vector<8x96xf32>
    %319 = arith.addf %317, %318 : vector<8x96xf32>
    %320 = vector.extract_strided_slice %10 {offsets = [40, 0], sizes = [8, 96], strides = [1, 1]} : vector<64x96xf32> to vector<8x96xf32>
    %321 = vector.extract_strided_slice %320 {offsets = [0, 0], sizes = [8, 32], strides = [1, 1]} : vector<8x96xf32> to vector<8x32xf32>
    %322 = vector.extract_strided_slice %319 {offsets = [0, 0], sizes = [8, 32], strides = [1, 1]} : vector<8x96xf32> to vector<8x32xf32>
    %323 = arith.addf %321, %322 : vector<8x32xf32>
    %324 = arith.negf %323 : vector<8x32xf32>
    %325 = math.exp %324 : vector<8x32xf32>
    %cst_61 = arith.constant 1.000000e+00 : f32
    %326 = vector.broadcast %cst_61 : f32 to vector<8x32xf32>
    %327 = arith.addf %326, %325 : vector<8x32xf32>
    %328 = arith.divf %326, %327 : vector<8x32xf32>
    %329 = vector.extract_strided_slice %320 {offsets = [0, 32], sizes = [8, 32], strides = [1, 1]} : vector<8x96xf32> to vector<8x32xf32>
    %330 = vector.extract_strided_slice %319 {offsets = [0, 32], sizes = [8, 32], strides = [1, 1]} : vector<8x96xf32> to vector<8x32xf32>
    %331 = arith.addf %329, %330 : vector<8x32xf32>
    %332 = arith.negf %331 : vector<8x32xf32>
    %333 = math.exp %332 : vector<8x32xf32>
    %cst_62 = arith.constant 1.000000e+00 : f32
    %334 = vector.broadcast %cst_62 : f32 to vector<8x32xf32>
    %335 = arith.addf %334, %333 : vector<8x32xf32>
    %336 = arith.divf %334, %335 : vector<8x32xf32>
    %337 = vector.extract_strided_slice %320 {offsets = [0, 64], sizes = [8, 32], strides = [1, 1]} : vector<8x96xf32> to vector<8x32xf32>
    %338 = vector.extract_strided_slice %319 {offsets = [0, 64], sizes = [8, 32], strides = [1, 1]} : vector<8x96xf32> to vector<8x32xf32>
    %339 = arith.mulf %328, %338 : vector<8x32xf32>
    %340 = arith.addf %337, %339 : vector<8x32xf32>
    %341 = math.tanh %340 : vector<8x32xf32>
    %cst_63 = arith.constant 1.000000e+00 : f32
    %342 = vector.broadcast %cst_63 : f32 to vector<8x32xf32>
    %343 = arith.subf %342, %336 : vector<8x32xf32>
    %344 = arith.mulf %343, %341 : vector<8x32xf32>
    %345 = arith.mulf %336, %316 : vector<8x32xf32>
    %346 = arith.addf %344, %345 : vector<8x32xf32>
    %cst_64 = arith.constant dense<0.000000e+00> : vector<8x96xf32>
    %347 = tpu.matmul %346, %254, %cst_64 {dimension_numbers = #tpu.dot_dimension_numbers<[1], [0], [0], [1], [0, 0, 1, 1], [], []>} : vector<8x32xf32>, vector<32x96xf32>, vector<8x96xf32> -> vector<8x96xf32>
    %348 = vector.broadcast %255 : vector<1x96xf32> to vector<8x96xf32>
    %349 = arith.addf %347, %348 : vector<8x96xf32>
    %350 = vector.extract_strided_slice %10 {offsets = [32, 0], sizes = [8, 96], strides = [1, 1]} : vector<64x96xf32> to vector<8x96xf32>
    %351 = vector.extract_strided_slice %350 {offsets = [0, 0], sizes = [8, 32], strides = [1, 1]} : vector<8x96xf32> to vector<8x32xf32>
    %352 = vector.extract_strided_slice %349 {offsets = [0, 0], sizes = [8, 32], strides = [1, 1]} : vector<8x96xf32> to vector<8x32xf32>
    %353 = arith.addf %351, %352 : vector<8x32xf32>
    %354 = arith.negf %353 : vector<8x32xf32>
    %355 = math.exp %354 : vector<8x32xf32>
    %cst_65 = arith.constant 1.000000e+00 : f32
    %356 = vector.broadcast %cst_65 : f32 to vector<8x32xf32>
    %357 = arith.addf %356, %355 : vector<8x32xf32>
    %358 = arith.divf %356, %357 : vector<8x32xf32>
    %359 = vector.extract_strided_slice %350 {offsets = [0, 32], sizes = [8, 32], strides = [1, 1]} : vector<8x96xf32> to vector<8x32xf32>
    %360 = vector.extract_strided_slice %349 {offsets = [0, 32], sizes = [8, 32], strides = [1, 1]} : vector<8x96xf32> to vector<8x32xf32>
    %361 = arith.addf %359, %360 : vector<8x32xf32>
    %362 = arith.negf %361 : vector<8x32xf32>
    %363 = math.exp %362 : vector<8x32xf32>
    %cst_66 = arith.constant 1.000000e+00 : f32
    %364 = vector.broadcast %cst_66 : f32 to vector<8x32xf32>
    %365 = arith.addf %364, %363 : vector<8x32xf32>
    %366 = arith.divf %364, %365 : vector<8x32xf32>
    %367 = vector.extract_strided_slice %350 {offsets = [0, 64], sizes = [8, 32], strides = [1, 1]} : vector<8x96xf32> to vector<8x32xf32>
    %368 = vector.extract_strided_slice %349 {offsets = [0, 64], sizes = [8, 32], strides = [1, 1]} : vector<8x96xf32> to vector<8x32xf32>
    %369 = arith.mulf %358, %368 : vector<8x32xf32>
    %370 = arith.addf %367, %369 : vector<8x32xf32>
    %371 = math.tanh %370 : vector<8x32xf32>
    %cst_67 = arith.constant 1.000000e+00 : f32
    %372 = vector.broadcast %cst_67 : f32 to vector<8x32xf32>
    %373 = arith.subf %372, %366 : vector<8x32xf32>
    %374 = arith.mulf %373, %371 : vector<8x32xf32>
    %375 = arith.mulf %366, %346 : vector<8x32xf32>
    %376 = arith.addf %374, %375 : vector<8x32xf32>
    %cst_68 = arith.constant dense<0.000000e+00> : vector<8x96xf32>
    %377 = tpu.matmul %376, %254, %cst_68 {dimension_numbers = #tpu.dot_dimension_numbers<[1], [0], [0], [1], [0, 0, 1, 1], [], []>} : vector<8x32xf32>, vector<32x96xf32>, vector<8x96xf32> -> vector<8x96xf32>
    %378 = vector.broadcast %255 : vector<1x96xf32> to vector<8x96xf32>
    %379 = arith.addf %377, %378 : vector<8x96xf32>
    %380 = vector.extract_strided_slice %10 {offsets = [24, 0], sizes = [8, 96], strides = [1, 1]} : vector<64x96xf32> to vector<8x96xf32>
    %381 = vector.extract_strided_slice %380 {offsets = [0, 0], sizes = [8, 32], strides = [1, 1]} : vector<8x96xf32> to vector<8x32xf32>
    %382 = vector.extract_strided_slice %379 {offsets = [0, 0], sizes = [8, 32], strides = [1, 1]} : vector<8x96xf32> to vector<8x32xf32>
    %383 = arith.addf %381, %382 : vector<8x32xf32>
    %384 = arith.negf %383 : vector<8x32xf32>
    %385 = math.exp %384 : vector<8x32xf32>
    %cst_69 = arith.constant 1.000000e+00 : f32
    %386 = vector.broadcast %cst_69 : f32 to vector<8x32xf32>
    %387 = arith.addf %386, %385 : vector<8x32xf32>
    %388 = arith.divf %386, %387 : vector<8x32xf32>
    %389 = vector.extract_strided_slice %380 {offsets = [0, 32], sizes = [8, 32], strides = [1, 1]} : vector<8x96xf32> to vector<8x32xf32>
    %390 = vector.extract_strided_slice %379 {offsets = [0, 32], sizes = [8, 32], strides = [1, 1]} : vector<8x96xf32> to vector<8x32xf32>
    %391 = arith.addf %389, %390 : vector<8x32xf32>
    %392 = arith.negf %391 : vector<8x32xf32>
    %393 = math.exp %392 : vector<8x32xf32>
    %cst_70 = arith.constant 1.000000e+00 : f32
    %394 = vector.broadcast %cst_70 : f32 to vector<8x32xf32>
    %395 = arith.addf %394, %393 : vector<8x32xf32>
    %396 = arith.divf %394, %395 : vector<8x32xf32>
    %397 = vector.extract_strided_slice %380 {offsets = [0, 64], sizes = [8, 32], strides = [1, 1]} : vector<8x96xf32> to vector<8x32xf32>
    %398 = vector.extract_strided_slice %379 {offsets = [0, 64], sizes = [8, 32], strides = [1, 1]} : vector<8x96xf32> to vector<8x32xf32>
    %399 = arith.mulf %388, %398 : vector<8x32xf32>
    %400 = arith.addf %397, %399 : vector<8x32xf32>
    %401 = math.tanh %400 : vector<8x32xf32>
    %cst_71 = arith.constant 1.000000e+00 : f32
    %402 = vector.broadcast %cst_71 : f32 to vector<8x32xf32>
    %403 = arith.subf %402, %396 : vector<8x32xf32>
    %404 = arith.mulf %403, %401 : vector<8x32xf32>
    %405 = arith.mulf %396, %376 : vector<8x32xf32>
    %406 = arith.addf %404, %405 : vector<8x32xf32>
    %cst_72 = arith.constant dense<0.000000e+00> : vector<8x96xf32>
    %407 = tpu.matmul %406, %254, %cst_72 {dimension_numbers = #tpu.dot_dimension_numbers<[1], [0], [0], [1], [0, 0, 1, 1], [], []>} : vector<8x32xf32>, vector<32x96xf32>, vector<8x96xf32> -> vector<8x96xf32>
    %408 = vector.broadcast %255 : vector<1x96xf32> to vector<8x96xf32>
    %409 = arith.addf %407, %408 : vector<8x96xf32>
    %410 = vector.extract_strided_slice %10 {offsets = [16, 0], sizes = [8, 96], strides = [1, 1]} : vector<64x96xf32> to vector<8x96xf32>
    %411 = vector.extract_strided_slice %410 {offsets = [0, 0], sizes = [8, 32], strides = [1, 1]} : vector<8x96xf32> to vector<8x32xf32>
    %412 = vector.extract_strided_slice %409 {offsets = [0, 0], sizes = [8, 32], strides = [1, 1]} : vector<8x96xf32> to vector<8x32xf32>
    %413 = arith.addf %411, %412 : vector<8x32xf32>
    %414 = arith.negf %413 : vector<8x32xf32>
    %415 = math.exp %414 : vector<8x32xf32>
    %cst_73 = arith.constant 1.000000e+00 : f32
    %416 = vector.broadcast %cst_73 : f32 to vector<8x32xf32>
    %417 = arith.addf %416, %415 : vector<8x32xf32>
    %418 = arith.divf %416, %417 : vector<8x32xf32>
    %419 = vector.extract_strided_slice %410 {offsets = [0, 32], sizes = [8, 32], strides = [1, 1]} : vector<8x96xf32> to vector<8x32xf32>
    %420 = vector.extract_strided_slice %409 {offsets = [0, 32], sizes = [8, 32], strides = [1, 1]} : vector<8x96xf32> to vector<8x32xf32>
    %421 = arith.addf %419, %420 : vector<8x32xf32>
    %422 = arith.negf %421 : vector<8x32xf32>
    %423 = math.exp %422 : vector<8x32xf32>
    %cst_74 = arith.constant 1.000000e+00 : f32
    %424 = vector.broadcast %cst_74 : f32 to vector<8x32xf32>
    %425 = arith.addf %424, %423 : vector<8x32xf32>
    %426 = arith.divf %424, %425 : vector<8x32xf32>
    %427 = vector.extract_strided_slice %410 {offsets = [0, 64], sizes = [8, 32], strides = [1, 1]} : vector<8x96xf32> to vector<8x32xf32>
    %428 = vector.extract_strided_slice %409 {offsets = [0, 64], sizes = [8, 32], strides = [1, 1]} : vector<8x96xf32> to vector<8x32xf32>
    %429 = arith.mulf %418, %428 : vector<8x32xf32>
    %430 = arith.addf %427, %429 : vector<8x32xf32>
    %431 = math.tanh %430 : vector<8x32xf32>
    %cst_75 = arith.constant 1.000000e+00 : f32
    %432 = vector.broadcast %cst_75 : f32 to vector<8x32xf32>
    %433 = arith.subf %432, %426 : vector<8x32xf32>
    %434 = arith.mulf %433, %431 : vector<8x32xf32>
    %435 = arith.mulf %426, %406 : vector<8x32xf32>
    %436 = arith.addf %434, %435 : vector<8x32xf32>
    %cst_76 = arith.constant dense<0.000000e+00> : vector<8x96xf32>
    %437 = tpu.matmul %436, %254, %cst_76 {dimension_numbers = #tpu.dot_dimension_numbers<[1], [0], [0], [1], [0, 0, 1, 1], [], []>} : vector<8x32xf32>, vector<32x96xf32>, vector<8x96xf32> -> vector<8x96xf32>
    %438 = vector.broadcast %255 : vector<1x96xf32> to vector<8x96xf32>
    %439 = arith.addf %437, %438 : vector<8x96xf32>
    %440 = vector.extract_strided_slice %10 {offsets = [8, 0], sizes = [8, 96], strides = [1, 1]} : vector<64x96xf32> to vector<8x96xf32>
    %441 = vector.extract_strided_slice %440 {offsets = [0, 0], sizes = [8, 32], strides = [1, 1]} : vector<8x96xf32> to vector<8x32xf32>
    %442 = vector.extract_strided_slice %439 {offsets = [0, 0], sizes = [8, 32], strides = [1, 1]} : vector<8x96xf32> to vector<8x32xf32>
    %443 = arith.addf %441, %442 : vector<8x32xf32>
    %444 = arith.negf %443 : vector<8x32xf32>
    %445 = math.exp %444 : vector<8x32xf32>
    %cst_77 = arith.constant 1.000000e+00 : f32
    %446 = vector.broadcast %cst_77 : f32 to vector<8x32xf32>
    %447 = arith.addf %446, %445 : vector<8x32xf32>
    %448 = arith.divf %446, %447 : vector<8x32xf32>
    %449 = vector.extract_strided_slice %440 {offsets = [0, 32], sizes = [8, 32], strides = [1, 1]} : vector<8x96xf32> to vector<8x32xf32>
    %450 = vector.extract_strided_slice %439 {offsets = [0, 32], sizes = [8, 32], strides = [1, 1]} : vector<8x96xf32> to vector<8x32xf32>
    %451 = arith.addf %449, %450 : vector<8x32xf32>
    %452 = arith.negf %451 : vector<8x32xf32>
    %453 = math.exp %452 : vector<8x32xf32>
    %cst_78 = arith.constant 1.000000e+00 : f32
    %454 = vector.broadcast %cst_78 : f32 to vector<8x32xf32>
    %455 = arith.addf %454, %453 : vector<8x32xf32>
    %456 = arith.divf %454, %455 : vector<8x32xf32>
    %457 = vector.extract_strided_slice %440 {offsets = [0, 64], sizes = [8, 32], strides = [1, 1]} : vector<8x96xf32> to vector<8x32xf32>
    %458 = vector.extract_strided_slice %439 {offsets = [0, 64], sizes = [8, 32], strides = [1, 1]} : vector<8x96xf32> to vector<8x32xf32>
    %459 = arith.mulf %448, %458 : vector<8x32xf32>
    %460 = arith.addf %457, %459 : vector<8x32xf32>
    %461 = math.tanh %460 : vector<8x32xf32>
    %cst_79 = arith.constant 1.000000e+00 : f32
    %462 = vector.broadcast %cst_79 : f32 to vector<8x32xf32>
    %463 = arith.subf %462, %456 : vector<8x32xf32>
    %464 = arith.mulf %463, %461 : vector<8x32xf32>
    %465 = arith.mulf %456, %436 : vector<8x32xf32>
    %466 = arith.addf %464, %465 : vector<8x32xf32>
    %cst_80 = arith.constant dense<0.000000e+00> : vector<8x96xf32>
    %467 = tpu.matmul %466, %254, %cst_80 {dimension_numbers = #tpu.dot_dimension_numbers<[1], [0], [0], [1], [0, 0, 1, 1], [], []>} : vector<8x32xf32>, vector<32x96xf32>, vector<8x96xf32> -> vector<8x96xf32>
    %468 = vector.broadcast %255 : vector<1x96xf32> to vector<8x96xf32>
    %469 = arith.addf %467, %468 : vector<8x96xf32>
    %470 = vector.extract_strided_slice %10 {offsets = [0, 0], sizes = [8, 96], strides = [1, 1]} : vector<64x96xf32> to vector<8x96xf32>
    %471 = vector.extract_strided_slice %470 {offsets = [0, 0], sizes = [8, 32], strides = [1, 1]} : vector<8x96xf32> to vector<8x32xf32>
    %472 = vector.extract_strided_slice %469 {offsets = [0, 0], sizes = [8, 32], strides = [1, 1]} : vector<8x96xf32> to vector<8x32xf32>
    %473 = arith.addf %471, %472 : vector<8x32xf32>
    %474 = arith.negf %473 : vector<8x32xf32>
    %475 = math.exp %474 : vector<8x32xf32>
    %cst_81 = arith.constant 1.000000e+00 : f32
    %476 = vector.broadcast %cst_81 : f32 to vector<8x32xf32>
    %477 = arith.addf %476, %475 : vector<8x32xf32>
    %478 = arith.divf %476, %477 : vector<8x32xf32>
    %479 = vector.extract_strided_slice %470 {offsets = [0, 32], sizes = [8, 32], strides = [1, 1]} : vector<8x96xf32> to vector<8x32xf32>
    %480 = vector.extract_strided_slice %469 {offsets = [0, 32], sizes = [8, 32], strides = [1, 1]} : vector<8x96xf32> to vector<8x32xf32>
    %481 = arith.addf %479, %480 : vector<8x32xf32>
    %482 = arith.negf %481 : vector<8x32xf32>
    %483 = math.exp %482 : vector<8x32xf32>
    %cst_82 = arith.constant 1.000000e+00 : f32
    %484 = vector.broadcast %cst_82 : f32 to vector<8x32xf32>
    %485 = arith.addf %484, %483 : vector<8x32xf32>
    %486 = arith.divf %484, %485 : vector<8x32xf32>
    %487 = vector.extract_strided_slice %470 {offsets = [0, 64], sizes = [8, 32], strides = [1, 1]} : vector<8x96xf32> to vector<8x32xf32>
    %488 = vector.extract_strided_slice %469 {offsets = [0, 64], sizes = [8, 32], strides = [1, 1]} : vector<8x96xf32> to vector<8x32xf32>
    %489 = arith.mulf %478, %488 : vector<8x32xf32>
    %490 = arith.addf %487, %489 : vector<8x32xf32>
    %491 = math.tanh %490 : vector<8x32xf32>
    %cst_83 = arith.constant 1.000000e+00 : f32
    %492 = vector.broadcast %cst_83 : f32 to vector<8x32xf32>
    %493 = arith.subf %492, %486 : vector<8x32xf32>
    %494 = arith.mulf %493, %491 : vector<8x32xf32>
    %495 = arith.mulf %486, %466 : vector<8x32xf32>
    %496 = arith.addf %494, %495 : vector<8x32xf32>
    %497 = tpu.concatenate %43, %73, %103, %133, %163, %193, %223, %253 in 0 : vector<8x32xf32>, vector<8x32xf32>, vector<8x32xf32>, vector<8x32xf32>, vector<8x32xf32>, vector<8x32xf32>, vector<8x32xf32>, vector<8x32xf32> -> vector<64x32xf32>
    %498 = tpu.concatenate %496, %466, %436, %406, %376, %346, %316, %286 in 0 : vector<8x32xf32>, vector<8x32xf32>, vector<8x32xf32>, vector<8x32xf32>, vector<8x32xf32>, vector<8x32xf32>, vector<8x32xf32>, vector<8x32xf32> -> vector<64x32xf32>
    %c0_84 = arith.constant 0 : index
    %c0_85 = arith.constant 0 : index
    %499 = vector.load %arg9[%c0_84, %c0_85] : memref<64x96xf32, #tpu.memory_space<vmem>>, vector<64x96xf32>
    %500 = vector.extract_strided_slice %499 {offsets = [0, 0], sizes = [32, 96], strides = [1, 1]} : vector<64x96xf32> to vector<32x96xf32>
    %cst_86 = arith.constant dense<0.000000e+00> : vector<64x96xf32>
    %501 = tpu.matmul %497, %500, %cst_86 {dimension_numbers = #tpu.dot_dimension_numbers<[1], [0], [0], [1], [0, 0, 1, 1], [], []>} : vector<64x32xf32>, vector<32x96xf32>, vector<64x96xf32> -> vector<64x96xf32>
    %502 = vector.extract_strided_slice %499 {offsets = [32, 0], sizes = [32, 96], strides = [1, 1]} : vector<64x96xf32> to vector<32x96xf32>
    %cst_87 = arith.constant dense<0.000000e+00> : vector<64x96xf32>
    %503 = tpu.matmul %498, %502, %cst_87 {dimension_numbers = #tpu.dot_dimension_numbers<[1], [0], [0], [1], [0, 0, 1, 1], [], []>} : vector<64x32xf32>, vector<32x96xf32>, vector<64x96xf32> -> vector<64x96xf32>
    %504 = arith.addf %501, %503 : vector<64x96xf32>
    %c0_88 = arith.constant 0 : index
    %c0_89 = arith.constant 0 : index
    %505 = vector.load %arg11[%c0_88, %c0_89] : memref<1x96xf32, #tpu.memory_space<vmem>>, vector<1x96xf32>
    %506 = vector.broadcast %505 : vector<1x96xf32> to vector<64x96xf32>
    %507 = arith.addf %504, %506 : vector<64x96xf32>
    %c0_90 = arith.constant 0 : index
    %c0_91 = arith.constant 0 : index
    %508 = vector.load %arg10[%c0_90, %c0_91] : memref<32x96xf32, #tpu.memory_space<vmem>>, vector<32x96xf32>
    %c0_92 = arith.constant 0 : index
    %c0_93 = arith.constant 0 : index
    %509 = vector.load %arg12[%c0_92, %c0_93] : memref<1x96xf32, #tpu.memory_space<vmem>>, vector<1x96xf32>
    %cst_94 = arith.constant 0.000000e+00 : f32
    %510 = vector.broadcast %cst_94 : f32 to vector<8x32xf32>
    %cst_95 = arith.constant dense<0.000000e+00> : vector<8x96xf32>
    %511 = tpu.matmul %510, %508, %cst_95 {dimension_numbers = #tpu.dot_dimension_numbers<[1], [0], [0], [1], [0, 0, 1, 1], [], []>} : vector<8x32xf32>, vector<32x96xf32>, vector<8x96xf32> -> vector<8x96xf32>
    %512 = vector.broadcast %509 : vector<1x96xf32> to vector<8x96xf32>
    %513 = arith.addf %511, %512 : vector<8x96xf32>
    %514 = vector.extract_strided_slice %507 {offsets = [0, 0], sizes = [8, 96], strides = [1, 1]} : vector<64x96xf32> to vector<8x96xf32>
    %515 = vector.extract_strided_slice %514 {offsets = [0, 0], sizes = [8, 32], strides = [1, 1]} : vector<8x96xf32> to vector<8x32xf32>
    %516 = vector.extract_strided_slice %513 {offsets = [0, 0], sizes = [8, 32], strides = [1, 1]} : vector<8x96xf32> to vector<8x32xf32>
    %517 = arith.addf %515, %516 : vector<8x32xf32>
    %518 = arith.negf %517 : vector<8x32xf32>
    %519 = math.exp %518 : vector<8x32xf32>
    %cst_96 = arith.constant 1.000000e+00 : f32
    %520 = vector.broadcast %cst_96 : f32 to vector<8x32xf32>
    %521 = arith.addf %520, %519 : vector<8x32xf32>
    %522 = arith.divf %520, %521 : vector<8x32xf32>
    %523 = vector.extract_strided_slice %514 {offsets = [0, 32], sizes = [8, 32], strides = [1, 1]} : vector<8x96xf32> to vector<8x32xf32>
    %524 = vector.extract_strided_slice %513 {offsets = [0, 32], sizes = [8, 32], strides = [1, 1]} : vector<8x96xf32> to vector<8x32xf32>
    %525 = arith.addf %523, %524 : vector<8x32xf32>
    %526 = arith.negf %525 : vector<8x32xf32>
    %527 = math.exp %526 : vector<8x32xf32>
    %cst_97 = arith.constant 1.000000e+00 : f32
    %528 = vector.broadcast %cst_97 : f32 to vector<8x32xf32>
    %529 = arith.addf %528, %527 : vector<8x32xf32>
    %530 = arith.divf %528, %529 : vector<8x32xf32>
    %531 = vector.extract_strided_slice %514 {offsets = [0, 64], sizes = [8, 32], strides = [1, 1]} : vector<8x96xf32> to vector<8x32xf32>
    %532 = vector.extract_strided_slice %513 {offsets = [0, 64], sizes = [8, 32], strides = [1, 1]} : vector<8x96xf32> to vector<8x32xf32>
    %533 = arith.mulf %522, %532 : vector<8x32xf32>
    %534 = arith.addf %531, %533 : vector<8x32xf32>
    %535 = math.tanh %534 : vector<8x32xf32>
    %cst_98 = arith.constant 1.000000e+00 : f32
    %536 = vector.broadcast %cst_98 : f32 to vector<8x32xf32>
    %537 = arith.subf %536, %530 : vector<8x32xf32>
    %538 = arith.mulf %537, %535 : vector<8x32xf32>
    %539 = arith.mulf %530, %510 : vector<8x32xf32>
    %540 = arith.addf %538, %539 : vector<8x32xf32>
    %cst_99 = arith.constant dense<0.000000e+00> : vector<8x96xf32>
    %541 = tpu.matmul %540, %508, %cst_99 {dimension_numbers = #tpu.dot_dimension_numbers<[1], [0], [0], [1], [0, 0, 1, 1], [], []>} : vector<8x32xf32>, vector<32x96xf32>, vector<8x96xf32> -> vector<8x96xf32>
    %542 = vector.broadcast %509 : vector<1x96xf32> to vector<8x96xf32>
    %543 = arith.addf %541, %542 : vector<8x96xf32>
    %544 = vector.extract_strided_slice %507 {offsets = [8, 0], sizes = [8, 96], strides = [1, 1]} : vector<64x96xf32> to vector<8x96xf32>
    %545 = vector.extract_strided_slice %544 {offsets = [0, 0], sizes = [8, 32], strides = [1, 1]} : vector<8x96xf32> to vector<8x32xf32>
    %546 = vector.extract_strided_slice %543 {offsets = [0, 0], sizes = [8, 32], strides = [1, 1]} : vector<8x96xf32> to vector<8x32xf32>
    %547 = arith.addf %545, %546 : vector<8x32xf32>
    %548 = arith.negf %547 : vector<8x32xf32>
    %549 = math.exp %548 : vector<8x32xf32>
    %cst_100 = arith.constant 1.000000e+00 : f32
    %550 = vector.broadcast %cst_100 : f32 to vector<8x32xf32>
    %551 = arith.addf %550, %549 : vector<8x32xf32>
    %552 = arith.divf %550, %551 : vector<8x32xf32>
    %553 = vector.extract_strided_slice %544 {offsets = [0, 32], sizes = [8, 32], strides = [1, 1]} : vector<8x96xf32> to vector<8x32xf32>
    %554 = vector.extract_strided_slice %543 {offsets = [0, 32], sizes = [8, 32], strides = [1, 1]} : vector<8x96xf32> to vector<8x32xf32>
    %555 = arith.addf %553, %554 : vector<8x32xf32>
    %556 = arith.negf %555 : vector<8x32xf32>
    %557 = math.exp %556 : vector<8x32xf32>
    %cst_101 = arith.constant 1.000000e+00 : f32
    %558 = vector.broadcast %cst_101 : f32 to vector<8x32xf32>
    %559 = arith.addf %558, %557 : vector<8x32xf32>
    %560 = arith.divf %558, %559 : vector<8x32xf32>
    %561 = vector.extract_strided_slice %544 {offsets = [0, 64], sizes = [8, 32], strides = [1, 1]} : vector<8x96xf32> to vector<8x32xf32>
    %562 = vector.extract_strided_slice %543 {offsets = [0, 64], sizes = [8, 32], strides = [1, 1]} : vector<8x96xf32> to vector<8x32xf32>
    %563 = arith.mulf %552, %562 : vector<8x32xf32>
    %564 = arith.addf %561, %563 : vector<8x32xf32>
    %565 = math.tanh %564 : vector<8x32xf32>
    %cst_102 = arith.constant 1.000000e+00 : f32
    %566 = vector.broadcast %cst_102 : f32 to vector<8x32xf32>
    %567 = arith.subf %566, %560 : vector<8x32xf32>
    %568 = arith.mulf %567, %565 : vector<8x32xf32>
    %569 = arith.mulf %560, %540 : vector<8x32xf32>
    %570 = arith.addf %568, %569 : vector<8x32xf32>
    %cst_103 = arith.constant dense<0.000000e+00> : vector<8x96xf32>
    %571 = tpu.matmul %570, %508, %cst_103 {dimension_numbers = #tpu.dot_dimension_numbers<[1], [0], [0], [1], [0, 0, 1, 1], [], []>} : vector<8x32xf32>, vector<32x96xf32>, vector<8x96xf32> -> vector<8x96xf32>
    %572 = vector.broadcast %509 : vector<1x96xf32> to vector<8x96xf32>
    %573 = arith.addf %571, %572 : vector<8x96xf32>
    %574 = vector.extract_strided_slice %507 {offsets = [16, 0], sizes = [8, 96], strides = [1, 1]} : vector<64x96xf32> to vector<8x96xf32>
    %575 = vector.extract_strided_slice %574 {offsets = [0, 0], sizes = [8, 32], strides = [1, 1]} : vector<8x96xf32> to vector<8x32xf32>
    %576 = vector.extract_strided_slice %573 {offsets = [0, 0], sizes = [8, 32], strides = [1, 1]} : vector<8x96xf32> to vector<8x32xf32>
    %577 = arith.addf %575, %576 : vector<8x32xf32>
    %578 = arith.negf %577 : vector<8x32xf32>
    %579 = math.exp %578 : vector<8x32xf32>
    %cst_104 = arith.constant 1.000000e+00 : f32
    %580 = vector.broadcast %cst_104 : f32 to vector<8x32xf32>
    %581 = arith.addf %580, %579 : vector<8x32xf32>
    %582 = arith.divf %580, %581 : vector<8x32xf32>
    %583 = vector.extract_strided_slice %574 {offsets = [0, 32], sizes = [8, 32], strides = [1, 1]} : vector<8x96xf32> to vector<8x32xf32>
    %584 = vector.extract_strided_slice %573 {offsets = [0, 32], sizes = [8, 32], strides = [1, 1]} : vector<8x96xf32> to vector<8x32xf32>
    %585 = arith.addf %583, %584 : vector<8x32xf32>
    %586 = arith.negf %585 : vector<8x32xf32>
    %587 = math.exp %586 : vector<8x32xf32>
    %cst_105 = arith.constant 1.000000e+00 : f32
    %588 = vector.broadcast %cst_105 : f32 to vector<8x32xf32>
    %589 = arith.addf %588, %587 : vector<8x32xf32>
    %590 = arith.divf %588, %589 : vector<8x32xf32>
    %591 = vector.extract_strided_slice %574 {offsets = [0, 64], sizes = [8, 32], strides = [1, 1]} : vector<8x96xf32> to vector<8x32xf32>
    %592 = vector.extract_strided_slice %573 {offsets = [0, 64], sizes = [8, 32], strides = [1, 1]} : vector<8x96xf32> to vector<8x32xf32>
    %593 = arith.mulf %582, %592 : vector<8x32xf32>
    %594 = arith.addf %591, %593 : vector<8x32xf32>
    %595 = math.tanh %594 : vector<8x32xf32>
    %cst_106 = arith.constant 1.000000e+00 : f32
    %596 = vector.broadcast %cst_106 : f32 to vector<8x32xf32>
    %597 = arith.subf %596, %590 : vector<8x32xf32>
    %598 = arith.mulf %597, %595 : vector<8x32xf32>
    %599 = arith.mulf %590, %570 : vector<8x32xf32>
    %600 = arith.addf %598, %599 : vector<8x32xf32>
    %cst_107 = arith.constant dense<0.000000e+00> : vector<8x96xf32>
    %601 = tpu.matmul %600, %508, %cst_107 {dimension_numbers = #tpu.dot_dimension_numbers<[1], [0], [0], [1], [0, 0, 1, 1], [], []>} : vector<8x32xf32>, vector<32x96xf32>, vector<8x96xf32> -> vector<8x96xf32>
    %602 = vector.broadcast %509 : vector<1x96xf32> to vector<8x96xf32>
    %603 = arith.addf %601, %602 : vector<8x96xf32>
    %604 = vector.extract_strided_slice %507 {offsets = [24, 0], sizes = [8, 96], strides = [1, 1]} : vector<64x96xf32> to vector<8x96xf32>
    %605 = vector.extract_strided_slice %604 {offsets = [0, 0], sizes = [8, 32], strides = [1, 1]} : vector<8x96xf32> to vector<8x32xf32>
    %606 = vector.extract_strided_slice %603 {offsets = [0, 0], sizes = [8, 32], strides = [1, 1]} : vector<8x96xf32> to vector<8x32xf32>
    %607 = arith.addf %605, %606 : vector<8x32xf32>
    %608 = arith.negf %607 : vector<8x32xf32>
    %609 = math.exp %608 : vector<8x32xf32>
    %cst_108 = arith.constant 1.000000e+00 : f32
    %610 = vector.broadcast %cst_108 : f32 to vector<8x32xf32>
    %611 = arith.addf %610, %609 : vector<8x32xf32>
    %612 = arith.divf %610, %611 : vector<8x32xf32>
    %613 = vector.extract_strided_slice %604 {offsets = [0, 32], sizes = [8, 32], strides = [1, 1]} : vector<8x96xf32> to vector<8x32xf32>
    %614 = vector.extract_strided_slice %603 {offsets = [0, 32], sizes = [8, 32], strides = [1, 1]} : vector<8x96xf32> to vector<8x32xf32>
    %615 = arith.addf %613, %614 : vector<8x32xf32>
    %616 = arith.negf %615 : vector<8x32xf32>
    %617 = math.exp %616 : vector<8x32xf32>
    %cst_109 = arith.constant 1.000000e+00 : f32
    %618 = vector.broadcast %cst_109 : f32 to vector<8x32xf32>
    %619 = arith.addf %618, %617 : vector<8x32xf32>
    %620 = arith.divf %618, %619 : vector<8x32xf32>
    %621 = vector.extract_strided_slice %604 {offsets = [0, 64], sizes = [8, 32], strides = [1, 1]} : vector<8x96xf32> to vector<8x32xf32>
    %622 = vector.extract_strided_slice %603 {offsets = [0, 64], sizes = [8, 32], strides = [1, 1]} : vector<8x96xf32> to vector<8x32xf32>
    %623 = arith.mulf %612, %622 : vector<8x32xf32>
    %624 = arith.addf %621, %623 : vector<8x32xf32>
    %625 = math.tanh %624 : vector<8x32xf32>
    %cst_110 = arith.constant 1.000000e+00 : f32
    %626 = vector.broadcast %cst_110 : f32 to vector<8x32xf32>
    %627 = arith.subf %626, %620 : vector<8x32xf32>
    %628 = arith.mulf %627, %625 : vector<8x32xf32>
    %629 = arith.mulf %620, %600 : vector<8x32xf32>
    %630 = arith.addf %628, %629 : vector<8x32xf32>
    %cst_111 = arith.constant dense<0.000000e+00> : vector<8x96xf32>
    %631 = tpu.matmul %630, %508, %cst_111 {dimension_numbers = #tpu.dot_dimension_numbers<[1], [0], [0], [1], [0, 0, 1, 1], [], []>} : vector<8x32xf32>, vector<32x96xf32>, vector<8x96xf32> -> vector<8x96xf32>
    %632 = vector.broadcast %509 : vector<1x96xf32> to vector<8x96xf32>
    %633 = arith.addf %631, %632 : vector<8x96xf32>
    %634 = vector.extract_strided_slice %507 {offsets = [32, 0], sizes = [8, 96], strides = [1, 1]} : vector<64x96xf32> to vector<8x96xf32>
    %635 = vector.extract_strided_slice %634 {offsets = [0, 0], sizes = [8, 32], strides = [1, 1]} : vector<8x96xf32> to vector<8x32xf32>
    %636 = vector.extract_strided_slice %633 {offsets = [0, 0], sizes = [8, 32], strides = [1, 1]} : vector<8x96xf32> to vector<8x32xf32>
    %637 = arith.addf %635, %636 : vector<8x32xf32>
    %638 = arith.negf %637 : vector<8x32xf32>
    %639 = math.exp %638 : vector<8x32xf32>
    %cst_112 = arith.constant 1.000000e+00 : f32
    %640 = vector.broadcast %cst_112 : f32 to vector<8x32xf32>
    %641 = arith.addf %640, %639 : vector<8x32xf32>
    %642 = arith.divf %640, %641 : vector<8x32xf32>
    %643 = vector.extract_strided_slice %634 {offsets = [0, 32], sizes = [8, 32], strides = [1, 1]} : vector<8x96xf32> to vector<8x32xf32>
    %644 = vector.extract_strided_slice %633 {offsets = [0, 32], sizes = [8, 32], strides = [1, 1]} : vector<8x96xf32> to vector<8x32xf32>
    %645 = arith.addf %643, %644 : vector<8x32xf32>
    %646 = arith.negf %645 : vector<8x32xf32>
    %647 = math.exp %646 : vector<8x32xf32>
    %cst_113 = arith.constant 1.000000e+00 : f32
    %648 = vector.broadcast %cst_113 : f32 to vector<8x32xf32>
    %649 = arith.addf %648, %647 : vector<8x32xf32>
    %650 = arith.divf %648, %649 : vector<8x32xf32>
    %651 = vector.extract_strided_slice %634 {offsets = [0, 64], sizes = [8, 32], strides = [1, 1]} : vector<8x96xf32> to vector<8x32xf32>
    %652 = vector.extract_strided_slice %633 {offsets = [0, 64], sizes = [8, 32], strides = [1, 1]} : vector<8x96xf32> to vector<8x32xf32>
    %653 = arith.mulf %642, %652 : vector<8x32xf32>
    %654 = arith.addf %651, %653 : vector<8x32xf32>
    %655 = math.tanh %654 : vector<8x32xf32>
    %cst_114 = arith.constant 1.000000e+00 : f32
    %656 = vector.broadcast %cst_114 : f32 to vector<8x32xf32>
    %657 = arith.subf %656, %650 : vector<8x32xf32>
    %658 = arith.mulf %657, %655 : vector<8x32xf32>
    %659 = arith.mulf %650, %630 : vector<8x32xf32>
    %660 = arith.addf %658, %659 : vector<8x32xf32>
    %cst_115 = arith.constant dense<0.000000e+00> : vector<8x96xf32>
    %661 = tpu.matmul %660, %508, %cst_115 {dimension_numbers = #tpu.dot_dimension_numbers<[1], [0], [0], [1], [0, 0, 1, 1], [], []>} : vector<8x32xf32>, vector<32x96xf32>, vector<8x96xf32> -> vector<8x96xf32>
    %662 = vector.broadcast %509 : vector<1x96xf32> to vector<8x96xf32>
    %663 = arith.addf %661, %662 : vector<8x96xf32>
    %664 = vector.extract_strided_slice %507 {offsets = [40, 0], sizes = [8, 96], strides = [1, 1]} : vector<64x96xf32> to vector<8x96xf32>
    %665 = vector.extract_strided_slice %664 {offsets = [0, 0], sizes = [8, 32], strides = [1, 1]} : vector<8x96xf32> to vector<8x32xf32>
    %666 = vector.extract_strided_slice %663 {offsets = [0, 0], sizes = [8, 32], strides = [1, 1]} : vector<8x96xf32> to vector<8x32xf32>
    %667 = arith.addf %665, %666 : vector<8x32xf32>
    %668 = arith.negf %667 : vector<8x32xf32>
    %669 = math.exp %668 : vector<8x32xf32>
    %cst_116 = arith.constant 1.000000e+00 : f32
    %670 = vector.broadcast %cst_116 : f32 to vector<8x32xf32>
    %671 = arith.addf %670, %669 : vector<8x32xf32>
    %672 = arith.divf %670, %671 : vector<8x32xf32>
    %673 = vector.extract_strided_slice %664 {offsets = [0, 32], sizes = [8, 32], strides = [1, 1]} : vector<8x96xf32> to vector<8x32xf32>
    %674 = vector.extract_strided_slice %663 {offsets = [0, 32], sizes = [8, 32], strides = [1, 1]} : vector<8x96xf32> to vector<8x32xf32>
    %675 = arith.addf %673, %674 : vector<8x32xf32>
    %676 = arith.negf %675 : vector<8x32xf32>
    %677 = math.exp %676 : vector<8x32xf32>
    %cst_117 = arith.constant 1.000000e+00 : f32
    %678 = vector.broadcast %cst_117 : f32 to vector<8x32xf32>
    %679 = arith.addf %678, %677 : vector<8x32xf32>
    %680 = arith.divf %678, %679 : vector<8x32xf32>
    %681 = vector.extract_strided_slice %664 {offsets = [0, 64], sizes = [8, 32], strides = [1, 1]} : vector<8x96xf32> to vector<8x32xf32>
    %682 = vector.extract_strided_slice %663 {offsets = [0, 64], sizes = [8, 32], strides = [1, 1]} : vector<8x96xf32> to vector<8x32xf32>
    %683 = arith.mulf %672, %682 : vector<8x32xf32>
    %684 = arith.addf %681, %683 : vector<8x32xf32>
    %685 = math.tanh %684 : vector<8x32xf32>
    %cst_118 = arith.constant 1.000000e+00 : f32
    %686 = vector.broadcast %cst_118 : f32 to vector<8x32xf32>
    %687 = arith.subf %686, %680 : vector<8x32xf32>
    %688 = arith.mulf %687, %685 : vector<8x32xf32>
    %689 = arith.mulf %680, %660 : vector<8x32xf32>
    %690 = arith.addf %688, %689 : vector<8x32xf32>
    %cst_119 = arith.constant dense<0.000000e+00> : vector<8x96xf32>
    %691 = tpu.matmul %690, %508, %cst_119 {dimension_numbers = #tpu.dot_dimension_numbers<[1], [0], [0], [1], [0, 0, 1, 1], [], []>} : vector<8x32xf32>, vector<32x96xf32>, vector<8x96xf32> -> vector<8x96xf32>
    %692 = vector.broadcast %509 : vector<1x96xf32> to vector<8x96xf32>
    %693 = arith.addf %691, %692 : vector<8x96xf32>
    %694 = vector.extract_strided_slice %507 {offsets = [48, 0], sizes = [8, 96], strides = [1, 1]} : vector<64x96xf32> to vector<8x96xf32>
    %695 = vector.extract_strided_slice %694 {offsets = [0, 0], sizes = [8, 32], strides = [1, 1]} : vector<8x96xf32> to vector<8x32xf32>
    %696 = vector.extract_strided_slice %693 {offsets = [0, 0], sizes = [8, 32], strides = [1, 1]} : vector<8x96xf32> to vector<8x32xf32>
    %697 = arith.addf %695, %696 : vector<8x32xf32>
    %698 = arith.negf %697 : vector<8x32xf32>
    %699 = math.exp %698 : vector<8x32xf32>
    %cst_120 = arith.constant 1.000000e+00 : f32
    %700 = vector.broadcast %cst_120 : f32 to vector<8x32xf32>
    %701 = arith.addf %700, %699 : vector<8x32xf32>
    %702 = arith.divf %700, %701 : vector<8x32xf32>
    %703 = vector.extract_strided_slice %694 {offsets = [0, 32], sizes = [8, 32], strides = [1, 1]} : vector<8x96xf32> to vector<8x32xf32>
    %704 = vector.extract_strided_slice %693 {offsets = [0, 32], sizes = [8, 32], strides = [1, 1]} : vector<8x96xf32> to vector<8x32xf32>
    %705 = arith.addf %703, %704 : vector<8x32xf32>
    %706 = arith.negf %705 : vector<8x32xf32>
    %707 = math.exp %706 : vector<8x32xf32>
    %cst_121 = arith.constant 1.000000e+00 : f32
    %708 = vector.broadcast %cst_121 : f32 to vector<8x32xf32>
    %709 = arith.addf %708, %707 : vector<8x32xf32>
    %710 = arith.divf %708, %709 : vector<8x32xf32>
    %711 = vector.extract_strided_slice %694 {offsets = [0, 64], sizes = [8, 32], strides = [1, 1]} : vector<8x96xf32> to vector<8x32xf32>
    %712 = vector.extract_strided_slice %693 {offsets = [0, 64], sizes = [8, 32], strides = [1, 1]} : vector<8x96xf32> to vector<8x32xf32>
    %713 = arith.mulf %702, %712 : vector<8x32xf32>
    %714 = arith.addf %711, %713 : vector<8x32xf32>
    %715 = math.tanh %714 : vector<8x32xf32>
    %cst_122 = arith.constant 1.000000e+00 : f32
    %716 = vector.broadcast %cst_122 : f32 to vector<8x32xf32>
    %717 = arith.subf %716, %710 : vector<8x32xf32>
    %718 = arith.mulf %717, %715 : vector<8x32xf32>
    %719 = arith.mulf %710, %690 : vector<8x32xf32>
    %720 = arith.addf %718, %719 : vector<8x32xf32>
    %cst_123 = arith.constant dense<0.000000e+00> : vector<8x96xf32>
    %721 = tpu.matmul %720, %508, %cst_123 {dimension_numbers = #tpu.dot_dimension_numbers<[1], [0], [0], [1], [0, 0, 1, 1], [], []>} : vector<8x32xf32>, vector<32x96xf32>, vector<8x96xf32> -> vector<8x96xf32>
    %722 = vector.broadcast %509 : vector<1x96xf32> to vector<8x96xf32>
    %723 = arith.addf %721, %722 : vector<8x96xf32>
    %724 = vector.extract_strided_slice %507 {offsets = [56, 0], sizes = [8, 96], strides = [1, 1]} : vector<64x96xf32> to vector<8x96xf32>
    %725 = vector.extract_strided_slice %724 {offsets = [0, 0], sizes = [8, 32], strides = [1, 1]} : vector<8x96xf32> to vector<8x32xf32>
    %726 = vector.extract_strided_slice %723 {offsets = [0, 0], sizes = [8, 32], strides = [1, 1]} : vector<8x96xf32> to vector<8x32xf32>
    %727 = arith.addf %725, %726 : vector<8x32xf32>
    %728 = arith.negf %727 : vector<8x32xf32>
    %729 = math.exp %728 : vector<8x32xf32>
    %cst_124 = arith.constant 1.000000e+00 : f32
    %730 = vector.broadcast %cst_124 : f32 to vector<8x32xf32>
    %731 = arith.addf %730, %729 : vector<8x32xf32>
    %732 = arith.divf %730, %731 : vector<8x32xf32>
    %733 = vector.extract_strided_slice %724 {offsets = [0, 32], sizes = [8, 32], strides = [1, 1]} : vector<8x96xf32> to vector<8x32xf32>
    %734 = vector.extract_strided_slice %723 {offsets = [0, 32], sizes = [8, 32], strides = [1, 1]} : vector<8x96xf32> to vector<8x32xf32>
    %735 = arith.addf %733, %734 : vector<8x32xf32>
    %736 = arith.negf %735 : vector<8x32xf32>
    %737 = math.exp %736 : vector<8x32xf32>
    %cst_125 = arith.constant 1.000000e+00 : f32
    %738 = vector.broadcast %cst_125 : f32 to vector<8x32xf32>
    %739 = arith.addf %738, %737 : vector<8x32xf32>
    %740 = arith.divf %738, %739 : vector<8x32xf32>
    %741 = vector.extract_strided_slice %724 {offsets = [0, 64], sizes = [8, 32], strides = [1, 1]} : vector<8x96xf32> to vector<8x32xf32>
    %742 = vector.extract_strided_slice %723 {offsets = [0, 64], sizes = [8, 32], strides = [1, 1]} : vector<8x96xf32> to vector<8x32xf32>
    %743 = arith.mulf %732, %742 : vector<8x32xf32>
    %744 = arith.addf %741, %743 : vector<8x32xf32>
    %745 = math.tanh %744 : vector<8x32xf32>
    %cst_126 = arith.constant 1.000000e+00 : f32
    %746 = vector.broadcast %cst_126 : f32 to vector<8x32xf32>
    %747 = arith.subf %746, %740 : vector<8x32xf32>
    %748 = arith.mulf %747, %745 : vector<8x32xf32>
    %749 = arith.mulf %740, %720 : vector<8x32xf32>
    %750 = arith.addf %748, %749 : vector<8x32xf32>
    %c0_127 = arith.constant 0 : index
    %c0_128 = arith.constant 0 : index
    %751 = vector.load %arg13[%c0_127, %c0_128] : memref<64x96xf32, #tpu.memory_space<vmem>>, vector<64x96xf32>
    %752 = vector.extract_strided_slice %751 {offsets = [0, 0], sizes = [32, 96], strides = [1, 1]} : vector<64x96xf32> to vector<32x96xf32>
    %cst_129 = arith.constant dense<0.000000e+00> : vector<8x96xf32>
    %753 = tpu.matmul %253, %752, %cst_129 {dimension_numbers = #tpu.dot_dimension_numbers<[1], [0], [0], [1], [0, 0, 1, 1], [], []>} : vector<8x32xf32>, vector<32x96xf32>, vector<8x96xf32> -> vector<8x96xf32>
    %754 = vector.extract_strided_slice %751 {offsets = [32, 0], sizes = [32, 96], strides = [1, 1]} : vector<64x96xf32> to vector<32x96xf32>
    %cst_130 = arith.constant dense<0.000000e+00> : vector<8x96xf32>
    %755 = tpu.matmul %286, %754, %cst_130 {dimension_numbers = #tpu.dot_dimension_numbers<[1], [0], [0], [1], [0, 0, 1, 1], [], []>} : vector<8x32xf32>, vector<32x96xf32>, vector<8x96xf32> -> vector<8x96xf32>
    %756 = arith.addf %753, %755 : vector<8x96xf32>
    %c0_131 = arith.constant 0 : index
    %c0_132 = arith.constant 0 : index
    %757 = vector.load %arg15[%c0_131, %c0_132] : memref<1x96xf32, #tpu.memory_space<vmem>>, vector<1x96xf32>
    %758 = vector.broadcast %757 : vector<1x96xf32> to vector<8x96xf32>
    %759 = arith.addf %756, %758 : vector<8x96xf32>
    %c0_133 = arith.constant 0 : index
    %c0_134 = arith.constant 0 : index
    %760 = vector.load %arg16[%c0_133, %c0_134] : memref<1x96xf32, #tpu.memory_space<vmem>>, vector<1x96xf32>
    %cst_135 = arith.constant 0.000000e+00 : f32
    %761 = vector.broadcast %cst_135 : f32 to vector<8x32xf32>
    %762 = vector.extract_strided_slice %759 {offsets = [0, 0], sizes = [8, 32], strides = [1, 1]} : vector<8x96xf32> to vector<8x32xf32>
    %763 = vector.extract_strided_slice %760 {offsets = [0, 0], sizes = [1, 32], strides = [1, 1]} : vector<1x96xf32> to vector<1x32xf32>
    %764 = vector.broadcast %763 : vector<1x32xf32> to vector<8x32xf32>
    %765 = arith.addf %762, %764 : vector<8x32xf32>
    %766 = arith.negf %765 : vector<8x32xf32>
    %767 = math.exp %766 : vector<8x32xf32>
    %cst_136 = arith.constant 1.000000e+00 : f32
    %768 = vector.broadcast %cst_136 : f32 to vector<8x32xf32>
    %769 = arith.addf %768, %767 : vector<8x32xf32>
    %770 = arith.divf %768, %769 : vector<8x32xf32>
    %771 = vector.extract_strided_slice %759 {offsets = [0, 32], sizes = [8, 32], strides = [1, 1]} : vector<8x96xf32> to vector<8x32xf32>
    %772 = vector.extract_strided_slice %760 {offsets = [0, 32], sizes = [1, 32], strides = [1, 1]} : vector<1x96xf32> to vector<1x32xf32>
    %773 = vector.broadcast %772 : vector<1x32xf32> to vector<8x32xf32>
    %774 = arith.addf %771, %773 : vector<8x32xf32>
    %775 = arith.negf %774 : vector<8x32xf32>
    %776 = math.exp %775 : vector<8x32xf32>
    %cst_137 = arith.constant 1.000000e+00 : f32
    %777 = vector.broadcast %cst_137 : f32 to vector<8x32xf32>
    %778 = arith.addf %777, %776 : vector<8x32xf32>
    %779 = arith.divf %777, %778 : vector<8x32xf32>
    %780 = vector.extract_strided_slice %759 {offsets = [0, 64], sizes = [8, 32], strides = [1, 1]} : vector<8x96xf32> to vector<8x32xf32>
    %781 = vector.extract_strided_slice %760 {offsets = [0, 64], sizes = [1, 32], strides = [1, 1]} : vector<1x96xf32> to vector<1x32xf32>
    %782 = vector.broadcast %781 : vector<1x32xf32> to vector<8x32xf32>
    %783 = arith.mulf %770, %782 : vector<8x32xf32>
    %784 = arith.addf %780, %783 : vector<8x32xf32>
    %785 = math.tanh %784 : vector<8x32xf32>
    %cst_138 = arith.constant 1.000000e+00 : f32
    %786 = vector.broadcast %cst_138 : f32 to vector<8x32xf32>
    %787 = arith.subf %786, %779 : vector<8x32xf32>
    %788 = arith.mulf %787, %785 : vector<8x32xf32>
    %789 = arith.mulf %779, %761 : vector<8x32xf32>
    %790 = arith.addf %788, %789 : vector<8x32xf32>
    %c0_139 = arith.constant 0 : index
    %c0_140 = arith.constant 0 : index
    %791 = vector.load %arg17[%c0_139, %c0_140] : memref<64x8xf32, #tpu.memory_space<vmem>>, vector<64x8xf32>
    %792 = vector.extract_strided_slice %791 {offsets = [0, 0], sizes = [32, 8], strides = [1, 1]} : vector<64x8xf32> to vector<32x8xf32>
    %cst_141 = arith.constant dense<0.000000e+00> : vector<8x8xf32>
    %793 = tpu.matmul %750, %792, %cst_141 {dimension_numbers = #tpu.dot_dimension_numbers<[1], [0], [0], [1], [0, 0, 1, 1], [], []>} : vector<8x32xf32>, vector<32x8xf32>, vector<8x8xf32> -> vector<8x8xf32>
    %794 = vector.extract_strided_slice %791 {offsets = [32, 0], sizes = [32, 8], strides = [1, 1]} : vector<64x8xf32> to vector<32x8xf32>
    %cst_142 = arith.constant dense<0.000000e+00> : vector<8x8xf32>
    %795 = tpu.matmul %790, %794, %cst_142 {dimension_numbers = #tpu.dot_dimension_numbers<[1], [0], [0], [1], [0, 0, 1, 1], [], []>} : vector<8x32xf32>, vector<32x8xf32>, vector<8x8xf32> -> vector<8x8xf32>
    %796 = arith.addf %793, %795 : vector<8x8xf32>
    %c0_143 = arith.constant 0 : index
    %c0_144 = arith.constant 0 : index
    %797 = vector.load %arg18[%c0_143, %c0_144] : memref<1x8xf32, #tpu.memory_space<vmem>>, vector<1x8xf32>
    %798 = vector.broadcast %797 : vector<1x8xf32> to vector<8x8xf32>
    %799 = arith.addf %796, %798 : vector<8x8xf32>
    %800 = vector.extract_strided_slice %0 {offsets = [0, 0], sizes = [8, 8], strides = [1, 1]} : vector<64x8xf32> to vector<8x8xf32>
    %801 = arith.addf %799, %800 : vector<8x8xf32>
    %802 = vector.extract_strided_slice %801 {offsets = [0, 0], sizes = [2, 8], strides = [1, 1]} : vector<8x8xf32> to vector<2x8xf32>
    %c0_145 = arith.constant 0 : index
    %c0_146 = arith.constant 0 : index
    %803 = vector.load %arg19[%c0_145, %c0_146] : memref<2x8xf32, #tpu.memory_space<vmem>>, vector<2x8xf32>
    tpu.vector_store %arg19[%c0_145, %c0_146], %802 {strides = array<i32>} : memref<2x8xf32, #tpu.memory_space<vmem>>, vector<2x8xf32>,
    return
  }
}

</mosaic_0001>

<bundles_post_ra>
// kernel: stacked_gru_forward.1
= control target key start
LH: loop header
LB: loop body
LE: loop exit
PB: predicated region body
PF: predicated region fallthrough
CT: control target
= control target key end

     0   :  { %s5733_s0 = inlined_call_operand.vmem [shape: f32[64,8], index: 0, kind: input, shape index: {}]   ;;  %s5734_s1 = inlined_call_operand.hbm [shape: f32[8,96], index: 1, kind: input, shape index: {}]   ;;  %s5735_s2 = inlined_call_operand.vmem [shape: f32[32,96], index: 2, kind: input, shape index: {}]   ;;  %s5736_s3 = inlined_call_operand.vmem [shape: f32[1,96], index: 3, kind: input, shape index: {}]   ;;  %s5737_s4 = inlined_call_operand.hbm [shape: f32[1,96], index: 4, kind: input, shape index: {}]   ;;  %s5738_s5 = inlined_call_operand.hbm [shape: f32[8,96], index: 5, kind: input, shape index: {}]   ;;  %s5739_s6 = inlined_call_operand.vmem [shape: f32[32,96], index: 6, kind: input, shape index: {}]   ;;  %s5740_s7 = inlined_call_operand.hbm [shape: f32[1,96], index: 7, kind: input, shape index: {}]   ;;  %s5741_s8 = inlined_call_operand.hbm [shape: f32[1,96], index: 8, kind: input, shape index: {}]   ;;  %s5742_s9 = inlined_call_operand.vmem [shape: f32[64,96], index: 9, kind: input, shape index: {}]   ;;  %s5743_s10 = inlined_call_operand.vmem [shape: f32[32,96], index: 10, kind: input, shape index: {}]   ;;  %s5744_s11 = inlined_call_operand.vmem [shape: f32[1,96], index: 11, kind: input, shape index: {}]   ;;  %s5745_s12 = inlined_call_operand.hbm [shape: f32[1,96], index: 12, kind: input, shape index: {}]   ;;  %s5746_s13 = inlined_call_operand.vmem [shape: f32[64,96], index: 13, kind: input, shape index: {}]   ;;  %s5747_s14 = inlined_call_operand.hbm [shape: f32[32,96], index: 14, kind: input, shape index: {}]   ;;  %s5748_s15 = inlined_call_operand.hbm [shape: f32[1,96], index: 15, kind: input, shape index: {}]   ;;  %s5749_s16 = inlined_call_operand.hbm [shape: f32[1,96], index: 16, kind: input, shape index: {}]   ;;  %s5750_s17 = inlined_call_operand.vmem [shape: f32[64,8], index: 17, kind: input, shape index: {}]   ;;  %s5751_s18 = inlined_call_operand.hbm [shape: f32[1,8], index: 18, kind: input, shape index: {}]   ;;  %s5752_s19 = inlined_call_operand.hbm [shape: f32[2,8], index: 19, kind: output, shape index: {}]  }
   0x1   :  { %5756 = sst [smem:[#allocation27_spill]] %s5733_s0 }
   0x2   :  { %5757 = sst [smem:[#allocation28_spill]] %s5734_s1 }
   0x3   :  { %5758 = sst [smem:[#allocation29_spill]] %s5735_s2 }
   0x4   :  { %5759 = sst [smem:[#allocation30_spill]] %s5736_s3 }
   0x5   :  { %24 = vsyncpa [#allocation3], 0 }
   0x6   :  { %25 = vsyncpa [#allocation6], 0 }
   0x7   :  { %26 = vsyncpa [#allocation9], 0 }
   0x8   :  { %27 = vsyncpa [#allocation12], 0 }
   0x9   :  { %28 = vsyncpa [#allocation15], 0 }
   0xa   :  { %29 = vsyncpa [#allocation18], 0 }
   0xb   :  { %30 = vsyncpa [#allocation4], 0  ;;  %s4773_s0 = smov [#allocation5]   ;;  %s4774_s20 = smov [#allocation8]  }
   0xc   :  { %s53_s30 = sshll.u32 %s4773_s0, 4  ;;  %s75_s21 = sshll.u32 %s4774_s20, 4  ;;  %s54_s30 = int_to_ptr.vmem [resolvable:$true] %s53_s30  ;;  %s76_s21 = int_to_ptr.vmem [resolvable:$true] %s75_s21 }
   0xd   :  { %s4517_s2 = scalar_lea.hbm %s5737_s4, 16 }
   0xe   :  { %p4518_p0 = scmp.ne.s32.totalorder %s5737_s4, %s4517_s2  ;;  %p4521_p1 = scmp.lt.u32.totalorder %s4517_s2, %s5737_s4 }
  0x10   :  { %p4523_p2 = pnand %p4521_p1, %p4518_p0 }
  0x12   :  { %4526 = shalt.err (!%p4523_p2)
}
  0x13   :  { %s4527_s26 = scalar_lea.vmem %s54_s30, 16  ;;  %s4531_s27 = scalar_lea.vmem %s54_s30, 32 }
  0x14   :  { %p4528_p3 = scmp.ne.s32.totalorder %s54_s30, %s4527_s26  ;;  %p4532_p4 = scmp.lt.s32.totalorder %s54_s30, %s54_s30 }
  0x15   :  { %p4533_p5 = scmp.lt.s32.totalorder %s4531_s27, %s4527_s26 }
  0x17   :  { %p4534_p6 = por %p4533_p5, %p4532_p4 }
  0x19   :  { %p4535_p7 = pnand %p4534_p6, %p4528_p3 }
  0x1b   :  { %4538 = shalt.err (!%p4535_p7)
}
  0x1c   :  { %56 = dma.hbm_to_vmem [thread:$0]  %s5737_s4, 16, %s54_s30, [#allocation6]  }
  0x1d   :  { %s4539_s1 = scalar_lea.hbm %s5740_s7, 16 }
  0x1e   :  { %p4540_p8 = scmp.ne.s32.totalorder %s5740_s7, %s4539_s1  ;;  %p4543_p9 = scmp.lt.u32.totalorder %s4539_s1, %s5740_s7 }
  0x20   :  { %p4545_p10 = pnand %p4543_p9, %p4540_p8 }
  0x22   :  { %4548 = shalt.err (!%p4545_p10)
}
  0x23   :  { %s4549_s25 = scalar_lea.vmem %s76_s21, 16  ;;  %s4553_s3 = scalar_lea.vmem %s76_s21, 32 }
  0x24   :  { %p4550_p11 = scmp.ne.s32.totalorder %s76_s21, %s4549_s25  ;;  %p4554_p12 = scmp.lt.s32.totalorder %s76_s21, %s76_s21 }
  0x25   :  { %p4555_p13 = scmp.lt.s32.totalorder %s4553_s3, %s4549_s25 }
  0x27   :  { %p4556_p0 = por %p4555_p13, %p4554_p12 }
  0x29   :  { %p4557_p1 = pnand %p4556_p0, %p4550_p11 }
  0x2b   :  { %4560 = shalt.err (!%p4557_p1)
}
  0x2c   :  { %78 = dma.hbm_to_vmem [thread:$0]  %s5740_s7, 16, %s76_s21, [#allocation9]  }
  0x2d   :  { %s4775_s26 = smov [#allocation11]   ;;  %s4776_s28 = smov [#allocation14]  }
  0x2e   :  { %s101_s27 = sshll.u32 %s4775_s26, 4  ;;  %s125_s29 = sshll.u32 %s4776_s28, 4  ;;  %s102_s27 = int_to_ptr.vmem [resolvable:$true] %s101_s27  ;;  %s126_s29 = int_to_ptr.vmem [resolvable:$true] %s125_s29 }
  0x2f   :  { %s4561_s1 = scalar_lea.hbm %s5745_s12, 16 }
  0x30   :  { %p4562_p2 = scmp.ne.s32.totalorder %s5745_s12, %s4561_s1  ;;  %p4565_p3 = scmp.lt.u32.totalorder %s4561_s1, %s5745_s12 }
  0x32   :  { %p4567_p4 = pnand %p4565_p3, %p4562_p2 }
  0x34   :  { %4570 = shalt.err (!%p4567_p4)
}
  0x35   :  { %s4571_s7 = scalar_lea.vmem %s102_s27, 16  ;;  %s4575_s21 = scalar_lea.vmem %s102_s27, 32 }
  0x36   :  { %p4572_p5 = scmp.ne.s32.totalorder %s102_s27, %s4571_s7  ;;  %p4576_p6 = scmp.lt.s32.totalorder %s102_s27, %s102_s27 }
  0x37   :  { %p4577_p7 = scmp.lt.s32.totalorder %s4575_s21, %s4571_s7 }
  0x39   :  { %p4578_p8 = por %p4577_p7, %p4576_p6 }
  0x3b   :  { %p4579_p9 = pnand %p4578_p8, %p4572_p5 }
  0x3d   :  { %4582 = shalt.err (!%p4579_p9)
}
  0x3e   :  { %104 = dma.hbm_to_vmem [thread:$0]  %s5745_s12, 16, %s102_s27, [#allocation12]  }
  0x3f   :  { %s4583_s26 = scalar_lea.hbm %s5748_s15, 16 }
  0x40   :  { %p4584_p10 = scmp.ne.s32.totalorder %s5748_s15, %s4583_s26  ;;  %p4587_p11 = scmp.lt.u32.totalorder %s4583_s26, %s5748_s15 }
  0x42   :  { %p4589_p12 = pnand %p4587_p11, %p4584_p10 }
  0x44   :  { %4592 = shalt.err (!%p4589_p12)
}
  0x45   :  { %s4593_s22 = scalar_lea.vmem %s126_s29, 16  ;;  %s4597_s2 = scalar_lea.vmem %s126_s29, 32 }
  0x46   :  { %p4594_p13 = scmp.ne.s32.totalorder %s126_s29, %s4593_s22  ;;  %p4598_p0 = scmp.lt.s32.totalorder %s126_s29, %s126_s29 }
  0x47   :  { %p4599_p1 = scmp.lt.s32.totalorder %s4597_s2, %s4593_s22 }
  0x49   :  { %p4600_p2 = por %p4599_p1, %p4598_p0 }
  0x4b   :  { %p4601_p3 = pnand %p4600_p2, %p4594_p13 }
  0x4d   :  { %4604 = shalt.err (!%p4601_p3)
}
  0x4e   :  { %128 = dma.hbm_to_vmem [thread:$0]  %s5748_s15, 16, %s126_s29, [#allocation15]  }
  0x4f   :  { %s4777_s23 = smov [#allocation2]   ;;  %s4778_s7 = smov [#allocation7]  }
  0x50   :  { %s39_s24 = sshll.u32 %s4777_s23, 4  ;;  %s63_s21 = sshll.u32 %s4778_s7, 4  ;;  %s40_s24 = int_to_ptr.vmem [resolvable:$true] %s39_s24  ;;  %s64_s21 = int_to_ptr.vmem [resolvable:$true] %s63_s21 }
  0x51   :  { %s5760_s4 = sld [smem:[#allocation28_spill]] }
  0x57   :  { %s4605_s30 = scalar_lea.hbm %s5760_s4, 128 }
  0x58   :  { %p4606_p4 = scmp.ne.s32.totalorder %s5760_s4, %s4605_s30  ;;  %p4609_p5 = scmp.lt.u32.totalorder %s4605_s30, %s5760_s4 }
  0x5a   :  { %p4611_p6 = pnand %p4609_p5, %p4606_p4 }
  0x5c   :  { %4614 = shalt.err (!%p4611_p6)
}
  0x5d   :  { %s4615_s15 = scalar_lea.vmem %s40_s24, 128  ;;  %p4620_p8 = scmp.lt.s32.totalorder %s40_s24, %s40_s24 }
  0x5e   :  { %p4616_p7 = scmp.ne.s32.totalorder %s40_s24, %s4615_s15  ;;  %p4621_p9 = scmp.lt.s32.totalorder %s4615_s15, %s4615_s15 }
  0x60   :  { %p4622_p10 = por %p4621_p9, %p4620_p8 }
  0x62   :  { %p4623_p11 = pnand %p4622_p10, %p4616_p7 }
  0x64   :  { %4626 = shalt.err (!%p4623_p11)
}
  0x65   :  { %42 = dma.hbm_to_vmem [thread:$0]  %s5760_s4, 128, %s40_s24, [#allocation3]  }
  0x66   :  { %s4627_s12 = scalar_lea.hbm %s5738_s5, 128 }
  0x67   :  { %p4628_p12 = scmp.ne.s32.totalorder %s5738_s5, %s4627_s12  ;;  %p4631_p13 = scmp.lt.u32.totalorder %s4627_s12, %s5738_s5 }
  0x69   :  { %p4633_p0 = pnand %p4631_p13, %p4628_p12 }
  0x6b   :  { %4636 = shalt.err (!%p4633_p0)
}
  0x6c   :  { %s4637_s3 = scalar_lea.vmem %s64_s21, 128  ;;  %p4642_p2 = scmp.lt.s32.totalorder %s64_s21, %s64_s21 }
  0x6d   :  { %p4638_p1 = scmp.ne.s32.totalorder %s64_s21, %s4637_s3  ;;  %p4643_p3 = scmp.lt.s32.totalorder %s4637_s3, %s4637_s3 }
  0x6f   :  { %p4644_p4 = por %p4643_p3, %p4642_p2 }
  0x71   :  { %p4645_p5 = pnand %p4644_p4, %p4638_p1 }
  0x73   :  { %4648 = shalt.err (!%p4645_p5)
}
  0x74   :  { %66 = dma.hbm_to_vmem [thread:$0]  %s5738_s5, 128, %s64_s21, [#allocation6]  }
  0x75   :  { %s4779_s30 = smov [#allocation10]   ;;  %s4780_s28 = smov [#allocation13]  }
  0x76   :  { %s85_s26 = sshll.u32 %s4779_s30, 4  ;;  %s112_s0 = sshll.u32 %s4780_s28, 4  ;;  %s86_s26 = int_to_ptr.vmem [resolvable:$true] %s85_s26  ;;  %s4963_s0 = int_to_ptr.vmem [resolvable:$true] %s112_s0 }
  0x77   :  { %s4649_s29 = scalar_lea.hbm %s5741_s8, 16 }
  0x78   :  { %p4650_p6 = scmp.ne.s32.totalorder %s5741_s8, %s4649_s29  ;;  %p4653_p7 = scmp.lt.u32.totalorder %s4649_s29, %s5741_s8 }
  0x7a   :  { %p4655_p8 = pnand %p4653_p7, %p4650_p6 }
  0x7c   :  { %4658 = shalt.err (!%p4655_p8)
}
  0x7d   :  { %s4659_s5 = scalar_lea.vmem %s86_s26, 16  ;;  %s4663_s21 = scalar_lea.vmem %s86_s26, 32 }
  0x7e   :  { %p4660_p9 = scmp.ne.s32.totalorder %s86_s26, %s4659_s5  ;;  %p4664_p10 = scmp.lt.s32.totalorder %s86_s26, %s86_s26 }
  0x7f   :  { %p4665_p11 = scmp.lt.s32.totalorder %s4663_s21, %s4659_s5 }
  0x81   :  { %p4666_p12 = por %p4665_p11, %p4664_p10 }
  0x83   :  { %p4667_p13 = pnand %p4666_p12, %p4660_p9 }
  0x85   :  { %4670 = shalt.err (!%p4667_p13)
}
  0x86   :  { %88 = dma.hbm_to_vmem [thread:$0]  %s5741_s8, 16, %s86_s26, [#allocation9]  }
  0x87   :  { %s4671_s3 = scalar_lea.hbm %s5747_s14, 512 }
  0x88   :  { %p4672_p0 = scmp.ne.s32.totalorder %s5747_s14, %s4671_s3  ;;  %p4675_p1 = scmp.lt.u32.totalorder %s4671_s3, %s5747_s14 }
  0x8a   :  { %p4677_p2 = pnand %p4675_p1, %p4672_p0 }
  0x8c   :  { %4680 = shalt.err (!%p4677_p2)
}
  0x8d   :  { %s4681_s20 = scalar_lea.vmem %s4963_s0, 512  ;;  %p4686_p4 = scmp.lt.s32.totalorder %s4963_s0, %s4963_s0 }
  0x8e   :  { %p4682_p3 = scmp.ne.s32.totalorder %s4963_s0, %s4681_s20  ;;  %p4687_p5 = scmp.lt.s32.totalorder %s4681_s20, %s4681_s20 }
  0x90   :  { %p4688_p6 = por %p4687_p5, %p4686_p4 }
  0x92   :  { %p4689_p7 = pnand %p4688_p6, %p4682_p3 }
  0x94   :  { %4692 = shalt.err (!%p4689_p7)
}
  0x95   :  { %s4781_s8 = smov 128   ;;  %s4782_s26 = smov 8  }
  0x96   :  { %118 = dma.hbm_to_vmem [thread:$0]  %s5747_s14, 512, %s4963_s0, [#allocation12], %s4781_s8, %s4781_s8, %s4782_s26  }
  0x97   :  { %s4783_s1 = smov [#allocation16]   ;;  %s4784_s2 = smov [#allocation17]  }
  0x98   :  { %s135_s22 = sshll.u32 %s4783_s1, 4  ;;  %s147_s12 = sshll.u32 %s4784_s2, 4  ;;  %s136_s22 = int_to_ptr.vmem [resolvable:$true] %s135_s22  ;;  %s148_s12 = int_to_ptr.vmem [resolvable:$true] %s147_s12 }
  0x99   :  { %s4693_s27 = scalar_lea.hbm %s5749_s16, 16 }
  0x9a   :  { %p4694_p8 = scmp.ne.s32.totalorder %s5749_s16, %s4693_s27  ;;  %p4697_p9 = scmp.lt.u32.totalorder %s4693_s27, %s5749_s16 }
  0x9c   :  { %p4699_p10 = pnand %p4697_p9, %p4694_p8 }
  0x9e   :  { %4702 = shalt.err (!%p4699_p10)
}
  0x9f   :  { %s4703_s14 = scalar_lea.vmem %s136_s22, 16  ;;  %s4707_s0 = scalar_lea.vmem %s136_s22, 32 }
  0xa0   :  { %p4704_p11 = scmp.ne.s32.totalorder %s136_s22, %s4703_s14  ;;  %p4708_p12 = scmp.lt.s32.totalorder %s136_s22, %s136_s22 }
  0xa1   :  { %p4709_p13 = scmp.lt.s32.totalorder %s4707_s0, %s4703_s14 }
  0xa3   :  { %p4710_p0 = por %p4709_p13, %p4708_p12 }
  0xa5   :  { %p4711_p1 = pnand %p4710_p0, %p4704_p11 }
  0xa7   :  { %4714 = shalt.err (!%p4711_p1)
}
  0xa8   :  { %138 = dma.hbm_to_vmem [thread:$0]  %s5749_s16, 16, %s136_s22, [#allocation15]  }
  0xa9   :  { %s4715_s20 = scalar_lea.hbm %s5751_s18, 16 }
  0xaa   :  { %p4716_p2 = scmp.ne.s32.totalorder %s5751_s18, %s4715_s20  ;;  %p4719_p3 = scmp.lt.u32.totalorder %s4715_s20, %s5751_s18 }
  0xac   :  { %p4721_p4 = pnand %p4719_p3, %p4716_p2 }
  0xae   :  { %4724 = shalt.err (!%p4721_p4)
}
  0xaf   :  { %s4725_s1 = scalar_lea.vmem %s148_s12, 16  ;;  %s4729_s2 = scalar_lea.vmem %s148_s12, 32 }
  0xb0   :  { %p4726_p5 = scmp.ne.s32.totalorder %s148_s12, %s4725_s1  ;;  %p4730_p6 = scmp.lt.s32.totalorder %s148_s12, %s148_s12 }
  0xb1   :  { %p4731_p7 = scmp.lt.s32.totalorder %s4729_s2, %s4725_s1 }
  0xb3   :  { %p4732_p8 = por %p4731_p7, %p4730_p6 }
  0xb5   :  { %p4733_p9 = pnand %p4732_p8, %p4726_p5 }
  0xb7   :  { %4736 = shalt.err (!%p4733_p9)
}
  0xb8   :  { %150 = dma.hbm_to_vmem [thread:$0]  %s5751_s18, 16, %s148_s12, [#allocation18]  }
  0xb9   :  { %4759 = dma.done.wait [#allocation3], 128  }
  0xba   :  { %4760 = vsyncadd [#allocation3], 4294967168 }
  0xbb   :  { %4761 = dma.done.wait [#allocation6], 144  }
  0xbc   :  { %4762 = vsyncadd [#allocation6], 4294967152 }
  0xbd   :  { %4763 = dma.done.wait [#allocation9], 32  }
  0xbe   :  { %4764 = vsyncadd [#allocation9], 4294967264 }
  0xbf   :  { %4765 = dma.done.wait [#allocation12], 528  }
  0xc0   :  { %4766 = vsyncadd [#allocation12], 4294966768 }
  0xc1   :  { %4767 = dma.done.wait [#allocation15], 32  }
  0xc2   :  { %4768 = vsyncadd [#allocation15], 4294967264 }
  0xc3   :  { %4769 = dma.done.wait [#allocation18], 16  }
  0xc4   :  { %4770 = vsyncadd [#allocation18], 4294967280  ;;  %vm197_vm0 = vcmask 64512   ;;  %v189_v0 = vld [vmem:[#allocation2] sm:$0xff]  ;;  %s5761_s27 = sld [smem:[#allocation27_spill]]  ;;  %s5762_s25 = sld [smem:[#allocation29_spill]] }
  0xc5   :  { %3779 = vmatprep.subr.mxu0 %v189_v0  ;;  %v4785_v7 = vmov 0.0|0.0   ;;  %vm4786_vm1 = vmmov 0   ;;  %v4787_v16 = vmov 0.0   ;;  %s5763_s12 = sld [smem:[#allocation30_spill]]  ;;  %v5119_v33 = vld [vmem:[#allocation5] ss:$0 sm:$0xff] }
  0xc6   :  { %3780 = vmatpush3.msra.mxu0 %v189_v0  ;;  %s4788_s7 = smov 64   ;;  %v327_v47 = vld [vmem:[#allocation7] sm:$0xff]  ;;  %v5147_v54 = vld [vmem:[#allocation8] ss:$0 sm:$0xff]  ;;  %vm451_vm2 = vcmask 261120   ;;  %vm3484_vm3 = vcmask 58368  }
  0xc7   :  { %4155 = vmatprep.subr.bf16.mxu0 %v4785_v7  ;;  %3793 = vmatprep.subr.mxu1 %v327_v47 }
  0xc8   :  { %3794 = vmatpush3.msra.mxu1 %v327_v47 }
  0xc9   :  { %4161 = vmatprep.subr.bf16.mxu1 %v4785_v7 }
  0xca   :  { %v181_v1 = vld [vmem:[%s5761_s27] sm:$0xff]  ;;  %v5024_v2 = vld [vmem:[%s5761_s27 + $0x8] sm:$0xff]  ;;  %v5036_v5 = vld [vmem:[%s5761_s27 + $0x10] sm:$0xff] }
  0xcb   :  { %3781 = vmatprep.mubr.msk.f32.mxu0 %vm197_vm0, %v181_v1  ;;  %v440_v3 = vld [vmem:[%s5762_s25] sm:$0xff]  ;;  %v441_v4 = vld [vmem:[%s5762_s25 + $0x8] sm:$0xff]  ;;  %3795 = vmatprep.mubr.msk.f32.mxu1 %vm197_vm0, %v181_v1  ;;  %v442_v8 = vld [vmem:[%s5762_s25 + $0x10] sm:$0xff] }
  0xcc   :  { %v5038_v6 = vpack.c.bf16 %v441_v4, %v440_v3  ;;  %3782 = vmatmul.mubr.msk.f32.vlgmr.msra.gmra.mrb[0].mxu0 %vm197_vm0, %v5024_v2  ;;  %v443_v9 = vld [vmem:[%s5762_s25 + $0x18] sm:$0xff]  ;;  %v5063_v12 = vld [vmem:[%s5761_s27 + $0x20] sm:$0xff]  ;;  %v5073_v13 = vld [vmem:[%s5761_s27 + $0x28] sm:$0xff]  ;;  %3796 = vmatmul.mubr.msk.f32.vlgmr.msra.gmra.mrb[0].mxu1 %vm197_vm0, %v5024_v2  ;;  %s4789_s25 = smov 96  }
  0xcd   :  { %3784 = vmatprep.mubr.msk.f32.mxu0 %vm197_vm0, %v5036_v5  ;;  %v5056_v10 = vld [vmem:[%s5761_s27 + $0x18] sm:$0xff]  ;;  %v5058_v11 = vpack.c.bf16 %v443_v9, %v442_v8  ;;  %v5079_v14 = vld [vmem:[%s5761_s27 + $0x30] sm:$0xff]  ;;  %v3506_v17 = vld [vmem:[%s5763_s12] ss:$0 sm:$0xff]  ;;  %3798 = vmatprep.mubr.msk.f32.mxu1 %vm197_vm0, %v5036_v5 }
  0xce   :  { %4157 = vmatpush3.bf16.msra.mxu0 %v5038_v6  ;;  %v5089_v15 = vld [vmem:[%s5761_s27 + $0x38] sm:$0xff]  ;;  %4163 = vmatpush3.bf16.msra.mxu1 %v5038_v6 }
  0xcf   :  { %4158 = vmatprep.subr.bf16.mxu0 %v4785_v7  ;;  %4164 = vmatprep.subr.bf16.mxu1 %v4785_v7 }
  0xd0   :  { %3785 = vmatmul.mubr.msk.f32.gmra.mrb[2].mxu0 %vm197_vm0, %v5056_v10  ;;  %3799 = vmatmul.mubr.msk.f32.gmra.mrb[2].mxu1 %vm197_vm0, %v5056_v10 }
  0xd1   :  { %3787 = vmatprep.mubr.msk.f32.mxu0 %vm197_vm0, %v5063_v12  ;;  %3801 = vmatprep.mubr.msk.f32.mxu1 %vm197_vm0, %v5063_v12 }
  0xd2   :  { %4160 = vmatpush3.bf16.msra.mxu0 %v5058_v11  ;;  %4166 = vmatpush3.bf16.msra.mxu1 %v5058_v11 }
  0xd3   :  { %4167 = vmatprep.subr.bf16.mxu0 %v4785_v7  ;;  %4173 = vmatprep.subr.bf16.mxu1 %v4785_v7 }
  0xd4   :  { %3788 = vmatmul.mubr.msk.f32.gmra.mrb[4].mxu0 %vm197_vm0, %v5073_v13  ;;  %3802 = vmatmul.mubr.msk.f32.gmra.mrb[4].mxu1 %vm197_vm0, %v5073_v13 }
  0xd5   :  { %3790 = vmatprep.mubr.msk.f32.mxu0 %vm197_vm0, %v5079_v14  ;;  %3804 = vmatprep.mubr.msk.f32.mxu1 %vm197_vm0, %v5079_v14 }
  0xd8   :  { %3791 = vmatmul.mubr.msk.f32.gmra.mrb[6].mxu0 %vm197_vm0, %v5089_v15  ;;  %3805 = vmatmul.mubr.msk.f32.gmra.mrb[6].mxu1 %vm197_vm0, %v5089_v15 }
  0xd9   :  { %3815 = vmatprep.mubr.msk.f32.mxu0 %vm4786_vm1, %v4787_v16  ;;  %3826 = vmatprep.mubr.msk.f32.mxu1 %vm4786_vm1, %v4787_v16 }
  0xdc   :  { %3816 = vmatmul.mubr.f32.vlgmr.msra.gmra.mrb[8].mxu0 %v4787_v16 }
  0xdd   :  { %4169 = vmatpush3.bf16.msra.mxu0 %v5038_v6  ;;  %3837 = vmatprep.mubr.msk.f32.mxu0 %vm4786_vm1, %v4787_v16 }
  0xde   :  { %4170 = vmatprep.subr.bf16.mxu0 %v4785_v7 }
  0xe1   :  { %4172 = vmatpush3.bf16.msra.mxu0 %v5058_v11 }
  0xe2   :  { %4179 = vmatprep.subr.bf16.mxu0 %v4785_v7 }
 0x19f   :  { %v3783_v18 = vpop.f32.mrb[0].mxu0  ;;  %v3797_v55 = vpop.f32.mrb[0].mxu1 }
 0x1a0   :  { %v5105_v19 = vadd.f32 %v3783_v18, %v3506_v17  ;;  %v288_v20 = vpop.f32.mrb[1].mxu0  ;;  %v5150_v56 = vadd.f32 %v3797_v55, %v5147_v54  ;;  %v401_v57 = vpop.f32.mrb[1].mxu1 }
 0x1a1   :  { %v289_v37 = vadd.f32 %v3506_v17, %v288_v20  ;;  %v5153_v58 = vadd.f32 %v5147_v54, %v401_v57 }
 0x1a3   :  { %v3786_v21 = vpop.f32.mrb[2].mxu0  ;;  %v3800_v59 = vpop.f32.mrb[2].mxu1 }
 0x1a4   :  { %v5107_v22 = vadd.f32 %v3786_v21, %v3506_v17  ;;  %v298_v23 = vpop.f32.mrb[3].mxu0  ;;  %v5156_v60 = vadd.f32 %v3800_v59, %v5147_v54  ;;  %v411_v61 = vpop.f32.mrb[3].mxu1 }
 0x1a5   :  { %v5109_v24 = vadd.f32 %v3506_v17, %v298_v23  ;;  %v5159_v62 = vadd.f32 %v5147_v54, %v411_v61 }
 0x1a7   :  { %v3789_v25 = vpop.f32.mrb[4].mxu0  ;;  %v3803_v63 = vpop.f32.mrb[4].mxu1 }
 0x1a8   :  { %v5111_v26 = vadd.f32 %v3789_v25, %v3506_v17  ;;  %v308_v27 = vpop.f32.mrb[5].mxu0  ;;  %v5162_v0 = vadd.f32 %v3803_v63, %v5147_v54  ;;  %v421_v1 = vpop.f32.mrb[5].mxu1 }
 0x1a9   :  { %v5113_v28 = vadd.f32 %v3506_v17, %v308_v27  ;;  %v5165_v2 = vadd.f32 %v5147_v54, %v421_v1 }
 0x1ab   :  { %v3792_v29 = vpop.f32.mrb[6].mxu0  ;;  %v5167_v3 = vpop.f32.mrb[6].mxu1 }
 0x1ac   :  { %v5115_v30 = vadd.f32 %v3792_v29, %v3506_v17  ;;  %v318_v31 = vpop.f32.mrb[7].mxu0  ;;  %v431_v4 = vpop.f32.mrb[7].mxu1 }
 0x1ad   :  { %v5117_v32 = vadd.f32 %v3506_v17, %v318_v31  ;;  %v5170_v5 = vadd.f32 %v5147_v54, %v431_v4 }
 0x1af   :  { %v521_v34 = vpop.f32.mrb[8].mxu0 }
 0x1b0   :  { %v522_v35 = vadd.f32 %v5119_v33, %v521_v34  ;;  %v3817_v36 = vpop.f32.mrb[9].mxu0 }
 0x1b2   :  { %533 = vrot.lane.b32.xlu0 %v522_v35, %s4788_s7  ;;  %v525_v38 = vadd.f32 %v522_v35, %v289_v37 }
 0x1b4   :  { %v3525_v39 = vmul.f32 -1.442695, %v525_v38 }
 0x1b6   :  { %4365 = vpow2.f32 %v3525_v39 }
 0x1c0   :  { %v4366_v40 = vpop.eup %4365 }
 0x1c1   :  { %v529_v41 = vadd.f32 1.0, %v4366_v40 }
 0x1c3   :  { %4367 = vrcp.f32 %v529_v41 }
 0x1cd   :  { %v4368_v42 = vpop.eup %4367 }
 0x1ce   :  { %v543_v49 = vsub.f32 1.0, %v4368_v42  ;;  %v549_v51 = vmul.f32 0.0, %v4368_v42 }
 0x224   :  { %v534_v43 = vpop.permute.xlu0 %533 }
 0x225   :  { %v536_v44 = vmul.f32 %v4368_v42, %v534_v43 }
 0x227   :  { %538 = vrot.lane.b32.xlu0 %v536_v44, %s4788_s7 }
 0x299   :  { %v539_v45 = vpop.permute.xlu0 %538 }
 0x29a   :  { %v541_v46 = vadd.f32 %v539_v45, %v289_v37 }
 0x29c   :  { %4369 = vtanh.f32 %v541_v46 }
 0x2a6   :  { %v4370_v48 = vpop.eup %4369 }
 0x2a7   :  { %545 = vrot.lane.b32.xlu1 %v4370_v48, %s4789_s25 }
 0x319   :  { %v546_v50 = vpop.permute.xlu1 %545 }
 0x31a   :  { %v548_v52 = vmul.f32 %v546_v50, %v543_v49 }
 0x31c   :  { %v550_v53 = vadd.f32 %v549_v51, %v548_v52 }
 0x31e   :  { %552 = vrot.lane.b32.xlu1 %v550_v53, %s4789_s25 }
 0x390   :  { %v5172_v8 = vpop.permute.xlu1 %552 }
 0x391   :  { %3827 = vmatmul.mubr.msk.f32.vlgmr.msra.gmra.mrb[8].mxu1 %vm451_vm2, %v5172_v8 }
 0x392   :  { %4175 = vmatpush3.bf16.msra.mxu1 %v5038_v6  ;;  %3848 = vmatprep.mubr.msk.f32.mxu1 %vm4786_vm1, %v4787_v16 }
 0x393   :  { %4176 = vmatprep.subr.bf16.mxu1 %v4785_v7 }
 0x396   :  { %4178 = vmatpush3.bf16.msra.mxu1 %v5058_v11 }
 0x397   :  { %4185 = vmatprep.subr.bf16.mxu1 %v4785_v7 }
 0x464   :  { %v622_v9 = vpop.f32.mrb[8].mxu1 }
 0x465   :  { %v623_v10 = vadd.f32 %v5119_v33, %v622_v9  ;;  %v3828_v12 = vpop.f32.mrb[9].mxu1 }
 0x467   :  { %634 = vrot.lane.b32.xlu0 %v623_v10, %s4788_s7  ;;  %v626_v13 = vadd.f32 %v623_v10, %v5105_v19 }
 0x469   :  { %v3527_v14 = vmul.f32 -1.442695, %v626_v13 }
 0x46b   :  { %4371 = vpow2.f32 %v3527_v14 }
 0x475   :  { %v4372_v15 = vpop.eup %4371 }
 0x476   :  { %v630_v17 = vadd.f32 1.0, %v4372_v15 }
 0x478   :  { %4373 = vrcp.f32 %v630_v17 }
 0x482   :  { %v4374_v18 = vpop.eup %4373 }
 0x483   :  { %v644_v29 = vsub.f32 1.0, %v4374_v18  ;;  %v650_v34 = vmul.f32 %v4374_v18, %v550_v53 }
 0x4d9   :  { %v635_v20 = vpop.permute.xlu0 %634 }
 0x4da   :  { %v637_v21 = vmul.f32 %v4374_v18, %v635_v20 }
 0x4dc   :  { %639 = vrot.lane.b32.xlu1 %v637_v21, %s4788_s7 }
 0x54e   :  { %v640_v23 = vpop.permute.xlu1 %639 }
 0x54f   :  { %v642_v25 = vadd.f32 %v640_v23, %v5105_v19 }
 0x551   :  { %4375 = vtanh.f32 %v642_v25 }
 0x55b   :  { %v4376_v27 = vpop.eup %4375 }
 0x55c   :  { %646 = vrot.lane.b32.xlu0 %v4376_v27, %s4789_s25 }
 0x5ce   :  { %v647_v31 = vpop.permute.xlu0 %646 }
 0x5cf   :  { %v649_v35 = vmul.f32 %v647_v31, %v644_v29 }
 0x5d1   :  { %v651_v36 = vadd.f32 %v650_v34, %v649_v35 }
 0x5d3   :  { %653 = vrot.lane.b32.xlu1 %v651_v36, %s4789_s25 }
 0x645   :  { %v5189_v37 = vpop.permute.xlu1 %653 }
 0x646   :  { %3838 = vmatmul.mubr.msk.f32.vlgmr.msra.gmra.mrb[10].mxu0 %vm451_vm2, %v5189_v37 }
 0x647   :  { %4181 = vmatpush3.bf16.msra.mxu0 %v5038_v6  ;;  %3859 = vmatprep.mubr.msk.f32.mxu0 %vm4786_vm1, %v4787_v16 }
 0x648   :  { %4182 = vmatprep.subr.bf16.mxu0 %v4785_v7 }
 0x64b   :  { %4184 = vmatpush3.bf16.msra.mxu0 %v5058_v11 }
 0x64c   :  { %4191 = vmatprep.subr.bf16.mxu0 %v4785_v7 }
 0x719   :  { %v723_v19 = vpop.f32.mrb[10].mxu0 }
 0x71a   :  { %v724_v38 = vadd.f32 %v5119_v33, %v723_v19  ;;  %v3839_v39 = vpop.f32.mrb[11].mxu0 }
 0x71c   :  { %735 = vrot.lane.b32.xlu0 %v724_v38, %s4788_s7  ;;  %v727_v40 = vadd.f32 %v724_v38, %v5109_v24 }
 0x71e   :  { %v3529_v41 = vmul.f32 -1.442695, %v727_v40 }
 0x720   :  { %4377 = vpow2.f32 %v3529_v41 }
 0x72a   :  { %v4378_v42 = vpop.eup %4377 }
 0x72b   :  { %v731_v43 = vadd.f32 1.0, %v4378_v42 }
 0x72d   :  { %4379 = vrcp.f32 %v731_v43 }
 0x737   :  { %v4380_v44 = vpop.eup %4379 }
 0x738   :  { %v745_v50 = vsub.f32 1.0, %v4380_v44  ;;  %v751_v52 = vmul.f32 %v4380_v44, %v651_v36 }
 0x78e   :  { %v736_v45 = vpop.permute.xlu0 %735 }
 0x78f   :  { %v738_v46 = vmul.f32 %v4380_v44, %v736_v45 }
 0x791   :  { %740 = vrot.lane.b32.xlu1 %v738_v46, %s4788_s7 }
 0x803   :  { %v741_v47 = vpop.permute.xlu1 %740 }
 0x804   :  { %v743_v48 = vadd.f32 %v741_v47, %v5109_v24 }
 0x806   :  { %4381 = vtanh.f32 %v743_v48 }
 0x810   :  { %v4382_v49 = vpop.eup %4381 }
 0x811   :  { %747 = vrot.lane.b32.xlu0 %v4382_v49, %s4789_s25 }
 0x883   :  { %v748_v51 = vpop.permute.xlu0 %747 }
 0x884   :  { %v750_v53 = vmul.f32 %v748_v51, %v745_v50 }
 0x886   :  { %v752_v55 = vadd.f32 %v751_v52, %v750_v53 }
 0x888   :  { %754 = vrot.lane.b32.xlu1 %v752_v55, %s4789_s25 }
 0x8fa   :  { %v5206_v57 = vpop.permute.xlu1 %754 }
 0x8fb   :  { %3849 = vmatmul.mubr.msk.f32.vlgmr.msra.gmra.mrb[10].mxu1 %vm451_vm2, %v5206_v57 }
 0x8fc   :  { %4187 = vmatpush3.bf16.msra.mxu1 %v5038_v6  ;;  %3870 = vmatprep.mubr.msk.f32.mxu1 %vm4786_vm1, %v4787_v16 }
 0x8fd   :  { %4188 = vmatprep.subr.bf16.mxu1 %v4785_v7 }
 0x900   :  { %4190 = vmatpush3.bf16.msra.mxu1 %v5058_v11 }
 0x901   :  { %4197 = vmatprep.subr.bf16.mxu1 %v4785_v7 }
 0x9ce   :  { %v824_v24 = vpop.f32.mrb[10].mxu1 }
 0x9cf   :  { %v825_v59 = vadd.f32 %v5119_v33, %v824_v24  ;;  %v3850_v61 = vpop.f32.mrb[11].mxu1 }
 0x9d1   :  { %836 = vrot.lane.b32.xlu0 %v825_v59, %s4788_s7  ;;  %v828_v63 = vadd.f32 %v825_v59, %v5107_v22 }
 0x9d3   :  { %v3531_v1 = vmul.f32 -1.442695, %v828_v63 }
 0x9d5   :  { %4383 = vpow2.f32 %v3531_v1 }
 0x9df   :  { %v4384_v4 = vpop.eup %4383 }
 0x9e0   :  { %v832_v9 = vadd.f32 1.0, %v4384_v4 }
 0x9e2   :  { %4385 = vrcp.f32 %v832_v9 }
 0x9ec   :  { %v4386_v10 = vpop.eup %4385 }
 0x9ed   :  { %v846_v18 = vsub.f32 1.0, %v4386_v10  ;;  %v852_v21 = vmul.f32 %v4386_v10, %v752_v55 }
 0xa43   :  { %v837_v12 = vpop.permute.xlu0 %836 }
 0xa44   :  { %v839_v13 = vmul.f32 %v4386_v10, %v837_v12 }
 0xa46   :  { %841 = vrot.lane.b32.xlu1 %v839_v13, %s4788_s7 }
 0xab8   :  { %v842_v14 = vpop.permute.xlu1 %841 }
 0xab9   :  { %v844_v15 = vadd.f32 %v842_v14, %v5107_v22  ;;  %v1258_v14 = vld [vmem:[%s5739_s6] sm:$0xff] }
 0xabb   :  { %4387 = vtanh.f32 %v844_v15 }
 0xac5   :  { %v4388_v17 = vpop.eup %4387 }
 0xac6   :  { %848 = vrot.lane.b32.xlu0 %v4388_v17, %s4789_s25  ;;  %v1260_v17 = vld [vmem:[%s5739_s6 + $0x10] sm:$0xff] }
 0xb38   :  { %v849_v20 = vpop.permute.xlu0 %848 }
 0xb39   :  { %v851_v23 = vmul.f32 %v849_v20, %v846_v18  ;;  %v1261_v18 = vld [vmem:[%s5739_s6 + $0x18] sm:$0xff] }
 0xb3b   :  { %v853_v25 = vadd.f32 %v852_v21, %v851_v23  ;;  %v5279_v21 = vpack.c.bf16 %v1261_v18, %v1260_v17 }
 0xb3d   :  { %855 = vrot.lane.b32.xlu1 %v853_v25, %s4789_s25 }
 0xbaf   :  { %v5223_v27 = vpop.permute.xlu1 %855 }
 0xbb0   :  { %3860 = vmatmul.mubr.msk.f32.vlgmr.msra.gmra.mrb[12].mxu0 %vm451_vm2, %v5223_v27 }
 0xbb1   :  { %4193 = vmatpush3.bf16.msra.mxu0 %v5038_v6  ;;  %3881 = vmatprep.mubr.msk.f32.mxu0 %vm4786_vm1, %v4787_v16 }
 0xbb2   :  { %4194 = vmatprep.subr.bf16.mxu0 %v4785_v7 }
 0xbb5   :  { %4196 = vmatpush3.bf16.msra.mxu0 %v5058_v11 }
 0xbb6   :  { %4203 = vmatprep.subr.bf16.mxu0 %v4785_v7 }
 0xc83   :  { %v925_v22 = vpop.f32.mrb[12].mxu0 }
 0xc84   :  { %v926_v29 = vadd.f32 %v5119_v33, %v925_v22  ;;  %v3861_v31 = vpop.f32.mrb[13].mxu0 }
 0xc86   :  { %937 = vrot.lane.b32.xlu0 %v926_v29, %s4788_s7  ;;  %v929_v34 = vadd.f32 %v926_v29, %v5113_v28  ;;  %v5295_v29 = vld [vmem:[#allocation10] ss:$0 sm:$0xff] }
 0xc88   :  { %v3533_v35 = vmul.f32 -1.442695, %v929_v34 }
 0xc8a   :  { %4389 = vpow2.f32 %v3533_v35 }
 0xc94   :  { %v4390_v36 = vpop.eup %4389 }
 0xc95   :  { %v933_v19 = vadd.f32 1.0, %v4390_v36 }
 0xc97   :  { %4391 = vrcp.f32 %v933_v19 }
 0xca1   :  { %v4392_v38 = vpop.eup %4391 }
 0xca2   :  { %v947_v44 = vsub.f32 1.0, %v4392_v38  ;;  %v953_v46 = vmul.f32 %v4392_v38, %v853_v25 }
 0xcf8   :  { %v938_v39 = vpop.permute.xlu0 %937 }
 0xcf9   :  { %v940_v40 = vmul.f32 %v4392_v38, %v938_v39  ;;  %v437_v38 = vadd.f32 %v5167_v3, %v5147_v54 }
 0xcfb   :  { %942 = vrot.lane.b32.xlu1 %v940_v40, %s4788_s7 }
 0xd6d   :  { %v943_v41 = vpop.permute.xlu1 %942 }
 0xd6e   :  { %v945_v42 = vadd.f32 %v943_v41, %v5113_v28 }
 0xd70   :  { %4393 = vtanh.f32 %v945_v42 }
 0xd7a   :  { %v4394_v43 = vpop.eup %4393 }
 0xd7b   :  { %949 = vrot.lane.b32.xlu0 %v4394_v43, %s4789_s25 }
 0xded   :  { %v950_v45 = vpop.permute.xlu0 %949 }
 0xdee   :  { %v952_v47 = vmul.f32 %v950_v45, %v947_v44 }
 0xdf0   :  { %v954_v48 = vadd.f32 %v953_v46, %v952_v47 }
 0xdf2   :  { %956 = vrot.lane.b32.xlu1 %v954_v48, %s4789_s25 }
 0xe64   :  { %v5240_v49 = vpop.permute.xlu1 %956 }
 0xe65   :  { %3871 = vmatmul.mubr.msk.f32.vlgmr.msra.gmra.mrb[12].mxu1 %vm451_vm2, %v5240_v49 }
 0xe66   :  { %4199 = vmatpush3.bf16.msra.mxu1 %v5038_v6  ;;  %3892 = vmatprep.mubr.msk.f32.mxu1 %vm4786_vm1, %v4787_v16 }
 0xe67   :  { %4200 = vmatprep.subr.bf16.mxu1 %v4785_v7 }
 0xe6a   :  { %4202 = vmatpush3.bf16.msra.mxu1 %v5058_v11 }
 0xe6b   :  { %4209 = vmatprep.subr.bf16.mxu1 %v4785_v7 }
 0xf38   :  { %v1026_v28 = vpop.f32.mrb[12].mxu1 }
 0xf39   :  { %v1027_v50 = vadd.f32 %v5119_v33, %v1026_v28  ;;  %v3872_v51 = vpop.f32.mrb[13].mxu1 }
 0xf3b   :  { %1038 = vrot.lane.b32.xlu0 %v1027_v50, %s4788_s7  ;;  %v1030_v52 = vadd.f32 %v1027_v50, %v5111_v26 }
 0xf3d   :  { %v3535_v53 = vmul.f32 -1.442695, %v1030_v52 }
 0xf3f   :  { %4395 = vpow2.f32 %v3535_v53 }
 0xf49   :  { %v4396_v6 = vpop.eup %4395 }
 0xf4a   :  { %v1034_v55 = vadd.f32 1.0, %v4396_v6 }
 0xf4c   :  { %4397 = vrcp.f32 %v1034_v55 }
 0xf56   :  { %v4398_v24 = vpop.eup %4397 }
 0xf57   :  { %v1048_v4 = vsub.f32 1.0, %v4398_v24  ;;  %v1054_v10 = vmul.f32 %v4398_v24, %v954_v48 }
 0xfad   :  { %v1039_v59 = vpop.permute.xlu0 %1038 }
 0xfae   :  { %v1041_v61 = vmul.f32 %v4398_v24, %v1039_v59 }
 0xfb0   :  { %1043 = vrot.lane.b32.xlu1 %v1041_v61, %s4788_s7 }
0x1022   :  { %v1044_v11 = vpop.permute.xlu1 %1043 }
0x1023   :  { %v1046_v63 = vadd.f32 %v1044_v11, %v5111_v26  ;;  %v1259_v26 = vld [vmem:[%s5739_s6 + $0x8] sm:$0xff] }
0x1024   :  { %v5266_v15 = vpack.c.bf16 %v1259_v26, %v1258_v14 }
0x1025   :  { %4399 = vtanh.f32 %v1046_v63 }
0x102f   :  { %v4400_v1 = vpop.eup %4399 }
0x1030   :  { %1050 = vrot.lane.b32.xlu0 %v4400_v1, %s4789_s25 }
0x10a2   :  { %v1051_v9 = vpop.permute.xlu0 %1050 }
0x10a3   :  { %v1053_v12 = vmul.f32 %v1051_v9, %v1048_v4 }
0x10a5   :  { %v5256_v13 = vadd.f32 %v1054_v10, %v1053_v12 }
0x10a7   :  { %1057 = vrot.lane.b32.xlu1 %v5256_v13, %s4789_s25 }
0x1119   :  { %v5274_v20 = vpop.permute.xlu1 %1057 }
0x111a   :  { %3882 = vmatmul.mubr.msk.f32.vlgmr.msra.gmra.mrb[14].mxu0 %vm451_vm2, %v5274_v20 }
0x111b   :  { %4205 = vmatpush3.bf16.msra.mxu0 %v5266_v15  ;;  %3903 = vmatprep.mubr.msk.f32.mxu0 %vm4786_vm1, %v4787_v16 }
0x111c   :  { %4206 = vmatprep.subr.bf16.mxu0 %v4785_v7 }
0x111f   :  { %4208 = vmatpush3.bf16.msra.mxu0 %v5279_v21 }
0x1120   :  { %4215 = vmatprep.subr.bf16.mxu0 %v4785_v7 }
0x1122   :  { %3904 = vmatmul.mubr.f32.vlgmr.msra.gmra.mrb[16].mxu0 %v4787_v16 }
0x1123   :  { %4217 = vmatpush3.bf16.msra.mxu0 %v5266_v15  ;;  %3925 = vmatprep.mubr.msk.f32.mxu0 %vm4786_vm1, %v4787_v16 }
0x1124   :  { %4218 = vmatprep.subr.bf16.mxu0 %v4785_v7 }
0x1127   :  { %4220 = vmatpush3.bf16.msra.mxu0 %v5279_v21 }
0x1128   :  { %4227 = vmatprep.subr.bf16.mxu0 %v4785_v7 }
0x11ed   :  { %v1127_v23 = vpop.f32.mrb[14].mxu0 }
0x11ee   :  { %v1128_v25 = vadd.f32 %v5119_v33, %v1127_v23  ;;  %v3883_v22 = vpop.f32.mrb[15].mxu0 }
0x11f0   :  { %1139 = vrot.lane.b32.xlu0 %v1128_v25, %s4788_s7  ;;  %v1131_v36 = vadd.f32 %v1128_v25, %v5117_v32 }
0x11f2   :  { %v3537_v19 = vmul.f32 -1.442695, %v1131_v36 }
0x11f4   :  { %4401 = vpow2.f32 %v3537_v19 }
0x11f5   :  { %v1335_v31 = vpop.f32.mrb[16].mxu0 }
0x11f6   :  { %v1336_v34 = vadd.f32 %v5295_v29, %v1335_v31  ;;  %v3905_v35 = vpop.f32.mrb[17].mxu0 }
0x11f8   :  { %1347 = vrot.lane.b32.xlu1 %v1336_v34, %s4788_s7  ;;  %v1339_v39 = vadd.f32 %v1336_v34, %v437_v38 }
0x11fa   :  { %v3541_v33 = vmul.f32 -1.442695, %v1339_v39 }
0x11fc   :  { %4403 = vpow2.f32 %v3541_v33 }
0x11fe   :  { %v4402_v40 = vpop.eup %4401 }
0x11ff   :  { %v1135_v41 = vadd.f32 1.0, %v4402_v40 }
0x1201   :  { %4405 = vrcp.f32 %v1135_v41 }
0x1206   :  { %v4404_v42 = vpop.eup %4403 }
0x1207   :  { %v1343_v43 = vadd.f32 1.0, %v4404_v42 }
0x1209   :  { %4407 = vrcp.f32 %v1343_v43 }
0x120b   :  { %v4406_v44 = vpop.eup %4405 }
0x120c   :  { %v1149_v6 = vsub.f32 1.0, %v4406_v44  ;;  %v1155_v24 = vmul.f32 %v4406_v44, %v5256_v13 }
0x1213   :  { %v4408_v47 = vpop.eup %4407 }
0x1214   :  { %v1363_v63 = vmul.f32 0.0, %v4408_v47 }
0x1262   :  { %v1140_v45 = vpop.permute.xlu0 %1139 }
0x1263   :  { %v1142_v46 = vmul.f32 %v4406_v44, %v1140_v45 }
0x1265   :  { %1144 = vrot.lane.b32.xlu0 %v1142_v46, %s4788_s7 }
0x126a   :  { %v1348_v48 = vpop.permute.xlu1 %1347 }
0x126b   :  { %v1350_v28 = vmul.f32 %v4408_v47, %v1348_v48 }
0x126d   :  { %1352 = vrot.lane.b32.xlu1 %v1350_v28, %s4788_s7 }
0x12d7   :  { %v1145_v54 = vpop.permute.xlu0 %1144 }
0x12d8   :  { %v1147_v3 = vadd.f32 %v1145_v54, %v5117_v32  ;;  %v1357_v32 = vsub.f32 1.0, %v4408_v47 }
0x12da   :  { %4409 = vtanh.f32 %v1147_v3 }
0x12df   :  { %v1353_v50 = vpop.permute.xlu1 %1352 }
0x12e0   :  { %v1355_v51 = vadd.f32 %v1353_v50, %v437_v38 }
0x12e2   :  { %4411 = vtanh.f32 %v1355_v51 }
0x12e4   :  { %v4410_v52 = vpop.eup %4409 }
0x12e5   :  { %1151 = vrot.lane.b32.xlu0 %v4410_v52, %s4789_s25 }
0x12ec   :  { %v4412_v53 = vpop.eup %4411 }
0x12ed   :  { %1359 = vrot.lane.b32.xlu1 %v4412_v53, %s4789_s25 }
0x1357   :  { %v1152_v55 = vpop.permute.xlu0 %1151 }
0x1358   :  { %v1154_v59 = vmul.f32 %v1152_v55, %v1149_v6 }
0x135a   :  { %v5308_v61 = vadd.f32 %v1155_v24, %v1154_v59 }
0x135c   :  { %1158 = vrot.lane.b32.xlu0 %v5308_v61, %s4789_s25 }
0x135f   :  { %v1360_v11 = vpop.permute.xlu1 %1359 }
0x1360   :  { %v1362_v1 = vmul.f32 %v1360_v11, %v1357_v32 }
0x1362   :  { %v1364_v4 = vadd.f32 %v1363_v63, %v1362_v1 }
0x1364   :  { %1366 = vrot.lane.b32.xlu1 %v1364_v4, %s4789_s25 }
0x13ce   :  { %v5313_v9 = vpop.permute.xlu0 %1158 }
0x13cf   :  { %3893 = vmatmul.mubr.msk.f32.vlgmr.msra.gmra.mrb[14].mxu1 %vm451_vm2, %v5313_v9 }
0x13d0   :  { %4211 = vmatpush3.bf16.msra.mxu1 %v5266_v15  ;;  %3914 = vmatprep.mubr.msk.f32.mxu1 %vm4786_vm1, %v4787_v16 }
0x13d1   :  { %4212 = vmatprep.subr.bf16.mxu1 %v4785_v7 }
0x13d4   :  { %4214 = vmatpush3.bf16.msra.mxu1 %v5279_v21 }
0x13d5   :  { %4221 = vmatprep.subr.bf16.mxu1 %v4785_v7 }
0x13d6   :  { %v5323_v10 = vpop.permute.xlu1 %1366 }
0x13d7   :  { %3915 = vmatmul.mubr.msk.f32.vlgmr.msra.gmra.mrb[16].mxu1 %vm451_vm2, %v5323_v10 }
0x13d8   :  { %4223 = vmatpush3.bf16.msra.mxu1 %v5266_v15  ;;  %3936 = vmatprep.mubr.msk.f32.mxu1 %vm4786_vm1, %v4787_v16 }
0x13d9   :  { %4224 = vmatprep.subr.bf16.mxu1 %v4785_v7 }
0x13dc   :  { %4226 = vmatpush3.bf16.msra.mxu1 %v5279_v21 }
0x13dd   :  { %4233 = vmatprep.subr.bf16.mxu1 %v4785_v7 }
0x14a2   :  { %v5333_v12 = vpop.f32.mrb[14].mxu1 }
0x14a3   :  { %v3894_v13 = vpop.f32.mrb[15].mxu1 }
0x14aa   :  { %v1436_v14 = vpop.f32.mrb[16].mxu1 }
0x14ab   :  { %v1437_v26 = vadd.f32 %v5295_v29, %v1436_v14  ;;  %v3916_v17 = vpop.f32.mrb[17].mxu1 }
0x14ad   :  { %1448 = vrot.lane.b32.xlu0 %v1437_v26, %s4788_s7  ;;  %v1440_v18 = vadd.f32 %v1437_v26, %v5170_v5 }
0x14af   :  { %v3543_v23 = vmul.f32 -1.442695, %v1440_v18 }
0x14b1   :  { %4413 = vpow2.f32 %v3543_v23 }
0x14bb   :  { %v4414_v25 = vpop.eup %4413 }
0x14bc   :  { %v1444_v22 = vadd.f32 1.0, %v4414_v25 }
0x14be   :  { %4415 = vrcp.f32 %v1444_v22 }
0x14c8   :  { %v4416_v31 = vpop.eup %4415 }
0x14c9   :  { %v1458_v39 = vsub.f32 1.0, %v4416_v31  ;;  %v1464_v40 = vmul.f32 %v4416_v31, %v1364_v4 }
0x151f   :  { %v1449_v34 = vpop.permute.xlu0 %1448 }
0x1520   :  { %v1451_v35 = vmul.f32 %v4416_v31, %v1449_v34 }
0x1522   :  { %1453 = vrot.lane.b32.xlu1 %v1451_v35, %s4788_s7 }
0x1594   :  { %v1454_v36 = vpop.permute.xlu1 %1453 }
0x1595   :  { %v1456_v19 = vadd.f32 %v1454_v36, %v5170_v5 }
0x1597   :  { %4417 = vtanh.f32 %v1456_v19 }
0x15a1   :  { %v4418_v38 = vpop.eup %4417 }
0x15a2   :  { %1460 = vrot.lane.b32.xlu0 %v4418_v38, %s4789_s25 }
0x1614   :  { %v1461_v33 = vpop.permute.xlu0 %1460 }
0x1615   :  { %v1463_v41 = vmul.f32 %v1461_v33, %v1458_v39 }
0x1617   :  { %v1465_v42 = vadd.f32 %v1464_v40, %v1463_v41 }
0x1619   :  { %1467 = vrot.lane.b32.xlu1 %v1465_v42, %s4789_s25 }
0x168b   :  { %v5342_v43 = vpop.permute.xlu1 %1467 }
0x168c   :  { %3926 = vmatmul.mubr.msk.f32.vlgmr.msra.gmra.mrb[18].mxu0 %vm451_vm2, %v5342_v43 }
0x168d   :  { %4229 = vmatpush3.bf16.msra.mxu0 %v5266_v15  ;;  %3947 = vmatprep.mubr.msk.f32.mxu0 %vm4786_vm1, %v4787_v16 }
0x168e   :  { %4230 = vmatprep.subr.bf16.mxu0 %v4785_v7 }
0x1691   :  { %4232 = vmatpush3.bf16.msra.mxu0 %v5279_v21 }
0x1692   :  { %4239 = vmatprep.subr.bf16.mxu0 %v4785_v7 }
0x175f   :  { %v1537_v5 = vpop.f32.mrb[18].mxu0 }
0x1760   :  { %v1538_v44 = vadd.f32 %v5295_v29, %v1537_v5  ;;  %v3927_v45 = vpop.f32.mrb[19].mxu0 }
0x1762   :  { %1549 = vrot.lane.b32.xlu0 %v1538_v44, %s4788_s7  ;;  %v1541_v46 = vadd.f32 %v1538_v44, %v5162_v0 }
0x1764   :  { %v3545_v47 = vmul.f32 -1.442695, %v1541_v46 }
0x1766   :  { %4419 = vpow2.f32 %v3545_v47 }
0x1770   :  { %v4420_v48 = vpop.eup %4419 }
0x1771   :  { %v1545_v28 = vadd.f32 1.0, %v4420_v48 }
0x1773   :  { %4421 = vrcp.f32 %v1545_v28 }
0x177d   :  { %v4422_v54 = vpop.eup %4421 }
0x177e   :  { %v1559_v6 = vsub.f32 1.0, %v4422_v54  ;;  %v1565_v24 = vmul.f32 %v4422_v54, %v1465_v42 }
0x17d4   :  { %v1550_v3 = vpop.permute.xlu0 %1549 }
0x17d5   :  { %v1552_v50 = vmul.f32 %v4422_v54, %v1550_v3 }
0x17d7   :  { %1554 = vrot.lane.b32.xlu1 %v1552_v50, %s4788_s7 }
0x1849   :  { %v1555_v51 = vpop.permute.xlu1 %1554 }
0x184a   :  { %v1557_v52 = vadd.f32 %v1555_v51, %v5162_v0 }
0x184c   :  { %4423 = vtanh.f32 %v1557_v52 }
0x1856   :  { %v4424_v53 = vpop.eup %4423 }
0x1857   :  { %1561 = vrot.lane.b32.xlu0 %v4424_v53, %s4789_s25 }
0x18c9   :  { %v1562_v55 = vpop.permute.xlu0 %1561 }
0x18ca   :  { %v1564_v59 = vmul.f32 %v1562_v55, %v1559_v6 }
0x18cc   :  { %v1566_v32 = vadd.f32 %v1565_v24, %v1564_v59 }
0x18ce   :  { %1568 = vrot.lane.b32.xlu1 %v1566_v32, %s4789_s25 }
0x1940   :  { %v5359_v11 = vpop.permute.xlu1 %1568 }
0x1941   :  { %3937 = vmatmul.mubr.msk.f32.vlgmr.msra.gmra.mrb[18].mxu1 %vm451_vm2, %v5359_v11 }
0x1942   :  { %4235 = vmatpush3.bf16.msra.mxu1 %v5266_v15  ;;  %3958 = vmatprep.mubr.msk.f32.mxu1 %vm4786_vm1, %v4787_v16 }
0x1943   :  { %4236 = vmatprep.subr.bf16.mxu1 %v4785_v7 }
0x1946   :  { %4238 = vmatpush3.bf16.msra.mxu1 %v5279_v21 }
0x1947   :  { %4245 = vmatprep.subr.bf16.mxu1 %v4785_v7 }
0x1a14   :  { %v1638_v0 = vpop.f32.mrb[18].mxu1 }
0x1a15   :  { %v1639_v63 = vadd.f32 %v5295_v29, %v1638_v0  ;;  %v3938_v1 = vpop.f32.mrb[19].mxu1 }
0x1a17   :  { %1650 = vrot.lane.b32.xlu0 %v1639_v63, %s4788_s7  ;;  %v1642_v4 = vadd.f32 %v1639_v63, %v5165_v2 }
0x1a19   :  { %v3547_v13 = vmul.f32 -1.442695, %v1642_v4 }
0x1a1b   :  { %4425 = vpow2.f32 %v3547_v13 }
0x1a25   :  { %v4426_v14 = vpop.eup %4425 }
0x1a26   :  { %v1646_v26 = vadd.f32 1.0, %v4426_v14 }
0x1a28   :  { %4427 = vrcp.f32 %v1646_v26 }
0x1a32   :  { %v4428_v17 = vpop.eup %4427 }
0x1a33   :  { %v1660_v34 = vsub.f32 1.0, %v4428_v17  ;;  %v1666_v36 = vmul.f32 %v4428_v17, %v1566_v32 }
0x1a89   :  { %v1651_v18 = vpop.permute.xlu0 %1650 }
0x1a8a   :  { %v1653_v23 = vmul.f32 %v4428_v17, %v1651_v18 }
0x1a8c   :  { %1655 = vrot.lane.b32.xlu1 %v1653_v23, %s4788_s7 }
0x1afe   :  { %v1656_v25 = vpop.permute.xlu1 %1655 }
0x1aff   :  { %v1658_v22 = vadd.f32 %v1656_v25, %v5165_v2 }
0x1b01   :  { %4429 = vtanh.f32 %v1658_v22 }
0x1b0b   :  { %v4430_v31 = vpop.eup %4429 }
0x1b0c   :  { %1662 = vrot.lane.b32.xlu0 %v4430_v31, %s4789_s25 }
0x1b7e   :  { %v1663_v35 = vpop.permute.xlu0 %1662 }
0x1b7f   :  { %v1665_v19 = vmul.f32 %v1663_v35, %v1660_v34 }
0x1b81   :  { %v1667_v38 = vadd.f32 %v1666_v36, %v1665_v19 }
0x1b83   :  { %1669 = vrot.lane.b32.xlu1 %v1667_v38, %s4789_s25 }
0x1bf5   :  { %v5376_v39 = vpop.permute.xlu1 %1669 }
0x1bf6   :  { %3948 = vmatmul.mubr.msk.f32.vlgmr.msra.gmra.mrb[20].mxu0 %vm451_vm2, %v5376_v39 }
0x1bf7   :  { %4241 = vmatpush3.bf16.msra.mxu0 %v5266_v15  ;;  %3969 = vmatprep.mubr.msk.f32.mxu0 %vm4786_vm1, %v4787_v16 }
0x1bf8   :  { %4242 = vmatprep.subr.bf16.mxu0 %v4785_v7 }
0x1bfb   :  { %4244 = vmatpush3.bf16.msra.mxu0 %v5279_v21 }
0x1cc9   :  { %v1739_v2 = vpop.f32.mrb[20].mxu0 }
0x1cca   :  { %v1740_v33 = vadd.f32 %v5295_v29, %v1739_v2  ;;  %v3949_v40 = vpop.f32.mrb[21].mxu0 }
0x1ccc   :  { %1751 = vrot.lane.b32.xlu0 %v1740_v33, %s4788_s7  ;;  %v1743_v41 = vadd.f32 %v1740_v33, %v5156_v60 }
0x1cce   :  { %v3549_v42 = vmul.f32 -1.442695, %v1743_v41 }
0x1cd0   :  { %4431 = vpow2.f32 %v3549_v42 }
0x1cda   :  { %v4432_v5 = vpop.eup %4431 }
0x1cdb   :  { %v1747_v44 = vadd.f32 1.0, %v4432_v5 }
0x1cdd   :  { %4433 = vrcp.f32 %v1747_v44 }
0x1ce7   :  { %v4434_v45 = vpop.eup %4433 }
0x1ce8   :  { %v1761_v3 = vsub.f32 1.0, %v4434_v45  ;;  %v1767_v51 = vmul.f32 %v4434_v45, %v1667_v38 }
0x1d3e   :  { %v1752_v46 = vpop.permute.xlu0 %1751 }
0x1d3f   :  { %v1754_v47 = vmul.f32 %v4434_v45, %v1752_v46 }
0x1d41   :  { %1756 = vrot.lane.b32.xlu1 %v1754_v47, %s4788_s7 }
0x1db3   :  { %v1757_v48 = vpop.permute.xlu1 %1756 }
0x1db4   :  { %v1759_v28 = vadd.f32 %v1757_v48, %v5156_v60 }
0x1db6   :  { %4435 = vtanh.f32 %v1759_v28 }
0x1dc0   :  { %v4436_v54 = vpop.eup %4435 }
0x1dc1   :  { %1763 = vrot.lane.b32.xlu0 %v4436_v54, %s4789_s25 }
0x1e33   :  { %v1764_v50 = vpop.permute.xlu0 %1763 }
0x1e34   :  { %v1766_v52 = vmul.f32 %v1764_v50, %v1761_v3 }
0x1e36   :  { %v1768_v53 = vadd.f32 %v1767_v51, %v1766_v52 }
0x1e38   :  { %1770 = vrot.lane.b32.xlu1 %v1768_v53, %s4789_s25 }
0x1eaa   :  { %v5392_v6 = vpop.permute.xlu1 %1770 }
0x1eab   :  { %3959 = vmatmul.mubr.msk.f32.vlgmr.msra.gmra.mrb[20].mxu1 %vm451_vm2, %v5392_v6 }
0x1eac   :  { %4247 = vmatpush3.bf16.msra.mxu1 %v5266_v15  ;;  %3980 = vmatprep.mubr.msk.f32.mxu1 %vm4786_vm1, %v4787_v16 }
0x1ead   :  { %4248 = vmatprep.subr.bf16.mxu1 %v4785_v7 }
0x1eb0   :  { %4250 = vmatpush3.bf16.msra.mxu1 %v5279_v21 }
0x1eb1   :  { %4267 = vmatprep.subr.bf16.mxu1 %v4785_v7 }
0x1f7e   :  { %v1840_v60 = vpop.f32.mrb[20].mxu1 }
0x1f7f   :  { %v1841_v55 = vadd.f32 %v5295_v29, %v1840_v60  ;;  %v3960_v24 = vpop.f32.mrb[21].mxu1 }
0x1f81   :  { %1852 = vrot.lane.b32.xlu0 %v1841_v55, %s4788_s7  ;;  %v1844_v59 = vadd.f32 %v1841_v55, %v5159_v62 }
0x1f83   :  { %v3551_v32 = vmul.f32 -1.442695, %v1844_v59 }
0x1f85   :  { %4437 = vpow2.f32 %v3551_v32 }
0x1f8f   :  { %v4438_v15 = vpop.eup %4437 }
0x1f90   :  { %v1848_v0 = vadd.f32 1.0, %v4438_v15  ;;  %v2316_v15 = vld [vmem:[%s5743_s10 + $0x8] sm:$0xff] }
0x1f92   :  { %4439 = vrcp.f32 %v1848_v0  ;;  %v2317_v0 = vld [vmem:[%s5743_s10 + $0x10] sm:$0xff] }
0x1f9c   :  { %v4440_v63 = vpop.eup %4439 }
0x1f9d   :  { %v1862_v26 = vsub.f32 1.0, %v4440_v63  ;;  %v1868_v18 = vmul.f32 %v4440_v63, %v1768_v53 }
0x1ff3   :  { %v1853_v1 = vpop.permute.xlu0 %1852 }
0x1ff4   :  { %v1855_v4 = vmul.f32 %v4440_v63, %v1853_v1  ;;  %v2318_v1 = vld [vmem:[%s5743_s10 + $0x18] sm:$0xff] }
0x1ff6   :  { %1857 = vrot.lane.b32.xlu1 %v1855_v4, %s4788_s7  ;;  %v2077_v4 = vld [vmem:[%s5742_s9 + $0x28] sm:$0xff] }
0x2068   :  { %v1858_v21 = vpop.permute.xlu1 %1857 }
0x2069   :  { %v1860_v13 = vadd.f32 %v1858_v21, %v5159_v62 }
0x206b   :  { %4441 = vtanh.f32 %v1860_v13  ;;  %v2078_v13 = vld [vmem:[%s5742_s9 + $0x30] sm:$0xff] }
0x2075   :  { %v4442_v14 = vpop.eup %4441 }
0x2076   :  { %1864 = vrot.lane.b32.xlu0 %v4442_v14, %s4789_s25  ;;  %v2079_v14 = vld [vmem:[%s5742_s9 + $0x38] sm:$0xff] }
0x20e8   :  { %v1865_v17 = vpop.permute.xlu0 %1864 }
0x20e9   :  { %v1867_v23 = vmul.f32 %v1865_v17, %v1862_v26  ;;  %v5458_v26 = vpack.c.bf16 %v2318_v1, %v2317_v0  ;;  %v4255_v17 = vpack.c.bf16 %v2079_v14, %v2078_v13 }
0x20eb   :  { %v1869_v25 = vadd.f32 %v1868_v18, %v1867_v23  ;;  %v2072_v23 = vld [vmem:[%s5742_s9] sm:$0xff] }
0x20ed   :  { %1871 = vrot.lane.b32.xlu1 %v1869_v25, %s4789_s25 }
0x215f   :  { %v5409_v22 = vpop.permute.xlu1 %1871 }
0x2160   :  { %3970 = vmatmul.mubr.msk.f32.vlgmr.msra.gmra.mrb[22].mxu0 %vm451_vm2, %v5409_v22 }
0x2233   :  { %v1941_v31 = vpop.f32.mrb[22].mxu0 }
0x2234   :  { %v1942_v34 = vadd.f32 %v5295_v29, %v1941_v31  ;;  %v3971_v62 = vpop.f32.mrb[23].mxu0 }
0x2236   :  { %1953 = vrot.lane.b32.xlu0 %v1942_v34, %s4788_s7  ;;  %v1945_v35 = vadd.f32 %v1942_v34, %v5150_v56 }
0x2238   :  { %v3553_v36 = vmul.f32 -1.442695, %v1945_v35 }
0x223a   :  { %4443 = vpow2.f32 %v3553_v36 }
0x2244   :  { %v4444_v19 = vpop.eup %4443 }
0x2245   :  { %v1949_v38 = vadd.f32 1.0, %v4444_v19 }
0x2247   :  { %4445 = vrcp.f32 %v1949_v38  ;;  %v5478_v38 = vld [vmem:[#allocation11] ss:$0 sm:$0xff] }
0x2251   :  { %v4446_v2 = vpop.eup %4445 }
0x2252   :  { %v1963_v44 = vsub.f32 1.0, %v4446_v2  ;;  %v1969_v46 = vmul.f32 %v4446_v2, %v1869_v25  ;;  %v2073_v25 = vld [vmem:[%s5742_s9 + $0x8] sm:$0xff] }
0x2253   :  { %v4259_v31 = vpack.c.bf16 %v2073_v25, %v2072_v23 }
0x22a8   :  { %v1954_v33 = vpop.permute.xlu0 %1953 }
0x22a9   :  { %v1956_v40 = vmul.f32 %v4446_v2, %v1954_v33 }
0x22ab   :  { %1958 = vrot.lane.b32.xlu1 %v1956_v40, %s4788_s7 }
0x231d   :  { %v1959_v41 = vpop.permute.xlu1 %1958 }
0x231e   :  { %v1961_v42 = vadd.f32 %v1959_v41, %v5150_v56  ;;  %v2074_v41 = vld [vmem:[%s5742_s9 + $0x10] sm:$0xff] }
0x2320   :  { %4447 = vtanh.f32 %v1961_v42  ;;  %v2075_v42 = vld [vmem:[%s5742_s9 + $0x18] sm:$0xff] }
0x232a   :  { %v4448_v5 = vpop.eup %4447 }
0x232b   :  { %1965 = vrot.lane.b32.xlu0 %v4448_v5, %s4789_s25 }
0x239d   :  { %v1966_v45 = vpop.permute.xlu0 %1965 }
0x239e   :  { %v1968_v47 = vmul.f32 %v1966_v45, %v1963_v44  ;;  %v4263_v44 = vpack.c.bf16 %v2075_v42, %v2074_v41 }
0x23a0   :  { %v1970_v48 = vadd.f32 %v1969_v46, %v1968_v47 }
0x23a2   :  { %1972 = vrot.lane.b32.xlu1 %v1970_v48, %s4789_s25 }
0x2414   :  { %v5420_v28 = vpop.permute.xlu1 %1972 }
0x2415   :  { %3981 = vmatmul.mubr.msk.f32.vlgmr.msra.gmra.mrb[22].mxu1 %vm451_vm2, %v5420_v28 }
0x2416   :  { %4031 = vmatprep.mubr.msk.f32.mxu1 %vm4786_vm1, %v4787_v16 }
0x24e8   :  { %v2042_v56 = vpop.f32.mrb[22].mxu1 }
0x24e9   :  { %v2043_v54 = vadd.f32 %v5295_v29, %v2042_v56  ;;  %v3982_v3 = vpop.f32.mrb[23].mxu1  ;;  %v2315_v29 = vld [vmem:[%s5743_s10] sm:$0xff] }
0x24ea   :  { %v5440_v63 = vpack.c.bf16 %v2316_v15, %v2315_v29 }
0x24eb   :  { %2054 = vrot.lane.b32.xlu0 %v2043_v54, %s4788_s7  ;;  %v2046_v50 = vadd.f32 %v2043_v54, %v5153_v58 }
0x24ec   :  { %4269 = vmatpush3.bf16.msra.mxu1 %v5440_v63 }
0x24ed   :  { %v3555_v51 = vmul.f32 -1.442695, %v2046_v50  ;;  %4270 = vmatprep.subr.bf16.mxu1 %v4785_v7 }
0x24ef   :  { %4449 = vpow2.f32 %v3555_v51 }
0x24f0   :  { %4272 = vmatpush3.bf16.msra.mxu1 %v5458_v26 }
0x24f1   :  { %4273 = vmatprep.subr.bf16.mxu1 %v4785_v7 }
0x24f3   :  { %4032 = vmatmul.mubr.f32.vlgmr.msra.gmra.mrb[24].mxu1 %v4787_v16 }
0x24f4   :  { %4275 = vmatpush3.bf16.msra.mxu1 %v5440_v63  ;;  %4042 = vmatprep.mubr.msk.f32.mxu1 %vm4786_vm1, %v4787_v16 }
0x24f5   :  { %4276 = vmatprep.subr.bf16.mxu1 %v4785_v7 }
0x24f8   :  { %4278 = vmatpush3.bf16.msra.mxu1 %v5458_v26 }
0x24f9   :  { %v4450_v52 = vpop.eup %4449  ;;  %4279 = vmatprep.subr.bf16.mxu1 %v4785_v7 }
0x24fa   :  { %v2050_v53 = vadd.f32 1.0, %v4450_v52 }
0x24fc   :  { %4451 = vrcp.f32 %v2050_v53 }
0x2506   :  { %v4452_v60 = vpop.eup %4451 }
0x2507   :  { %v2064_v34 = vsub.f32 1.0, %v4452_v60  ;;  %v2070_v35 = vmul.f32 %v4452_v60, %v1970_v48 }
0x255d   :  { %v2055_v55 = vpop.permute.xlu0 %2054 }
0x255e   :  { %v2057_v24 = vmul.f32 %v4452_v60, %v2055_v55 }
0x2560   :  { %2059 = vrot.lane.b32.xlu1 %v2057_v24, %s4788_s7 }
0x25c6   :  { %v2392_v2 = vpop.f32.mrb[24].mxu1 }
0x25c7   :  { %v2393_v33 = vadd.f32 %v5478_v38, %v2392_v2  ;;  %v4033_v40 = vpop.f32.mrb[25].mxu1 }
0x25d2   :  { %v2060_v59 = vpop.permute.xlu1 %2059 }
0x25d3   :  { %v2062_v32 = vadd.f32 %v2060_v59, %v5153_v58  ;;  %v2076_v58 = vld [vmem:[%s5742_s9 + $0x20] sm:$0xff] }
0x25d4   :  { %v4251_v21 = vpack.c.bf16 %v2077_v4, %v2076_v58 }
0x25d5   :  { %4453 = vtanh.f32 %v2062_v32 }
0x25d6   :  { %4252 = vmatprep.subr.bf16.mxu0 %v4251_v21 }
0x25d7   :  { %4254 = vmatpush3.bf16.msra.mxu0 %v4251_v21 }
0x25d8   :  { %4256 = vmatprep.subr.bf16.mxu0 %v4255_v17 }
0x25db   :  { %4258 = vmatpush3.bf16.msra.mxu0 %v4255_v17 }
0x25dc   :  { %4260 = vmatprep.subr.bf16.mxu0 %v4259_v31 }
0x25df   :  { %v4454_v18 = vpop.eup %4453 }
0x25e0   :  { %2066 = vrot.lane.b32.xlu0 %v4454_v18, %s4789_s25 }
0x25e4   :  { %2404 = vrot.lane.b32.xlu0 %v2393_v33, %s4788_s7 }
0x2652   :  { %v2067_v62 = vpop.permute.xlu0 %2066 }
0x2653   :  { %v2069_v36 = vmul.f32 %v2067_v62, %v2064_v34 }
0x2655   :  { %v2071_v19 = vadd.f32 %v2070_v35, %v2069_v36 }
0x2656   :  { %v2405_v45 = vpop.permute.xlu0 %2404 }
0x2657   :  { %2081 = vrot.lane.b32.xlu1 %v2071_v19, %s4789_s25 }
0x26c9   :  { %v2082_v5 = vpop.permute.xlu1 %2081 }
0x26ca   :  { %3991 = vmatprep.mubr.msk.f32.mxu0 %vm451_vm2, %v2082_v5 }
0x26cb   :  { %3992 = vmatmul.mubr.msk.f32.vlgmr.msra.gmra.mrb[24].mxu0 %vm451_vm2, %v5420_v28 }
0x26cc   :  { %3994 = vmatprep.mubr.msk.f32.mxu0 %vm451_vm2, %v5409_v22  ;;  %4262 = vmatpush3.bf16.msra.mxu0 %v4259_v31 }
0x26cd   :  { %4264 = vmatprep.subr.bf16.mxu0 %v4263_v44 }
0x26cf   :  { %3995 = vmatmul.mubr.msk.f32.gmra.mrb[26].mxu0 %vm451_vm2, %v5392_v6 }
0x26d0   :  { %3997 = vmatprep.mubr.msk.f32.mxu0 %vm451_vm2, %v5376_v39  ;;  %4266 = vmatpush3.bf16.msra.mxu0 %v4263_v44 }
0x26d1   :  { %4291 = vmatprep.subr.bf16.mxu0 %v4785_v7 }
0x26d3   :  { %3998 = vmatmul.mubr.msk.f32.gmra.mrb[28].mxu0 %vm451_vm2, %v5359_v11 }
0x26d4   :  { %4000 = vmatprep.mubr.msk.f32.mxu0 %vm451_vm2, %v5342_v43 }
0x26d7   :  { %4001 = vmatmul.mubr.msk.f32.gmra.mrb[30].mxu0 %vm451_vm2, %v5323_v10 }
0x26d8   :  { %4011 = vmatprep.mubr.msk.f32.mxu0 %vm451_vm2, %v5172_v8  ;;  %v5525_v8 = vld [vmem:[%s5744_s11] ss:$0 sm:$0xff] }
0x26db   :  { %4012 = vmatmul.mubr.msk.f32.vlgmr.msra.gmra.mrb[24].mxu0 %vm451_vm2, %v5189_v37 }
0x26dc   :  { %4014 = vmatprep.mubr.msk.f32.mxu0 %vm451_vm2, %v5206_v57  ;;  %4293 = vmatpush3.bf16.msra.mxu0 %v5440_v63 }
0x26dd   :  { %4294 = vmatprep.subr.bf16.mxu0 %v4785_v7 }
0x26df   :  { %4015 = vmatmul.mubr.msk.f32.gmra.mrb[26].mxu0 %vm451_vm2, %v5223_v27 }
0x26e0   :  { %4017 = vmatprep.mubr.msk.f32.mxu0 %vm451_vm2, %v5240_v49  ;;  %4296 = vmatpush3.bf16.msra.mxu0 %v5458_v26 }
0x26e1   :  { %4303 = vmatprep.subr.bf16.mxu0 %v4785_v7 }
0x26e3   :  { %4018 = vmatmul.mubr.msk.f32.gmra.mrb[28].mxu0 %vm451_vm2, %v5274_v20 }
0x26e4   :  { %4020 = vmatprep.mubr.msk.f32.mxu0 %vm451_vm2, %v5313_v9 }
0x27ae   :  { %v4013_v37 = vpop.f32.mrb[24].mxu0 }
0x27af   :  { %v2261_v57 = vpop.f32.mrb[25].mxu0  ;;  %v2308_v59 = vadd.f32 %v4013_v37, %v5525_v8 }
0x27b0   :  { %v2307_v27 = vadd.f32 %v5525_v8, %v2261_v57 }
0x27b2   :  { %v2396_v49 = vadd.f32 %v2393_v33, %v2307_v27  ;;  %v5528_v43 = vpop.f32.mrb[26].mxu0 }
0x27b3   :  { %v5530_v11 = vpop.f32.mrb[27].mxu0 }
0x27b4   :  { %v3574_v39 = vmul.f32 -1.442695, %v2396_v49  ;;  %v2309_v19 = vadd.f32 %v5525_v8, %v5530_v11  ;;  %v4515_v49 = vld [vmem:[#allocation5] ss:$0 sm:$0xff] }
0x27b5   :  { %v1229_v11 = vadd.f32 %v4515_v49, %v5333_v12 }
0x27b6   :  { %4455 = vpow2.f32 %v3574_v39  ;;  %v5532_v20 = vpop.f32.mrb[28].mxu0 }
0x27b7   :  { %v5534_v6 = vpop.f32.mrb[29].mxu0  ;;  %v1232_v39 = vadd.f32 %v1229_v11, %v5115_v30 }
0x27c0   :  { %v4456_v9 = vpop.eup %4455 }
0x27c1   :  { %v2400_v22 = vadd.f32 1.0, %v4456_v9  ;;  %v3539_v9 = vmul.f32 -1.442695, %v1232_v39 }
0x27c3   :  { %4457 = vrcp.f32 %v2400_v22 }
0x27cd   :  { %v4458_v46 = vpop.eup %4457 }
0x27ce   :  { %v2407_v47 = vmul.f32 %v4458_v46, %v2405_v45  ;;  %v2414_v54 = vsub.f32 1.0, %v4458_v46  ;;  %v2420_v50 = vmul.f32 0.0, %v4458_v46 }
0x27d0   :  { %2409 = vrot.lane.b32.xlu1 %v2407_v47, %s4788_s7 }
0x2842   :  { %v2410_v48 = vpop.permute.xlu1 %2409 }
0x2843   :  { %v2412_v28 = vadd.f32 %v2410_v48, %v2307_v27 }
0x2845   :  { %4459 = vtanh.f32 %v2412_v28 }
0x284f   :  { %v4460_v56 = vpop.eup %4459 }
0x2850   :  { %2416 = vrot.lane.b32.xlu0 %v4460_v56, %s4789_s25 }
0x28c2   :  { %v2417_v3 = vpop.permute.xlu0 %2416 }
0x28c3   :  { %v2419_v51 = vmul.f32 %v2417_v3, %v2414_v54 }
0x28c5   :  { %v2421_v52 = vadd.f32 %v2420_v50, %v2419_v51 }
0x28c7   :  { %2423 = vrot.lane.b32.xlu1 %v2421_v52, %s4789_s25 }
0x2939   :  { %v2424_v53 = vpop.permute.xlu1 %2423 }
0x293a   :  { %4043 = vmatmul.mubr.msk.f32.vlgmr.msra.gmra.mrb[26].mxu1 %vm451_vm2, %v2424_v53 }
0x293b   :  { %4281 = vmatpush3.bf16.msra.mxu1 %v5440_v63  ;;  %4053 = vmatprep.mubr.msk.f32.mxu1 %vm4786_vm1, %v4787_v16 }
0x293c   :  { %4282 = vmatprep.subr.bf16.mxu1 %v4785_v7 }
0x293f   :  { %4284 = vmatpush3.bf16.msra.mxu1 %v5458_v26 }
0x2940   :  { %4285 = vmatprep.subr.bf16.mxu1 %v4785_v7 }
0x2a0d   :  { %v2493_v60 = vpop.f32.mrb[26].mxu1 }
0x2a0e   :  { %v2494_v55 = vadd.f32 %v5478_v38, %v2493_v60  ;;  %v4044_v24 = vpop.f32.mrb[27].mxu1 }
0x2a10   :  { %2505 = vrot.lane.b32.xlu0 %v2494_v55, %s4788_s7  ;;  %v2497_v32 = vadd.f32 %v2494_v55, %v2308_v59 }
0x2a12   :  { %v3576_v29 = vmul.f32 -1.442695, %v2497_v32 }
0x2a14   :  { %4461 = vpow2.f32 %v3576_v29 }
0x2a1e   :  { %v4462_v15 = vpop.eup %4461 }
0x2a1f   :  { %v2501_v0 = vadd.f32 1.0, %v4462_v15 }
0x2a21   :  { %4463 = vrcp.f32 %v2501_v0 }
0x2a2b   :  { %v4464_v1 = vpop.eup %4463 }
0x2a2c   :  { %v2515_v17 = vsub.f32 1.0, %v4464_v1  ;;  %v2521_v23 = vmul.f32 %v4464_v1, %v2421_v52 }
0x2a82   :  { %v2506_v58 = vpop.permute.xlu0 %2505 }
0x2a83   :  { %v2508_v4 = vmul.f32 %v4464_v1, %v2506_v58 }
0x2a85   :  { %2510 = vrot.lane.b32.xlu1 %v2508_v4, %s4788_s7 }
0x2af7   :  { %v2511_v21 = vpop.permute.xlu1 %2510 }
0x2af8   :  { %v2513_v13 = vadd.f32 %v2511_v21, %v2308_v59 }
0x2afa   :  { %4465 = vtanh.f32 %v2513_v13 }
0x2b04   :  { %v4466_v14 = vpop.eup %4465 }
0x2b05   :  { %2517 = vrot.lane.b32.xlu0 %v4466_v14, %s4789_s25 }
0x2b77   :  { %v2518_v18 = vpop.permute.xlu0 %2517 }
0x2b78   :  { %v2520_v25 = vmul.f32 %v2518_v18, %v2515_v17 }
0x2b7a   :  { %v2522_v31 = vadd.f32 %v2521_v23, %v2520_v25 }
0x2b7c   :  { %2524 = vrot.lane.b32.xlu1 %v2522_v31, %s4789_s25 }
0x2bee   :  { %v2525_v34 = vpop.permute.xlu1 %2524 }
0x2bef   :  { %4054 = vmatmul.mubr.msk.f32.vlgmr.msra.gmra.mrb[28].mxu1 %vm451_vm2, %v2525_v34 }
0x2bf0   :  { %4287 = vmatpush3.bf16.msra.mxu1 %v5440_v63  ;;  %4064 = vmatprep.mubr.msk.f32.mxu1 %vm4786_vm1, %v4787_v16 }
0x2bf1   :  { %4288 = vmatprep.subr.bf16.mxu1 %v4785_v7 }
0x2bf4   :  { %4290 = vmatpush3.bf16.msra.mxu1 %v5458_v26 }
0x2bf5   :  { %4297 = vmatprep.subr.bf16.mxu1 %v4785_v7 }
0x2cc2   :  { %v2594_v62 = vpop.f32.mrb[28].mxu1 }
0x2cc3   :  { %v2595_v35 = vadd.f32 %v5478_v38, %v2594_v62  ;;  %v4055_v36 = vpop.f32.mrb[29].mxu1 }
0x2cc5   :  { %2606 = vrot.lane.b32.xlu0 %v2595_v35, %s4788_s7  ;;  %v2598_v2 = vadd.f32 %v2595_v35, %v2309_v19 }
0x2cc7   :  { %v3578_v33 = vmul.f32 -1.442695, %v2598_v2 }
0x2cc9   :  { %4467 = vpow2.f32 %v3578_v33 }
0x2cd3   :  { %v4468_v40 = vpop.eup %4467 }
0x2cd4   :  { %v2602_v41 = vadd.f32 1.0, %v4468_v40 }
0x2cd6   :  { %4469 = vrcp.f32 %v2602_v41 }
0x2ce0   :  { %v4470_v42 = vpop.eup %4469 }
0x2ce1   :  { %v2616_v46 = vsub.f32 1.0, %v4470_v42  ;;  %v2622_v48 = vmul.f32 %v4470_v42, %v2522_v31 }
0x2d37   :  { %v2607_v5 = vpop.permute.xlu0 %2606 }
0x2d38   :  { %v2609_v44 = vmul.f32 %v4470_v42, %v2607_v5  ;;  %v2311_v42 = vadd.f32 %v5525_v8, %v5534_v6 }
0x2d3a   :  { %2611 = vrot.lane.b32.xlu1 %v2609_v44, %s4788_s7 }
0x2dac   :  { %v2612_v37 = vpop.permute.xlu1 %2611 }
0x2dad   :  { %v2614_v57 = vadd.f32 %v2612_v37, %v2309_v19 }
0x2daf   :  { %4471 = vtanh.f32 %v2614_v57 }
0x2db0   :  { %4473 = vpow2.f32 %v3539_v9 }
0x2db9   :  { %v4472_v27 = vpop.eup %4471 }
0x2dba   :  { %2618 = vrot.lane.b32.xlu0 %v4472_v27, %s4789_s25  ;;  %v4474_v22 = vpop.eup %4473 }
0x2dbb   :  { %v1236_v45 = vadd.f32 1.0, %v4474_v22 }
0x2dbd   :  { %4475 = vrcp.f32 %v1236_v45 }
0x2dbe   :  { %1240 = vrot.lane.b32.xlu0 %v1229_v11, %s4788_s7 }
0x2dc7   :  { %v4476_v54 = vpop.eup %4475 }
0x2dc8   :  { %v1250_v60 = vsub.f32 1.0, %v4476_v54  ;;  %v1256_v24 = vmul.f32 %v4476_v54, %v5308_v61  ;;  %v2310_v61 = vadd.f32 %v5528_v43, %v5525_v8 }
0x2e2c   :  { %v2619_v47 = vpop.permute.xlu0 %2618 }
0x2e2d   :  { %v2621_v28 = vmul.f32 %v2619_v47, %v2616_v46 }
0x2e2f   :  { %v2623_v56 = vadd.f32 %v2622_v48, %v2621_v28 }
0x2e30   :  { %v1241_v3 = vpop.permute.xlu0 %1240 }
0x2e31   :  { %v1243_v50 = vmul.f32 %v4476_v54, %v1241_v3  ;;  %2625 = vrot.lane.b32.xlu1 %v2623_v56, %s4789_s25 }
0x2e33   :  { %1245 = vrot.lane.b32.xlu0 %v1243_v50, %s4788_s7  ;;  %v2312_v50 = vadd.f32 %v5532_v20, %v5525_v8 }
0x2ea3   :  { %v2626_v12 = vpop.permute.xlu1 %2625 }
0x2ea4   :  { %4065 = vmatmul.mubr.msk.f32.vlgmr.msra.gmra.mrb[30].mxu1 %vm451_vm2, %v2626_v12 }
0x2ea5   :  { %v1246_v51 = vpop.permute.xlu0 %1245  ;;  %4299 = vmatpush3.bf16.msra.mxu1 %v5440_v63  ;;  %4086 = vmatprep.mubr.msk.f32.mxu1 %vm4786_vm1, %v4787_v16 }
0x2ea6   :  { %v1248_v52 = vadd.f32 %v1246_v51, %v5115_v30  ;;  %4300 = vmatprep.subr.bf16.mxu1 %v4785_v7 }
0x2ea8   :  { %4477 = vtanh.f32 %v1248_v52 }
0x2ea9   :  { %4302 = vmatpush3.bf16.msra.mxu1 %v5458_v26 }
0x2eaa   :  { %4309 = vmatprep.subr.bf16.mxu1 %v4785_v7 }
0x2eb2   :  { %v4478_v53 = vpop.eup %4477 }
0x2eb3   :  { %1252 = vrot.lane.b32.xlu0 %v4478_v53, %s4789_s25 }
0x2f25   :  { %v1253_v55 = vpop.permute.xlu0 %1252 }
0x2f26   :  { %v1255_v59 = vmul.f32 %v1253_v55, %v1250_v60 }
0x2f28   :  { %v1257_v32 = vadd.f32 %v1256_v24, %v1255_v59 }
0x2f2a   :  { %2191 = vrot.lane.b32.xlu0 %v1257_v32, %s4789_s25 }
0x2f77   :  { %v2695_v29 = vpop.f32.mrb[30].mxu1 }
0x2f78   :  { %v2696_v30 = vadd.f32 %v5478_v38, %v2695_v29  ;;  %v4066_v15 = vpop.f32.mrb[31].mxu1 }
0x2f7a   :  { %2707 = vrot.lane.b32.xlu1 %v2696_v30, %s4788_s7  ;;  %v2699_v1 = vadd.f32 %v2696_v30, %v2310_v61 }
0x2f7c   :  { %v3580_v58 = vmul.f32 -1.442695, %v2699_v1  ;;  %v3134_v1 = vld [vmem:[%s5746_s13 + $0x28] sm:$0xff] }
0x2f7e   :  { %4479 = vpow2.f32 %v3580_v58 }
0x2f88   :  { %v4480_v4 = vpop.eup %4479 }
0x2f89   :  { %v2703_v21 = vadd.f32 1.0, %v4480_v4  ;;  %v3135_v4 = vld [vmem:[%s5746_s13 + $0x30] sm:$0xff] }
0x2f8b   :  { %4481 = vrcp.f32 %v2703_v21  ;;  %v3136_v21 = vld [vmem:[%s5746_s13 + $0x38] sm:$0xff] }
0x2f95   :  { %v4482_v13 = vpop.eup %4481 }
0x2f96   :  { %v2717_v34 = vsub.f32 1.0, %v4482_v13  ;;  %v2723_v35 = vmul.f32 %v4482_v13, %v2623_v56 }
0x2f9c   :  { %v5583_v0 = vpop.permute.xlu0 %2191 }
0x2f9d   :  { %4021 = vmatmul.mubr.msk.f32.gmra.mrb[30].mxu0 %vm451_vm2, %v5583_v0 }
0x2f9e   :  { %4075 = vmatprep.mubr.msk.f32.mxu0 %vm4786_vm1, %v4787_v16 }
0x2fec   :  { %v2708_v14 = vpop.permute.xlu1 %2707 }
0x2fed   :  { %v2710_v17 = vmul.f32 %v4482_v13, %v2708_v14  ;;  %v4319_v14 = vpack.c.bf16 %v3136_v21, %v3135_v4  ;;  %v3323_v4 = vld [vmem:[%s5750_s17 + $0x30] sm:$0xff] }
0x2fef   :  { %2712 = vrot.lane.b32.xlu1 %v2710_v17, %s4788_s7 }
0x3061   :  { %v2713_v18 = vpop.permute.xlu1 %2712 }
0x3062   :  { %v2715_v23 = vadd.f32 %v2713_v18, %v2310_v61  ;;  %v3133_v61 = vld [vmem:[%s5746_s13 + $0x20] sm:$0xff] }
0x3063   :  { %v4316_v58 = vpack.c.bf16 %v3134_v1, %v3133_v61 }
0x3064   :  { %4483 = vtanh.f32 %v2715_v23 }
0x306e   :  { %v4484_v25 = vpop.eup %4483 }
0x306f   :  { %2719 = vrot.lane.b32.xlu1 %v4484_v25, %s4789_s25 }
0x3070   :  { %v5593_v31 = vpop.f32.mrb[30].mxu0 }
0x3071   :  { %v5595_v43 = vpop.f32.mrb[31].mxu0 }
0x30e1   :  { %v2720_v62 = vpop.permute.xlu1 %2719 }
0x30e2   :  { %v2722_v36 = vmul.f32 %v2720_v62, %v2717_v34  ;;  %v2313_v62 = vadd.f32 %v5525_v8, %v5595_v43 }
0x30e4   :  { %v2724_v19 = vadd.f32 %v2723_v35, %v2722_v36 }
0x30e6   :  { %2726 = vrot.lane.b32.xlu1 %v2724_v19, %s4789_s25 }
0x3158   :  { %v2727_v2 = vpop.permute.xlu1 %2726 }
0x3159   :  { %4076 = vmatmul.mubr.msk.f32.vlgmr.msra.gmra.mrb[32].mxu0 %vm451_vm2, %v2727_v2 }
0x315a   :  { %4305 = vmatpush3.bf16.msra.mxu0 %v5440_v63  ;;  %4097 = vmatprep.mubr.msk.f32.mxu0 %vm4786_vm1, %v4787_v16 }
0x315b   :  { %4306 = vmatprep.subr.bf16.mxu0 %v4785_v7 }
0x315e   :  { %4308 = vmatpush3.bf16.msra.mxu0 %v5458_v26 }
0x315f   :  { %4315 = vmatprep.subr.bf16.mxu0 %v4785_v7 }
0x322c   :  { %v2796_v33 = vpop.f32.mrb[32].mxu0 }
0x322d   :  { %v2797_v40 = vadd.f32 %v5478_v38, %v2796_v33  ;;  %v4077_v41 = vpop.f32.mrb[33].mxu0 }
0x322f   :  { %2808 = vrot.lane.b32.xlu0 %v2797_v40, %s4788_s7  ;;  %v2800_v5 = vadd.f32 %v2797_v40, %v2311_v42 }
0x3231   :  { %v3582_v44 = vmul.f32 -1.442695, %v2800_v5 }
0x3233   :  { %4485 = vpow2.f32 %v3582_v44 }
0x323d   :  { %v4486_v37 = vpop.eup %4485 }
0x323e   :  { %v2804_v57 = vadd.f32 1.0, %v4486_v37 }
0x3240   :  { %4487 = vrcp.f32 %v2804_v57 }
0x324a   :  { %v4488_v27 = vpop.eup %4487 }
0x324b   :  { %v2818_v45 = vsub.f32 1.0, %v4488_v27  ;;  %v2824_v6 = vmul.f32 %v4488_v27, %v2724_v19 }
0x32a1   :  { %v2809_v49 = vpop.permute.xlu0 %2808 }
0x32a2   :  { %v2811_v11 = vmul.f32 %v4488_v27, %v2809_v49  ;;  %v3592_v49 = vld [vmem:[#allocation16] ss:$0 sm:$0xff] }
0x32a4   :  { %2813 = vrot.lane.b32.xlu1 %v2811_v11, %s4788_s7  ;;  %v3129_v11 = vld [vmem:[%s5746_s13] sm:$0xff] }
0x3316   :  { %v2814_v39 = vpop.permute.xlu1 %2813 }
0x3317   :  { %v2816_v9 = vadd.f32 %v2814_v39, %v2311_v42  ;;  %v3130_v39 = vld [vmem:[%s5746_s13 + $0x8] sm:$0xff] }
0x3319   :  { %4489 = vtanh.f32 %v2816_v9  ;;  %v4322_v9 = vpack.c.bf16 %v3130_v39, %v3129_v11  ;;  %v3596_v11 = vld [vmem:[#allocation17] ss:$0 sm:$0xff] }
0x3323   :  { %v4490_v22 = vpop.eup %4489 }
0x3324   :  { %2820 = vrot.lane.b32.xlu0 %v4490_v22, %s4789_s25  ;;  %v3131_v22 = vld [vmem:[%s5746_s13 + $0x10] sm:$0xff] }
0x3396   :  { %v2821_v46 = vpop.permute.xlu0 %2820 }
0x3397   :  { %v2823_v47 = vmul.f32 %v2821_v46, %v2818_v45  ;;  %v3132_v45 = vld [vmem:[%s5746_s13 + $0x18] sm:$0xff] }
0x3399   :  { %v2825_v48 = vadd.f32 %v2824_v6, %v2823_v47  ;;  %v4325_v6 = vpack.c.bf16 %v3132_v45, %v3131_v22 }
0x339b   :  { %2827 = vrot.lane.b32.xlu1 %v2825_v48, %s4789_s25 }
0x340d   :  { %v2828_v28 = vpop.permute.xlu1 %2827 }
0x340e   :  { %4087 = vmatmul.mubr.msk.f32.vlgmr.msra.gmra.mrb[32].mxu1 %vm451_vm2, %v2828_v28 }
0x340f   :  { %4311 = vmatpush3.bf16.msra.mxu1 %v5440_v63  ;;  %4108 = vmatprep.mubr.msk.f32.mxu1 %vm4786_vm1, %v4787_v16 }
0x3410   :  { %4312 = vmatprep.subr.bf16.mxu1 %v4785_v7 }
0x3413   :  { %4314 = vmatpush3.bf16.msra.mxu1 %v5458_v26 }
0x3414   :  { %4321 = vmatprep.subr.bf16.mxu1 %v4785_v7 }
0x34e1   :  { %v2897_v56 = vpop.f32.mrb[32].mxu1 }
0x34e2   :  { %v2898_v54 = vadd.f32 %v5478_v38, %v2897_v56  ;;  %v4088_v3 = vpop.f32.mrb[33].mxu1 }
0x34e4   :  { %2909 = vrot.lane.b32.xlu0 %v2898_v54, %s4788_s7  ;;  %v2901_v12 = vadd.f32 %v2898_v54, %v2312_v50  ;;  %v3591_v54 = vld [vmem:[#allocation14] ss:$0 sm:$0xff] }
0x34e6   :  { %v3584_v63 = vmul.f32 -1.442695, %v2901_v12 }
0x34e8   :  { %4491 = vpow2.f32 %v3584_v63 }
0x34f2   :  { %v4492_v51 = vpop.eup %4491 }
0x34f3   :  { %v2905_v52 = vadd.f32 1.0, %v4492_v51 }
0x34f5   :  { %4493 = vrcp.f32 %v2905_v52 }
0x34ff   :  { %v4494_v53 = vpop.eup %4493 }
0x3500   :  { %v2919_v32 = vsub.f32 1.0, %v4494_v53  ;;  %v2925_v20 = vmul.f32 %v4494_v53, %v2825_v48 }
0x3556   :  { %v2910_v60 = vpop.permute.xlu0 %2909 }
0x3557   :  { %v2912_v26 = vmul.f32 %v4494_v53, %v2910_v60 }
0x3559   :  { %2914 = vrot.lane.b32.xlu1 %v2912_v26, %s4788_s7 }
0x35cb   :  { %v2915_v55 = vpop.permute.xlu1 %2914 }
0x35cc   :  { %v2917_v24 = vadd.f32 %v2915_v55, %v2312_v50 }
0x35ce   :  { %4495 = vtanh.f32 %v2917_v24 }
0x35d8   :  { %v4496_v59 = vpop.eup %4495 }
0x35d9   :  { %2921 = vrot.lane.b32.xlu0 %v4496_v59, %s4789_s25 }
0x364b   :  { %v2922_v29 = vpop.permute.xlu0 %2921 }
0x364c   :  { %v2924_v30 = vmul.f32 %v2922_v29, %v2919_v32 }
0x364e   :  { %v2926_v15 = vadd.f32 %v2925_v20, %v2924_v30 }
0x3650   :  { %2928 = vrot.lane.b32.xlu1 %v2926_v15, %s4789_s25 }
0x36c2   :  { %v2929_v13 = vpop.permute.xlu1 %2928 }
0x36c3   :  { %4098 = vmatmul.mubr.msk.f32.vlgmr.msra.gmra.mrb[34].mxu0 %vm451_vm2, %v2929_v13  ;;  %v3324_v13 = vld [vmem:[%s5750_s17 + $0x38] sm:$0xff] }
0x36c4   :  { %4317 = vmatpush3.bf16.msra.mxu0 %v4316_v58  ;;  %4119 = vmatprep.mubr.msk.f32.mxu0 %vm4786_vm1, %v4787_v16 }
0x36c5   :  { %4318 = vmatprep.subr.bf16.mxu0 %v4785_v7 }
0x36c8   :  { %4320 = vmatpush3.bf16.msra.mxu0 %v4319_v14  ;;  %v4331_v14 = vpack.c.bf16 %v3324_v13, %v3323_v4 }
0x36c9   :  { %4327 = vmatprep.subr.bf16.mxu0 %v4785_v7 }
0x36cb   :  { %4120 = vmatmul.mubr.msk.f32.vlgmr.msra.gmra.mrb[36].mxu0 %vm451_vm2, %v5323_v10 }
0x36cc   :  { %4141 = vmatprep.mubr.msk.f32.mxu0 %vm4786_vm1, %v4787_v16 }
0x3796   :  { %v2998_v17 = vpop.f32.mrb[34].mxu0 }
0x3797   :  { %v2999_v18 = vadd.f32 %v5478_v38, %v2998_v17  ;;  %v4099_v23 = vpop.f32.mrb[35].mxu0 }
0x3798   :  { %v3318_v23 = vld [vmem:[%s5750_s17 + $0x8] sm:$0xff] }
0x3799   :  { %3010 = vrot.lane.b32.xlu0 %v2999_v18, %s4788_s7  ;;  %v3002_v35 = vadd.f32 %v2999_v18, %v2313_v62  ;;  %v3317_v18 = vld [vmem:[%s5750_s17] sm:$0xff] }
0x379b   :  { %v3586_v36 = vmul.f32 -1.442695, %v3002_v35 }
0x379d   :  { %4497 = vpow2.f32 %v3586_v36 }
0x379e   :  { %v3203_v25 = vpop.f32.mrb[36].mxu0 }
0x379f   :  { %v4121_v34 = vpop.f32.mrb[37].mxu0 }
0x37a0   :  { %v4334_v34 = vpack.c.bf16 %v3318_v23, %v3317_v18 }
0x37a7   :  { %v4498_v19 = vpop.eup %4497 }
0x37a8   :  { %v3006_v2 = vadd.f32 1.0, %v4498_v19 }
0x37aa   :  { %4499 = vrcp.f32 %v3006_v2 }
0x37b4   :  { %v4500_v10 = vpop.eup %4499 }
0x37b5   :  { %v3020_v44 = vsub.f32 1.0, %v4500_v10  ;;  %v3026_v43 = vmul.f32 %v4500_v10, %v2926_v15 }
0x380b   :  { %v3011_v33 = vpop.permute.xlu0 %3010 }
0x380c   :  { %v3013_v40 = vmul.f32 %v4500_v10, %v3011_v33 }
0x380e   :  { %3015 = vrot.lane.b32.xlu1 %v3013_v40, %s4788_s7 }
0x3880   :  { %v3016_v41 = vpop.permute.xlu1 %3015 }
0x3881   :  { %v3018_v42 = vadd.f32 %v3016_v41, %v2313_v62  ;;  %v3320_v62 = vld [vmem:[%s5750_s17 + $0x18] sm:$0xff] }
0x3883   :  { %4501 = vtanh.f32 %v3018_v42 }
0x388d   :  { %v4502_v5 = vpop.eup %4501 }
0x388e   :  { %3022 = vrot.lane.b32.xlu0 %v4502_v5, %s4789_s25 }
0x3900   :  { %v3023_v37 = vpop.permute.xlu0 %3022 }
0x3901   :  { %v3025_v57 = vmul.f32 %v3023_v37, %v3020_v44 }
0x3903   :  { %v5653_v27 = vadd.f32 %v3026_v43, %v3025_v57 }
0x3905   :  { %3029 = vrot.lane.b32.xlu1 %v5653_v27, %s4789_s25 }
0x3909   :  { %3299 = vrot.lane.b32.xlu1 %v3592_v49, %s4788_s7 }
0x3977   :  { %v3030_v46 = vpop.permute.xlu1 %3029 }
0x3978   :  { %4109 = vmatmul.mubr.msk.f32.vlgmr.msra.gmra.mrb[34].mxu1 %vm451_vm2, %v3030_v46 }
0x3979   :  { %4323 = vmatpush3.bf16.msra.mxu1 %v4322_v9  ;;  %4130 = vmatprep.mubr.msk.f32.mxu1 %vm4786_vm1, %v4787_v16 }
0x397a   :  { %4324 = vmatprep.subr.bf16.mxu1 %v4785_v7 }
0x397d   :  { %4326 = vmatpush3.bf16.msra.mxu1 %v4325_v6 }
0x397e   :  { %4333 = vmatprep.subr.bf16.mxu1 %v4785_v7 }
0x3980   :  { %4131 = vmatmul.mubr.msk.f32.vlgmr.msra.gmra.mrb[36].mxu1 %vm451_vm2, %v5583_v0  ;;  %v3300_v0 = vpop.permute.xlu1 %3299 }
0x3981   :  { %4152 = vmatprep.mubr.msk.f32.mxu1 %vm4786_vm1, %v4787_v16  ;;  %4335 = vmatpush3.bf16.msra.mxu1 %v4334_v34 }
0x3982   :  { %4336 = vmatprep.subr.bf16.mxu1 %v4785_v7 }
0x3a4b   :  { %v3099_v47 = vpop.f32.mrb[34].mxu1 }
0x3a4c   :  { %v3100_v48 = vadd.f32 %v5478_v38, %v3099_v47  ;;  %v4110_v28 = vpop.f32.mrb[35].mxu1  ;;  %v2314_v38 = vadd.f32 %v5593_v31, %v5525_v8  ;;  %v3321_v8 = vld [vmem:[%s5750_s17 + $0x20] sm:$0xff]  ;;  %v3322_v31 = vld [vmem:[%s5750_s17 + $0x28] sm:$0xff] }
0x3a4d   :  { %v4328_v21 = vpack.c.bf16 %v3322_v31, %v3321_v8 }
0x3a4e   :  { %3111 = vrot.lane.b32.xlu0 %v3100_v48, %s4788_s7  ;;  %v3103_v26 = vadd.f32 %v3100_v48, %v2314_v38 }
0x3a4f   :  { %4329 = vmatpush3.bf16.msra.mxu0 %v4328_v21 }
0x3a50   :  { %v3588_v55 = vmul.f32 -1.442695, %v3103_v26  ;;  %4330 = vmatprep.subr.bf16.mxu0 %v4785_v7 }
0x3a53   :  { %v3273_v56 = vpop.f32.mrb[36].mxu1  ;;  %4332 = vmatpush3.bf16.msra.mxu0 %v4331_v14 }
0x3a54   :  { %v3274_v3 = vadd.f32 %v3273_v56, %v3203_v25  ;;  %v4132_v50 = vpop.f32.mrb[37].mxu1  ;;  %v3319_v25 = vld [vmem:[%s5750_s17 + $0x10] sm:$0xff]  ;;  %s4790_s17 = smov [#allocation19]  }
0x3a55   :  { %v4337_v35 = vpack.c.bf16 %v3320_v62, %v3319_v25  ;;  %s3492_s2 = sshll.u32 %s4790_s17, 4  ;;  %s3493_s2 = int_to_ptr.vmem [resolvable:$true] %s3492_s2 }
0x3a56   :  { %v3284_v12 = vadd.f32 %v3591_v54, %v3274_v3  ;;  %p4742_p11 = scmp.lt.s32.totalorder %s3493_s2, %s3493_s2 }
0x3a57   :  { %4338 = vmatpush3.bf16.msra.mxu1 %v4337_v35 }
0x3a58   :  { %v3292_v63 = vadd.f32 %v3592_v49, %v3284_v12 }
0x3a5a   :  { %v3593_v51 = vmul.f32 -1.442695, %v3292_v63 }
0x3a5c   :  { %4503 = vpow2.f32 %v3593_v51 }
0x3a66   :  { %v4504_v52 = vpop.eup %4503 }
0x3a67   :  { %v3296_v53 = vadd.f32 1.0, %v4504_v52 }
0x3a69   :  { %4505 = vrcp.f32 %v3296_v53 }
0x3a6a   :  { %4507 = vpow2.f32 %v3588_v55 }
0x3a73   :  { %v4506_v60 = vpop.eup %4505 }
0x3a74   :  { %v3302_v16 = vmul.f32 %v4506_v60, %v3300_v0  ;;  %v4508_v24 = vpop.eup %4507  ;;  %v3309_v36 = vsub.f32 1.0, %v4506_v60  ;;  %v3315_v2 = vmul.f32 0.0, %v4506_v60 }
0x3a75   :  { %v3107_v59 = vadd.f32 1.0, %v4508_v24 }
0x3a76   :  { %3304 = vrot.lane.b32.xlu1 %v3302_v16, %s4788_s7 }
0x3a77   :  { %4509 = vrcp.f32 %v3107_v59 }
0x3a81   :  { %v4510_v32 = vpop.eup %4509 }
0x3a82   :  { %v3121_v40 = vsub.f32 1.0, %v4510_v32  ;;  %v3127_v42 = vmul.f32 %v4510_v32, %v5653_v27  ;;  %v4516_v27 = vld [vmem:[%s5761_s27] sm:$0xff] }
0x3ac0   :  { %v3112_v29 = vpop.permute.xlu0 %3111 }
0x3ac1   :  { %v3114_v20 = vmul.f32 %v4510_v32, %v3112_v29 }
0x3ac3   :  { %3116 = vrot.lane.b32.xlu0 %v3114_v20, %s4788_s7 }
0x3ae8   :  { %v3305_v30 = vpop.permute.xlu1 %3304 }
0x3ae9   :  { %v3307_v15 = vadd.f32 %v3305_v30, %v3284_v12 }
0x3aeb   :  { %4511 = vtanh.f32 %v3307_v15 }
0x3af5   :  { %v4512_v61 = vpop.eup %4511 }
0x3af6   :  { %3311 = vrot.lane.b32.xlu1 %v4512_v61, %s4789_s25 }
0x3b35   :  { %v3117_v1 = vpop.permute.xlu0 %3116 }
0x3b36   :  { %v3119_v58 = vadd.f32 %v3117_v1, %v2314_v38 }
0x3b38   :  { %4513 = vtanh.f32 %v3119_v58 }
0x3b42   :  { %v4514_v17 = vpop.eup %4513 }
0x3b43   :  { %3123 = vrot.lane.b32.xlu0 %v4514_v17, %s4789_s25 }
0x3b68   :  { %v3312_v19 = vpop.permute.xlu1 %3311 }
0x3b69   :  { %v3314_v10 = vmul.f32 %v3312_v19, %v3309_v36 }
0x3b6b   :  { %v3316_v33 = vadd.f32 %v3315_v2, %v3314_v10 }
0x3b6d   :  { %3326 = vrot.lane.b32.xlu0 %v3316_v33, %s4789_s25 }
0x3bb5   :  { %v3124_v41 = vpop.permute.xlu0 %3123 }
0x3bb6   :  { %v3126_v5 = vmul.f32 %v3124_v41, %v3121_v40 }
0x3bb8   :  { %v3128_v44 = vadd.f32 %v3127_v42, %v3126_v5 }
0x3bba   :  { %3401 = vrot.lane.b32.xlu1 %v3128_v44, %s4789_s25  ;;  %s4737_s25 = scalar_lea.vmem %s3493_s2, 32 }
0x3bbb   :  { %p4738_p10 = scmp.ne.s32.totalorder %s3493_s2, %s4737_s25  ;;  %p4743_p12 = scmp.lt.s32.totalorder %s4737_s25, %s4737_s25 }
0x3bbd   :  { %p4744_p13 = por %p4743_p12, %p4742_p11 }
0x3bbf   :  { %p4745_p0 = pnand %p4744_p13, %p4738_p10 }
0x3bdf   :  { %v3327_v37 = vpop.permute.xlu0 %3326 }
0x3be0   :  { %4142 = vmatmul.mubr.msk.f32.vlgmr.msra.gmra.mrb[38].mxu0 %vm451_vm2, %v3327_v37 }
0x3c2c   :  { %v3402_v7 = vpop.permute.xlu1 %3401 }
0x3c2d   :  { %4153 = vmatmul.mubr.msk.f32.vlgmr.msra.gmra.mrb[38].mxu1 %vm451_vm2, %v3402_v7 }
0x3cb3   :  { %v3396_v43 = vpop.f32.mrb[38].mxu0 }
0x3cb4   :  { %v4143_v57 = vpop.f32.mrb[39].mxu0 }
0x3d00   :  { %v3471_v49 = vpop.f32.mrb[38].mxu1 }
0x3d01   :  { %v3472_v39 = vadd.f32 %v3471_v49, %v3396_v43  ;;  %v4154_v9 = vpop.f32.mrb[39].mxu1 }
0x3d03   :  { %v3482_v22 = vadd.f32 %v3596_v11, %v3472_v39 }
0x3d05   :  { %v3483_v45 = vadd.f32 %v4516_v27, %v3482_v22 }
0x3d07   :  { %3485 = vst.msk [vmem:[#allocation19] sm:$0x3] %vm3484_vm3, %v3483_v45 }
0x3d08   :  { %4748 = shalt.err (!%p4745_p0)
}
0x3d09   :  { %s4749_s23 = scalar_lea.hbm %s5752_s19, 32 }
0x3d0a   :  { %p4750_p1 = scmp.ne.s32.totalorder %s5752_s19, %s4749_s23  ;;  %p4753_p2 = scmp.lt.u32.totalorder %s4749_s23, %s5752_s19 }
0x3d0c   :  { %p4755_p3 = pnand %p4753_p2, %p4750_p1 }
0x3d0e   :  { %4758 = shalt.err (!%p4755_p3)
}
0x3d0f   :  { %3495 = dma.vmem_to_hbm [thread:$0]  %s3493_s2, 32, %s5752_s19, [#allocation4]  }
0x3d10   :  { %4771 = dma.done.wait [#allocation4], 32  }
0x3d11   :  { %4772 = vsyncadd [#allocation4], 4294967264 }
0x3d12   :  { %3499 = vsyncpa [#allocation3], 1 }
0x3d13   :  { %3500 = vsyncpa [#allocation6], 1 }
0x3d14   :  { %3501 = vsyncpa [#allocation9], 1 }
0x3d15   :  { %3502 = vsyncpa [#allocation12], 1 }
0x3d16   :  { %3503 = vsyncpa [#allocation15], 1 }
0x3d17   :  { %3504 = vsyncpa [#allocation18], 1 }
0x3d18   :  { %3505 = vsyncpa [#allocation4], 1 }

</bundles_post_ra>
